<compile_context>
chip_gen: v6e
topology: v6e:2x2x1
jax: 0.10.0
libtpu: 0.0.40
codegen_flags: <defaults>
</compile_context>

<pallas_src>
import functools

import jax
import jax.numpy as jnp
from jax import lax
from jax.experimental import pallas as pl
from jax.experimental.pallas import tpu as pltpu

LEAKY_SLOPE = 0.01   # torch.nn.LeakyReLU default negative_slope


# ----------------------------------------------------------------------------
# Pallas kernel: fused 3x3 (dilated) conv + LeakyReLU on one halo'd row tile
# ----------------------------------------------------------------------------
def _up_conv_leaky_kernel(x_ref, w_ref, o_ref, *, TH, W, d):
    """x_ref : (1, 1, (TH+2d)*W + 2d, Cin)  bf16 row-tile slab (halo + shift pad)
       w_ref : (3, 3*Cin, Cout)             bf16, resident in VMEM
       o_ref : (1, 1, TH*W, Cout)           f32 output tile

    Each ky contributes one MXU matmul: the three horizontally shifted
    windows (kx = 0,1,2) are masked at the row boundaries and packed along the
    channel (contraction) axis, matching the (3*Cin, Cout) packed weight.
    """
    thw = TH * W
    cout = o_ref.shape[-1]
    col = lax.broadcasted_iota(jnp.int32, (thw, 1), 0) % W
    mask_l = col >= d           # kx = 0 tap reads column col - d
    mask_r = col < (W - d)      # kx = 2 tap reads column col + d
    zero = jnp.zeros((), jnp.bfloat16)

    acc = jnp.zeros((thw, cout), jnp.float32)
    for ky in range(3):                       # static unroll: 3 matmuls total
        base = ky * d * W
        wl = x_ref[0, 0, base:base + thw, :]
        wc = x_ref[0, 0, base + d:base + d + thw, :]
        wr = x_ref[0, 0, base + 2 * d:base + 2 * d + thw, :]
        wl = jnp.where(mask_l, wl, zero)      # mask the narrow-C bf16 windows
        wr = jnp.where(mask_r, wr, zero)
        window = jnp.concatenate([wl, wc, wr], axis=-1)       # (thw, 3*Cin)
        acc = acc + jnp.dot(window, w_ref[ky],
                            preferred_element_type=jnp.float32)

    o_ref[0, 0, :, :] = jnp.where(acc >= 0, acc, LEAKY_SLOPE * acc)


# ----------------------------------------------------------------------------
# JAX glue
# ----------------------------------------------------------------------------
def _vmem_limit_bytes():
    """Per-generation scoped-VMEM budget: ~48 MiB on v7x (64 MiB physical),
    up to 96 MiB on v5e/v6e (128 MiB physical)."""
    try:
        cap = int(pltpu.get_tpu_info().vmem_capacity_bytes)
    except Exception:
        cap = 64 * 1024 * 1024
    return min(cap * 3 // 4, 96 * 1024 * 1024)


def _pick_row_tile(h, w, cin, cout, d, max_bytes):
    """Largest divisor of h whose per-step working set stays under max_bytes."""
    best = 1
    for th in range(1, h + 1):
        if h % th:
            continue
        in_b = ((th + 2 * d) * w + 2 * d) * cin * 2     # bf16 input tile
        out_b = th * w * cout * 4                        # f32 acc / out tile
        # double-buffered input + packed window + acc + double-buffered output
        if 5 * in_b + 4 * out_b <= max_bytes:
            best = th
    return best


def up_conv_bn_relu_forward(params, x1, x2, *, dilation=1, up_flag=True,
                            max_tile_bytes=None):
    """UpConvBNReLU.forward.  x1, x2 are NCHW float32 (PyTorch layout)."""
    # TODO(synk): keep the surrounding model in NHWC to drop these two
    # full-tensor relayout passes (NCHW<->NHWC) at the module boundary.
    w = params["w"]                                   # (3, 3, Cin, Cout) HWIO
    d = int(dilation)
    assert d >= 1

    x1 = jnp.transpose(x1, (0, 2, 3, 1)).astype(jnp.bfloat16)
    x2 = jnp.transpose(x2, (0, 2, 3, 1)).astype(jnp.bfloat16)
    n, h, wd, c2 = x2.shape
    c1 = x1.shape[-1]
    cin, cout = c1 + c2, w.shape[-1]
    assert w.shape == (3, 3, cin, cout)

    if up_flag and x1.shape[1:3] != (h, wd):
        # TODO(synk): fuse the fixed-stencil bilinear 2x upsample into the
        # kernel; for now it runs as XLA glue, but already in bf16.
        x1 = jax.image.resize(x1, (n, h, wd, c1), method="bilinear")
    assert x1.shape[1:3] == (h, wd), \
        "x1 and x2 spatial sizes must match when up_flag=False"

    # Single bf16 channel-concat (never materialized in f32); the weight is
    # packed so each ky tap is one matmul with K = 3*Cin.
    x = jnp.concatenate([x1, x2], axis=-1)                   # (n, h, wd, cin)
    wp = w.astype(jnp.bfloat16).reshape(3, 3 * cin, cout)    # kx packed into K

    vmem_limit = _vmem_limit_bytes()
    if max_tile_bytes is None:
        max_tile_bytes = vmem_limit // 2
    th = _pick_row_tile(h, wd, cin, cout, d, max_tile_bytes)
    n_tiles = h // th
    thw = th * wd
    pad = d * wd + d                        # vertical halo + horizontal shift
    tile_len = thw + 2 * pad

    # One pad on the flattened HW axis absorbs both the zero-padding rows of
    # the convolution and the +/-d horizontal tap shift.
    xf = jnp.pad(x.reshape(n, h * wd, cin), ((0, 0), (pad, pad), (0, 0)))
    if n_tiles == 1:
        x_tiles = xf[:, None]               # (n, 1, tile_len, cin), no copy cost
    else:
        # Materialize overlapping row tiles (d-row halo).  Duplication is only
        # ~2d/th of the activation and keeps every kernel block a plain
        # rectangular BlockSpec tile (auto double-buffered, bounded VMEM).
        x_tiles = jnp.stack(
            [xf[:, t * thw:t * thw + tile_len, :] for t in range(n_tiles)],
            axis=1)                          # (n, n_tiles, tile_len, cin)

    kernel = functools.partial(_up_conv_leaky_kernel, TH=th, W=wd, d=d)
    out = pl.pallas_call(
        kernel,
        grid=(n, n_tiles),
        in_specs=[
            pl.BlockSpec((1, 1, tile_len, cin), lambda i, t: (i, t, 0, 0)),
            # Weights: constant index_map -> resident in VMEM across the grid.
            # (If the real model has large weights, add pipeline_mode=
            #  pl.Buffered(1) here to reclaim the second buffer on v7x.)
            pl.BlockSpec((3, 3 * cin, cout), lambda i, t: (0, 0, 0)),
        ],
        # NOTE: Cout < 128 means masked stores on the lane axis; with a real
        # model where Cout >= 128 this becomes lane-dense automatically.
        out_specs=pl.BlockSpec((1, 1, thw, cout), lambda i, t: (i, t, 0, 0)),
        out_shape=jax.ShapeDtypeStruct((n, n_tiles, thw, cout), jnp.float32),
        compiler_params=pltpu.CompilerParams(
            dimension_semantics=("parallel", "parallel"),
            vmem_limit_bytes=vmem_limit,
        ),
    )(x_tiles, wp)

    out = out.reshape(n, h, wd, cout)
    # TODO(synk): return NHWC (and/or bf16) if the consumer accepts it — saves
    # this relayout pass and half of the output writeback.
    return jnp.transpose(out, (0, 3, 1, 2))


# ----------------------------------------------------------------------------
# Pure-JAX reference (same bf16 numerics) for a sanity check
# ----------------------------------------------------------------------------
def _reference(params, x1, x2, *, dilation=1, up_flag=True):
    w = params["w"]
    d = int(dilation)
    x1 = jnp.transpose(x1, (0, 2, 3, 1)).astype(jnp.bfloat16)
    x2 = jnp.transpose(x2, (0, 2, 3, 1)).astype(jnp.bfloat16)
    n, h, wd, _ = x2.shape
    if up_flag and x1.shape[1:3] != (h, wd):
        x1 = jax.image.resize(x1, (n, h, wd, x1.shape[-1]), method="bilinear")
    x = jnp.concatenate([x1, x2], axis=-1)
    y = lax.conv_general_dilated(
        x, w.astype(jnp.bfloat16),
        window_strides=(1, 1), padding=[(d, d), (d, d)], rhs_dilation=(d, d),
        dimension_numbers=("NHWC", "HWIO", "NHWC"),
        preferred_element_type=jnp.float32)
    y = jnp.where(y >= 0, y, LEAKY_SLOPE * y)
    return jnp.transpose(y, (0, 3, 1, 2))


def init_params(key, in_ch, out_ch):
    std = (2.0 / (9 * in_ch)) ** 0.5
    return {"w": jax.random.normal(key, (3, 3, in_ch, out_ch), jnp.float32) * std}


# ----------------------------------------------------------------------------
if __name__ == "__main__":
    key = jax.random.PRNGKey(0)
    k1, k2, kw = jax.random.split(key, 3)

    N, C1, C2, COUT, H, W = 2, 16, 16, 32, 16, 16
    # x1 comes from a coarser stage -> half resolution, upsampled inside fwd.
    x1 = jax.random.normal(k1, (N, C1, H // 2, W // 2), jnp.float32)
    x2 = jax.random.normal(k2, (N, C2, H, W), jnp.float32)
    params = init_params(kw, C1 + C2, COUT)

    def check(dilation, up_flag, a1, a2, **extra):
        fwd = jax.jit(functools.partial(up_conv_bn_relu_forward,
                                        dilation=dilation, up_flag=up_flag,
                                        **extra))
        out = jax.block_until_ready(fwd(params, a1, a2))
        assert out.shape == (N, COUT, H, W), out.shape
        assert bool(jnp.all(jnp.isfinite(out)))
        ref = jax.jit(functools.partial(_reference, dilation=dilation,
                                        up_flag=up_flag))(params, a1, a2)
        ref = jax.block_until_ready(ref)
        assert bool(jnp.allclose(out, ref, rtol=2e-2, atol=2e-2)), \
            float(jnp.max(jnp.abs(out - ref)))

    # 1) main path: bilinear 2x upsample + fused concat-conv + LeakyReLU
    check(1, True, x1, x2)
    # 2) dilation=2 with up_flag=False (x1 already at x2's resolution)
    x1_full = jax.random.normal(k1, (N, C1, H, W), jnp.float32)
    check(2, False, x1_full, x2)
    # 3) force the multi-row-tile (halo) path: 16 row tiles per batch element
    check(1, True, x1, x2, max_tile_bytes=4096)

    print("KERNEL_OK")
</pallas_src>

<mosaic_0001>
module attributes {stable_mosaic.version = 11 : i64} {
  func.func @_up_conv_leaky_kernel(%arg0: i32, %arg1: i32, %arg2: memref<1x1x290x32xbf16, #tpu.memory_space<vmem>>, %arg3: memref<3x96x32xbf16, #tpu.memory_space<vmem>>, %arg4: memref<1x1x256x32xf32, #tpu.memory_space<vmem>>) attributes {dimension_semantics = [#tpu.dimension_semantics<parallel>, #tpu.dimension_semantics<parallel>], iteration_bounds = array<i64: 2, 1>, scalar_prefetch = 0 : i64, scratch_operands = 0 : i64, tpu.core_type = #tpu.core_type<tc>, window_params = [{transform_indices = @transform_0, window_bounds = array<i64: 1, 1, 290, 32>}, {pipeline_mode = #tpu.pipeline_mode<synchronous>, transform_indices = @transform_1, window_bounds = array<i64: 3, 96, 32>}, {transform_indices = @transform_2, window_bounds = array<i64: 1, 1, 256, 32>}]} {
    %0 = tpu.iota {dimensions = array<i32: 0>} : vector<256x1xi32>
    %c16_i32 = arith.constant 16 : i32
    %c0_i32 = arith.constant 0 : i32
    %1 = arith.cmpi eq, %c16_i32, %c0_i32 : i32
    %c1_i32 = arith.constant 1 : i32
    %2 = arith.select %1, %c1_i32, %c16_i32 : i32
    %3 = vector.broadcast %2 : i32 to vector<256x1xi32>
    %4 = arith.remsi %0, %3 : vector<256x1xi32>
    %c0_i32_0 = arith.constant 0 : i32
    %5 = vector.broadcast %c0_i32_0 : i32 to vector<256x1xi32>
    %6 = arith.cmpi ne, %4, %5 : vector<256x1xi32>
    %c0_i32_1 = arith.constant 0 : i32
    %7 = vector.broadcast %c0_i32_1 : i32 to vector<256x1xi32>
    %8 = arith.cmpi slt, %4, %7 : vector<256x1xi32>
    %c0_i32_2 = arith.constant 0 : i32
    %9 = arith.cmpi slt, %2, %c0_i32_2 : i32
    %10 = vector.broadcast %9 : i1 to vector<256x1xi1>
    %11 = vector.broadcast %10 : vector<256x1xi1> to vector<256x1xi1>
    %12 = arith.xori %8, %11 : vector<256x1xi1>
    %13 = arith.andi %12, %6 : vector<256x1xi1>
    %14 = vector.broadcast %2 : i32 to vector<256x1xi32>
    %15 = arith.addi %4, %14 : vector<256x1xi32>
    %16 = arith.select %13, %15, %4 : vector<256x1xi1>, vector<256x1xi32>
    %c1_i32_3 = arith.constant 1 : i32
    %17 = vector.broadcast %c1_i32_3 : i32 to vector<256x1xi32>
    %18 = arith.cmpi sge, %16, %17 : vector<256x1xi32>
    %c15_i32 = arith.constant 15 : i32
    %19 = vector.broadcast %c15_i32 : i32 to vector<256x1xi32>
    %20 = arith.cmpi slt, %16, %19 : vector<256x1xi32>
    %cst = arith.constant 0.000000e+00 : f32
    %21 = vector.broadcast %cst : f32 to vector<256x32xf32>
    %c0 = arith.constant 0 : index
    %c0_4 = arith.constant 0 : index
    %c0_5 = arith.constant 0 : index
    %c0_6 = arith.constant 0 : index
    %22 = vector.load %arg2[%c0, %c0_4, %c0_5, %c0_6] : memref<1x1x290x32xbf16, #tpu.memory_space<vmem>>, vector<1x1x256x32xbf16>
    %23 = vector.shape_cast %22 : vector<1x1x256x32xbf16> to vector<256x32xbf16>
    %c0_7 = arith.constant 0 : index
    %c0_8 = arith.constant 0 : index
    %c1 = arith.constant 1 : index
    %c0_9 = arith.constant 0 : index
    %24 = vector.load %arg2[%c0_7, %c0_8, %c1, %c0_9] : memref<1x1x290x32xbf16, #tpu.memory_space<vmem>>, vector<1x1x256x32xbf16>
    %25 = vector.shape_cast %24 : vector<1x1x256x32xbf16> to vector<256x32xbf16>
    %c0_10 = arith.constant 0 : index
    %c0_11 = arith.constant 0 : index
    %c2 = arith.constant 2 : index
    %c0_12 = arith.constant 0 : index
    %26 = vector.load %arg2[%c0_10, %c0_11, %c2, %c0_12] : memref<1x1x290x32xbf16, #tpu.memory_space<vmem>>, vector<1x1x256x32xbf16>
    %27 = vector.shape_cast %26 : vector<1x1x256x32xbf16> to vector<256x32xbf16>
    %cst_13 = arith.constant 0.000000e+00 : bf16
    %28 = vector.shape_cast %18 : vector<256x1xi1> to vector<256x1xi1>
    %29 = vector.broadcast %28 : vector<256x1xi1> to vector<256x32xi1>
    %30 = vector.broadcast %cst_13 : bf16 to vector<256x32xbf16>
    %31 = arith.select %29, %23, %30 : vector<256x32xi1>, vector<256x32xbf16>
    %cst_14 = arith.constant 0.000000e+00 : bf16
    %32 = vector.shape_cast %20 : vector<256x1xi1> to vector<256x1xi1>
    %33 = vector.broadcast %32 : vector<256x1xi1> to vector<256x32xi1>
    %34 = vector.broadcast %cst_14 : bf16 to vector<256x32xbf16>
    %35 = arith.select %33, %27, %34 : vector<256x32xi1>, vector<256x32xbf16>
    %36 = tpu.concatenate %31, %25, %35 in 1 : vector<256x32xbf16>, vector<256x32xbf16>, vector<256x32xbf16> -> vector<256x96xbf16>
    %c0_15 = arith.constant 0 : index
    %c0_16 = arith.constant 0 : index
    %c0_17 = arith.constant 0 : index
    %37 = vector.load %arg3[%c0_15, %c0_16, %c0_17] : memref<3x96x32xbf16, #tpu.memory_space<vmem>>, vector<1x96x32xbf16>
    %38 = vector.shape_cast %37 : vector<1x96x32xbf16> to vector<96x32xbf16>
    %cst_18 = arith.constant dense<0.000000e+00> : vector<256x32xf32>
    %39 = tpu.matmul %36, %38, %cst_18 {dimension_numbers = #tpu.dot_dimension_numbers<[1], [0], [0], [1], [0, 0, 1, 1], [], []>} : vector<256x96xbf16>, vector<96x32xbf16>, vector<256x32xf32> -> vector<256x32xf32>
    %40 = arith.addf %21, %39 : vector<256x32xf32>
    %c0_19 = arith.constant 0 : index
    %c0_20 = arith.constant 0 : index
    %c16 = arith.constant 16 : index
    %c0_21 = arith.constant 0 : index
    %41 = vector.load %arg2[%c0_19, %c0_20, %c16, %c0_21] : memref<1x1x290x32xbf16, #tpu.memory_space<vmem>>, vector<1x1x256x32xbf16>
    %42 = vector.shape_cast %41 : vector<1x1x256x32xbf16> to vector<256x32xbf16>
    %c0_22 = arith.constant 0 : index
    %c0_23 = arith.constant 0 : index
    %c17 = arith.constant 17 : index
    %c0_24 = arith.constant 0 : index
    %43 = vector.load %arg2[%c0_22, %c0_23, %c17, %c0_24] : memref<1x1x290x32xbf16, #tpu.memory_space<vmem>>, vector<1x1x256x32xbf16>
    %44 = vector.shape_cast %43 : vector<1x1x256x32xbf16> to vector<256x32xbf16>
    %c0_25 = arith.constant 0 : index
    %c0_26 = arith.constant 0 : index
    %c18 = arith.constant 18 : index
    %c0_27 = arith.constant 0 : index
    %45 = vector.load %arg2[%c0_25, %c0_26, %c18, %c0_27] : memref<1x1x290x32xbf16, #tpu.memory_space<vmem>>, vector<1x1x256x32xbf16>
    %46 = vector.shape_cast %45 : vector<1x1x256x32xbf16> to vector<256x32xbf16>
    %cst_28 = arith.constant 0.000000e+00 : bf16
    %47 = vector.shape_cast %18 : vector<256x1xi1> to vector<256x1xi1>
    %48 = vector.broadcast %47 : vector<256x1xi1> to vector<256x32xi1>
    %49 = vector.broadcast %cst_28 : bf16 to vector<256x32xbf16>
    %50 = arith.select %48, %42, %49 : vector<256x32xi1>, vector<256x32xbf16>
    %cst_29 = arith.constant 0.000000e+00 : bf16
    %51 = vector.shape_cast %20 : vector<256x1xi1> to vector<256x1xi1>
    %52 = vector.broadcast %51 : vector<256x1xi1> to vector<256x32xi1>
    %53 = vector.broadcast %cst_29 : bf16 to vector<256x32xbf16>
    %54 = arith.select %52, %46, %53 : vector<256x32xi1>, vector<256x32xbf16>
    %55 = tpu.concatenate %50, %44, %54 in 1 : vector<256x32xbf16>, vector<256x32xbf16>, vector<256x32xbf16> -> vector<256x96xbf16>
    %c1_30 = arith.constant 1 : index
    %c0_31 = arith.constant 0 : index
    %c0_32 = arith.constant 0 : index
    %56 = vector.load %arg3[%c1_30, %c0_31, %c0_32] : memref<3x96x32xbf16, #tpu.memory_space<vmem>>, vector<1x96x32xbf16>
    %57 = vector.shape_cast %56 : vector<1x96x32xbf16> to vector<96x32xbf16>
    %cst_33 = arith.constant dense<0.000000e+00> : vector<256x32xf32>
    %58 = tpu.matmul %55, %57, %cst_33 {dimension_numbers = #tpu.dot_dimension_numbers<[1], [0], [0], [1], [0, 0, 1, 1], [], []>} : vector<256x96xbf16>, vector<96x32xbf16>, vector<256x32xf32> -> vector<256x32xf32>
    %59 = arith.addf %40, %58 : vector<256x32xf32>
    %c0_34 = arith.constant 0 : index
    %c0_35 = arith.constant 0 : index
    %c32 = arith.constant 32 : index
    %c0_36 = arith.constant 0 : index
    %60 = vector.load %arg2[%c0_34, %c0_35, %c32, %c0_36] : memref<1x1x290x32xbf16, #tpu.memory_space<vmem>>, vector<1x1x256x32xbf16>
    %61 = vector.shape_cast %60 : vector<1x1x256x32xbf16> to vector<256x32xbf16>
    %c0_37 = arith.constant 0 : index
    %c0_38 = arith.constant 0 : index
    %c33 = arith.constant 33 : index
    %c0_39 = arith.constant 0 : index
    %62 = vector.load %arg2[%c0_37, %c0_38, %c33, %c0_39] : memref<1x1x290x32xbf16, #tpu.memory_space<vmem>>, vector<1x1x256x32xbf16>
    %63 = vector.shape_cast %62 : vector<1x1x256x32xbf16> to vector<256x32xbf16>
    %c0_40 = arith.constant 0 : index
    %c0_41 = arith.constant 0 : index
    %c34 = arith.constant 34 : index
    %c0_42 = arith.constant 0 : index
    %64 = vector.load %arg2[%c0_40, %c0_41, %c34, %c0_42] : memref<1x1x290x32xbf16, #tpu.memory_space<vmem>>, vector<1x1x256x32xbf16>
    %65 = vector.shape_cast %64 : vector<1x1x256x32xbf16> to vector<256x32xbf16>
    %cst_43 = arith.constant 0.000000e+00 : bf16
    %66 = vector.shape_cast %18 : vector<256x1xi1> to vector<256x1xi1>
    %67 = vector.broadcast %66 : vector<256x1xi1> to vector<256x32xi1>
    %68 = vector.broadcast %cst_43 : bf16 to vector<256x32xbf16>
    %69 = arith.select %67, %61, %68 : vector<256x32xi1>, vector<256x32xbf16>
    %cst_44 = arith.constant 0.000000e+00 : bf16
    %70 = vector.shape_cast %20 : vector<256x1xi1> to vector<256x1xi1>
    %71 = vector.broadcast %70 : vector<256x1xi1> to vector<256x32xi1>
    %72 = vector.broadcast %cst_44 : bf16 to vector<256x32xbf16>
    %73 = arith.select %71, %65, %72 : vector<256x32xi1>, vector<256x32xbf16>
    %74 = tpu.concatenate %69, %63, %73 in 1 : vector<256x32xbf16>, vector<256x32xbf16>, vector<256x32xbf16> -> vector<256x96xbf16>
    %c2_45 = arith.constant 2 : index
    %c0_46 = arith.constant 0 : index
    %c0_47 = arith.constant 0 : index
    %75 = vector.load %arg3[%c2_45, %c0_46, %c0_47] : memref<3x96x32xbf16, #tpu.memory_space<vmem>>, vector<1x96x32xbf16>
    %76 = vector.shape_cast %75 : vector<1x96x32xbf16> to vector<96x32xbf16>
    %cst_48 = arith.constant dense<0.000000e+00> : vector<256x32xf32>
    %77 = tpu.matmul %74, %76, %cst_48 {dimension_numbers = #tpu.dot_dimension_numbers<[1], [0], [0], [1], [0, 0, 1, 1], [], []>} : vector<256x96xbf16>, vector<96x32xbf16>, vector<256x32xf32> -> vector<256x32xf32>
    %78 = arith.addf %59, %77 : vector<256x32xf32>
    %cst_49 = arith.constant 0.000000e+00 : f32
    %79 = vector.broadcast %cst_49 : f32 to vector<256x32xf32>
    %80 = arith.cmpf oge, %78, %79 : vector<256x32xf32>
    %cst_50 = arith.constant 0.00999999977 : f32
    %81 = vector.broadcast %cst_50 : f32 to vector<256x32xf32>
    %82 = arith.mulf %81, %78 : vector<256x32xf32>
    %83 = arith.select %80, %78, %82 : vector<256x32xi1>, vector<256x32xf32>
    %c0_51 = arith.constant 0 : index
    %c0_52 = arith.constant 0 : index
    %c0_53 = arith.constant 0 : index
    %c0_54 = arith.constant 0 : index
    %84 = vector.load %arg4[%c0_51, %c0_52, %c0_53, %c0_54] : memref<1x1x256x32xf32, #tpu.memory_space<vmem>>, vector<1x1x256x32xf32>
    %85 = vector.shape_cast %84 : vector<1x1x256x32xf32> to vector<256x32xf32>
    %86 = vector.shape_cast %83 : vector<256x32xf32> to vector<1x1x256x32xf32>
    tpu.vector_store %arg4[%c0_51, %c0_52, %c0_53, %c0_54], %86 {strides = array<i32>} : memref<1x1x256x32xf32, #tpu.memory_space<vmem>>, vector<1x1x256x32xf32>,
    return
  }
  func.func @transform_0(%arg0: i32, %arg1: i32) -> (i32, i32, i32, i32) {
    %c0_i32 = arith.constant 0 : i32
    %c0_i32_0 = arith.constant 0 : i32
    %c0_i32_1 = arith.constant 0 : i32
    return %arg0, %arg1, %c0_i32, %c0_i32_0 : i32, i32, i32, i32
  }
  func.func @transform_1(%arg0: i32, %arg1: i32) -> (i32, i32, i32) {
    %c0_i32 = arith.constant 0 : i32
    %c0_i32_0 = arith.constant 0 : i32
    %c0_i32_1 = arith.constant 0 : i32
    %c0_i32_2 = arith.constant 0 : i32
    return %c0_i32, %c0_i32_0, %c0_i32_1 : i32, i32, i32
  }
  func.func @transform_2(%arg0: i32, %arg1: i32) -> (i32, i32, i32, i32) {
    %c0_i32 = arith.constant 0 : i32
    %c0_i32_0 = arith.constant 0 : i32
    %c0_i32_1 = arith.constant 0 : i32
    return %arg0, %arg1, %c0_i32, %c0_i32_0 : i32, i32, i32, i32
  }
}

</mosaic_0001>

<bundles_post_ra>
// kernel: up_conv_bn_relu_forward.1
= control target key start
LH: loop header
LB: loop body
LE: loop exit
PB: predicated region body
PF: predicated region fallthrough
CT: control target
= control target key end

     0   :  { %7 = vsyncpa [#allocation3], 0  ;;  %s6654_s0 = inlined_call_operand.vmem [shape: bf16[2,1,290,32], index: 0, kind: input, shape index: {}]   ;;  %s6655_s1 = inlined_call_operand.vmem [shape: bf16[3,96,32], index: 1, kind: input, shape index: {}]   ;;  %s6656_s2 = inlined_call_operand.hbm [shape: f32[2,1,256,32], index: 2, kind: output, shape index: {}]  }
   0x1   :  { %9 = vsyncpa [#allocation3 + $0x1], 0  ;;  %s4414_s9 = smov 0   ;;  %s4416_s10 = smov 0  }
   0x2   :  { %s4418_s11 = smov 0   ;;  %s4420_s12 = smov 0  }
   0x3   :  { %s4422_s13 = smov 0   ;;  %s4424_s14 = smov 0  }
   0x4 LB: > { %s3693_s15 = sadd.s32 4294967295, %s4390_s14   ;;  %s3694_s16 = sadd.s32 4294967294, %s4390_s14   ;;  %s4390_s14 = sphi %s4424_s14, %s15_s14   ;;  %s4386_s13 = sphi %s4422_s13, %s7140_s13   ;;  %s4382_s12 = sphi %s4420_s12, %s7139_s12   ;;  %s4378_s11 = sphi %s4418_s11, %s7138_s11   ;;  %s4374_s10 = sphi %s4416_s10, %s7137_s10   ;;  %s4370_s9 = sphi %s4414_s9, %s7136_s9  }
   0x5   : > { %s27_s17 = sadd.s32 1, %s4386_s13  ;;  %s85_s18 = sadd.s32 1, %s4378_s11 }
   0x6   : > { %p29_p0 = scmp.ge.s32.totalorder %s27_s17, 2  ;;  %p95_p1 = scmp.ne.s32.totalorder %s4378_s11, %s4374_s10 }
   0x7   : > { %p96_p2 = scmp.eq.s32.totalorder %s3693_s15, 1  ;;  %p101_p3 = scmp.ne.s32.totalorder %s4374_s10, %s4370_s9 }
   0x8   : > { %s7142_s17 = smov (%p29_p0, %s27_s17), 0  ;;  %p102_p5 = scmp.eq.s32.totalorder %s3694_s16, 1 }
   0x9   : > { %p4454_p4 = por %p96_p2, %p95_p1  ;;  %s80_s20 = ssub.s32 %s4386_s13, %s7142_s17 }
   0xa   : > { %p3697_p6 = scmp.ge.s32.totalorder %s4390_s14, 1  ;;  %p83_p7 = scmp.eq.s32.totalorder %s80_s20, 0 }
   0xb   : > { %p4461_p8 = por %p102_p5, %p101_p3  ;;  %p135_p9 = scmp.lt.s32.totalorder %s4390_s14, 3 }
   0xc   : > { %s4467_s22 = scalar_select %p83_p7, %s4378_s11, %s85_s18  }
   0xd   : > { %p136_p10 = pnand %p3697_p6, %p135_p9 }
   0xf   : > { %139 = sbr.rel (%p136_p10) target bundleno = 575 (0x23f), region = 28 }
  0x14   : > { %p161_p11 = scmp.lt.s32.totalorder %s4382_s12, 1  ;;  %v173_v0 = vlaneseq  ;;  %vm4392_vm0 = vmmov 1   ;;  %v6749_v1 = vmov 0  ;;  %v6668_v3 = vmov 0   ;;  %s4394_s28 = smov 32  }
  0x15   : > { %vm4470_vm1 = vmpackc.low %vm4392_vm0, %vm4392_vm0  ;;  %vm6695_vm2 = vsmask.f32 7424  ;;  %vm944_vm3 = vcmask 1040384   ;;  %vm945_vm4 = vcmask 1044484   ;;  %vm6689_vm13 = vcmask 1046528   ;;  %s4395_s7 = smov 64  }
  0x16   : > { %v6750_v1 = vsel %vm4470_vm1, 4294967295, %v6749_v1  ;;  %s162_s23 = scalar_select %p161_p11, %s4382_s12, 1  ;;  %v4475_v2 = vshrl.u32 %v173_v0, 7  ;;  %v912_v4 = vsel %vm4470_vm1, 65537, %v6668_v3  ;;  %vm4600_vm6 = vmor %vm944_vm3, %vm945_vm4 }
  0x17   : > { %6751 = vst [vmem:[#allocation5_spill] sm:$0xff] %v6750_v1  ;;  %v4480_v5 = vrot.slane %v912_v4, 7  ;;  %s3930_s8 = sshll.u32 %s4382_s12, 12 }
  0x18   : > { %6752 = vst [vmem:[#allocation6_spill] sm:$0xff] %v4475_v2  ;;  %s4141_s24 = smul.u32 148, %s162_s23  ;;  %v4483_v6 = vadd.s32 136, %v4475_v2  ;;  %v4486_v7 = vadd.s32 152, %v4475_v2  ;;  %v4489_v8 = vadd.s32 168, %v4475_v2  ;;  %v4492_v9 = vadd.s32 8, %v4475_v2  ;;  %s6599_s20 = scalar_lea.hbm %s6656_s2, %s3930_s8 }
  0x19   : > { %v4495_v10 = vrot.slane %v4480_v5, 4  ;;  %v4498_v11 = vadd.s32 24, %v4475_v2  ;;  %v4501_v12 = vadd.s32 120, %v4475_v2  ;;  %vm6678_vm7 = vcmp.ne.s16.totalorder %v4480_v5, 0 }
  0x1a   : > { %s4506_s27 = scalar_lea.vmem %s6654_s0, %s4141_s24  ;;  %v329_v13 = vand.u32 15, %v4483_v6  ;;  %v343_v14 = vand.u32 15, %v4486_v7  ;;  %v357_v15 = vand.u32 15, %v4489_v8  ;;  %v217_v16 = vand.u32 15, %v4492_v9  ;;  %s4396_s24 = smov [#allocation2]  }
  0x1b   : > { %v4513_v17 = vld [vmem:[%s4506_s27 + $0x48] sm:$0xf]  ;;  %v4516_v18 = vld [vmem:[%s4506_s27 + $0x4c] sm:$0xf]  ;;  %v4519_v19 = vld [vmem:[%s4506_s27 + $0x50] sm:$0xf] }
  0x1c   : > { %v4522_v20 = vld [vmem:[%s4506_s27 + $0x54] sm:$0xf]  ;;  %v3725_v21 = vcombine.low %v4513_v17, %v4516_v18  ;;  %v4527_v22 = vld [vmem:[%s4506_s27 + $0x8] sm:$0xf]  ;;  %v4530_v23 = vld [vmem:[%s4506_s27 + $0xc] sm:$0xf] }
  0x1d   : > { %v3726_v24 = vcombine.low %v4519_v19, %v4522_v20  ;;  %v4535_v25 = vld [vmem:[%s4506_s27 + $0x10] sm:$0xf]  ;;  %v4538_v26 = vld [vmem:[%s4506_s27 + $0x14] sm:$0xf]  ;;  %v3717_v27 = vcombine.low %v4527_v22, %v4530_v23  ;;  %v4543_v28 = vld [vmem:[%s4506_s27 + $0x58] sm:$0xf] }
  0x1e   : > { %v1344_v29 = vshll.u32 %v3725_v21, 16  ;;  %v1348_v30 = vshrl.u32 %v3725_v21, 16  ;;  %v3718_v31 = vcombine.low %v4535_v25, %v4538_v26  ;;  %v4548_v32 = vld [vmem:[%s4506_s27 + $0x5c] sm:$0xf]  ;;  %v4551_v33 = vld [vmem:[%s4506_s27 + $0x18] sm:$0xf] }
  0x1f   : > { %v1352_v34 = vshll.u32 %v3726_v24, 16  ;;  %v1280_v35 = vshll.u32 %v3717_v27, 16  ;;  %v1284_v36 = vshrl.u32 %v3717_v27, 16  ;;  %v3727_v37 = vcombine.low %v4543_v28, %v4548_v32  ;;  %v4556_v38 = vld [vmem:[%s4506_s27 + $0x1c] sm:$0xf]  ;;  %s4318_s25 = sshll.u32 %s4396_s24, 4  ;;  %s4319_s25 = int_to_ptr.vmem [resolvable:$false] %s4318_s25 }
  0x20   : > { %v4558_v39 = vrot.slane %v1344_v29, 1  ;;  %v1288_v40 = vshll.u32 %v3718_v31, 16  ;;  %v1356_v41 = vshrl.u32 %v3726_v24, 16  ;;  %v3719_v42 = vcombine.low %v4551_v33, %v4556_v38  ;;  %v4563_v43 = vld [vmem:[%s4506_s27 + $0x60] sm:$0xf]  ;;  %s4320_s26 = scalar_lea.vmem %s4319_s25, 8192 }
  0x21   : > { %v1354_v44 = vrot.slane %v1352_v34, 1  ;;  %v4565_v45 = vrot.slane %v1280_v35, 1  ;;  %v1360_v46 = vshll.u32 %v3727_v37, 16  ;;  %v1292_v47 = vshrl.u32 %v3718_v31, 16  ;;  %v4568_v48 = vld [vmem:[%s4506_s27 + $0x64] sm:$0xf] }
  0x22   : > { %v1350_v49 = vor.u32 %v1348_v30, %v4558_v39  ;;  %v1290_v50 = vrot.slane %v1288_v40, 1  ;;  %v1296_v51 = vshll.u32 %v3719_v42, 16  ;;  %v3728_v52 = vcombine.low %v4563_v43, %v4568_v48  ;;  %v4574_v53 = vld [vmem:[%s4506_s27 + $0x68] sm:$0xf]  ;;  %v4577_v54 = vld [vmem:[%s4506_s27 + $0x6c] sm:$0xf] }
  0x23   : > { %v1286_v55 = vor.u32 %v1284_v36, %v4565_v45  ;;  %v1358_v56 = vor.u32 %v1356_v41, %v1354_v44  ;;  %v1362_v57 = vrot.slane %v1360_v46, 1  ;;  %v1364_v58 = vshrl.u32 %v3727_v37, 16  ;;  %v4582_v63 = vld [vmem:[%s4506_s27 + $0x20] sm:$0xf]  ;;  %v4585_v0 = vld [vmem:[%s4506_s27 + $0x24] sm:$0xf] }
  0x24   : > { %v1355_v59 = vsel %vm6695_vm2, %v1350_v49, %v1354_v44  ;;  %v1294_v60 = vor.u32 %v1292_v47, %v1290_v50  ;;  %v1298_v61 = vrot.slane %v1296_v51, 1  ;;  %v1368_v62 = vshll.u32 %v3728_v52, 16  ;;  %v4230_v49 = vld [vmem:[%s6655_s1 + $0x58] sm:$0xff]   ;;  %v2539_v34 = vld [vmem:[%s4506_s27 + $0x10] sm:$0xf] }
  0x25   : > { %1422 = vrot.lane.b32.xlu0 %v1355_v59, %s4394_s28  ;;  %v1291_v4 = vsel %vm6695_vm2, %v1286_v55, %v1290_v50  ;;  %v1363_v21 = vsel %vm6695_vm2, %v1358_v56, %v1362_v57  ;;  %v1366_v24 = vor.u32 %v1364_v58, %v1362_v57  ;;  %v4592_v27 = vcombine.low %v4574_v53, %v4577_v54  ;;  %v4767_v58 = vld [vmem:[%s4506_s27 + $0x28] sm:$0xf] }
  0x26   : > { %1406 = vrot.lane.b32.xlu1 %v1291_v4, %s4394_s28  ;;  %v1299_v29 = vsel %vm6695_vm2, %v1294_v60, %v1298_v61  ;;  %v1370_v30 = vrot.slane %v1368_v62, 1  ;;  %v1372_v31 = vshrl.u32 %v3728_v52, 16  ;;  %vm639_vm5 = vcmp.lt.s32.totalorder %v329_v13, 15  ;;  %4129 = vmatprep.subr.bf16.mxu1 %v4230_v49  ;;  %v1682_v4 = vld [vmem:[%s4506_s27 + $0x8] sm:$0xe] }
  0x27   : > { %v1376_v35 = vshll.u32 %v4592_v27, 16  ;;  %vm641_vm8 = vcmp.lt.s32.totalorder %v343_v14, 15  ;;  %vm4610_vm9 = vcmp.lt.s32.totalorder %v357_v15, 15  ;;  %vm897_vm10 = vmpackc.low %vm639_vm5, %vm639_vm5  ;;  %v4616_v6 = vcombine.low %v4582_v63, %v4585_v0  ;;  %3997 = vmatprep.subr.bf16.mxu0 %v4230_v49  ;;  %4135 = vmatpush3.bf16.msra.mxu1 %v4230_v49 }
  0x28   : > { %v1371_v13 = vsel %vm6695_vm2, %v1366_v24, %v1370_v30  ;;  %v1374_v37 = vor.u32 %v1372_v31, %v1370_v30  ;;  %vm899_vm11 = vmpackc.low %vm641_vm8, %vm641_vm8  ;;  %v4620_v40 = vsel %vm897_vm10, 65537, %v6668_v3  ;;  %v1300_v7 = vshrl.u32 %v3719_v42, 16  ;;  %3998 = vmatpush3.bf16.msra.mxu0 %v4230_v49 }
  0x29   : > { %1424 = vrot.lane.b32.xlu0 %v1363_v21, %s4394_s28  ;;  %v4623_v8 = vrot.slane %v1376_v35, 1  ;;  %vm901_vm12 = vmpackc.low %vm4610_vm9, %vm4610_vm9  ;;  %v931_v14 = vsel %vm899_vm11, 65537, %v6668_v3  ;;  %v997_v15 = vrot.slane %v4620_v40, 7  ;;  %v1304_v41 = vshll.u32 %v4616_v6, 16  ;;  %v4231_v21 = vld [vmem:[%s6655_s1 + $0x50] sm:$0xff]  }
  0x2a   : > { %1408 = vrot.lane.b32.xlu1 %v1299_v29, %s4394_s28  ;;  %v4633_v44 = vsel %vm901_vm12, 65537, %v6668_v3  ;;  %v1003_v42 = vrot.slane %v931_v14, 7  ;;  %v1302_v46 = vor.u32 %v1300_v7, %v1298_v61  ;;  %v231_v47 = vand.u32 15, %v4498_v11  ;;  %4130 = vmatprep.subr.bf16.mxu1 %v4231_v21 }
  0x2b   : > { %v1379_v50 = vsel %vm6695_vm2, %v1374_v37, %v4623_v8  ;;  %v999_v51 = vrot.slane %v997_v15, 4  ;;  %v1009_v52 = vrot.slane %v4633_v44, 7  ;;  %v4642_v55 = vrot.slane %v1304_v41, 1  ;;  %3999 = vmatprep.subr.bf16.mxu0 %v4231_v21  ;;  %4136 = vmatpush3.bf16.msra.mxu1 %v4231_v21 }
  0x2c   : > { %v4647_v56 = vsel %vm4600_vm6, %v4495_v10, %v1003_v42  ;;  %v1005_v57 = vrot.slane %v1003_v42, 4  ;;  %vm4651_vm14 = vcmp.lt.s32.totalorder %v217_v16, 15  ;;  %vm4655_vm15 = vcmp.lt.s32.totalorder %v231_v47, 15  ;;  %4000 = vmatpush3.bf16.msra.mxu0 %v4231_v21 }
  0x2d   : > { %6757 = vst [vmem:[#allocation7_spill] sm:$0xff] %v4647_v56  ;;  %1426 = vrot.lane.b32.xlu0 %v1371_v13, %s4394_s28  ;;  %v1001_v59 = vsel %vm4600_vm6, %v999_v51, %v4480_v5  ;;  %v4668_v9 = vsel %vm4600_vm6, %v4495_v10, %v1009_v52  ;;  %vm6658_vm0 = vcmp.ne.s16.totalorder %v4647_v56, 0  ;;  %v1307_v16 = vsel %vm6695_vm2, %v1302_v46, %v4642_v55  ;;  %vm881_vm3 = vmpackc.low %vm4651_vm14, %vm4651_vm14 }
  0x2e   : > { %6762 = vst [vmem:[#allocation8_spill] sm:$0xff] %v4668_v9  ;;  %1428 = vrot.lane.b32.xlu1 %v1379_v50, %s4394_s28  ;;  %v1007_v60 = vsel %vm4600_vm6, %v1005_v57, %v4480_v5  ;;  %vm4680_vm4 = vcmp.ne.s16.totalorder %v1001_v59, 0  ;;  %v6763_v61 = vmov 0  ;;  %vm6657_vm5 = vcmp.ne.s16.totalorder %v4668_v9, 0  ;;  %vm883_vm8 = vmpackc.low %vm4655_vm15, %vm4655_vm15 }
  0x2f   : > { %v6764_v61 = vsel %vm4680_vm4, 4294967295, %v6763_v61  ;;  %v1734_v62 = vsel %vm6658_vm0, %v4522_v20, 0  ;;  %vm4695_vm9 = vcmp.ne.s16.totalorder %v1007_v60, 0  ;;  %v6766_v24 = vmov 0 }
  0x30   : > { %6765 = vst [vmem:[#allocation9_spill] sm:$0xff] %v6764_v61  ;;  %v6767_v24 = vsel %vm4695_vm9, 4294967295, %v6766_v24  ;;  %v1733_v29 = vsel %vm4680_vm4, %v4519_v19, 0  ;;  %v1736_v20 = vsel %vm6657_vm5, %v4548_v32, 0  ;;  %v913_v30 = vsel %vm881_vm3, 65537, %v6668_v3 }
  0x31   : > { %6768 = vst [vmem:[#allocation10_spill] sm:$0xff] %v6767_v24  ;;  %v1735_v31 = vsel %vm4695_vm9, %v4543_v28, 0  ;;  %v4709_v35 = vcombine.low %v1733_v29, %v1734_v62  ;;  %v915_v36 = vsel %vm883_vm8, 65537, %v6668_v3  ;;  %v949_v13 = vrot.slane %v913_v30, 7  ;;  %v4233_v28 = vld [vmem:[%s6655_s1 + $0x48] sm:$0xff]  }
  0x32   : > { %v4712_v37 = vcombine.low %v1735_v31, %v1736_v20  ;;  %v955_v19 = vrot.slane %v915_v36, 7  ;;  %v1715_v40 = vsel %vm6678_vm7, %v1682_v4, 0  ;;  %v315_v32 = vand.u32 15, %v4501_v12  ;;  %1410 = vrot.lane.b32.xlu1 %v1307_v16, %s4394_s28  ;;  %4131 = vmatprep.subr.bf16.mxu1 %v4233_v28  ;;  %v4781_v4 = vld [vmem:[%s4506_s27 + $0x2c] sm:$0xf]  ;;  %v4235_v31 = vld [vmem:[%s6655_s1 + $0x40] sm:$0xff]  }
  0x33   : > { %v1953_v7 = vrot.slane %v4709_v35, 1  ;;  %v4725_v14 = vsel %vm4600_vm6, %v4495_v10, %v949_v13  ;;  %v951_v41 = vrot.slane %v949_v13, 4  ;;  %v4730_v42 = vsel %vm4600_vm6, %v4495_v10, %v997_v15  ;;  %4001 = vmatprep.subr.bf16.mxu0 %v4233_v28  ;;  %4137 = vmatpush3.bf16.msra.mxu1 %v4233_v28 }
  0x34   : > { %6769 = vst [vmem:[#allocation11_spill] sm:$0xff] %v4730_v42  ;;  %v1955_v12 = vrot.slane %v4712_v37, 1  ;;  %v4736_v46 = vsel %vm4600_vm6, %v4495_v10, %v955_v19  ;;  %vm6664_vm10 = vcmp.ne.s16.totalorder %v4725_v14, 0  ;;  %vm4739_vm11 = vcmp.lt.s32.totalorder %v315_v32, 15  ;;  %4002 = vmatpush3.bf16.msra.mxu0 %v4233_v28  ;;  %4132 = vmatprep.subr.bf16.mxu1 %v4235_v31 }
  0x35   : > { %v953_v15 = vsel %vm4600_vm6, %v951_v41, %v4480_v5  ;;  %vm6662_vm12 = vcmp.ne.s16.totalorder %v4736_v46, 0  ;;  %v1716_v49 = vsel %vm6664_vm10, %v4530_v23, 0  ;;  %vm895_vm14 = vmpackc.low %vm4739_vm11, %vm4739_vm11  ;;  %vm6659_vm15 = vcmp.ne.s16.totalorder %v4730_v42, 0  ;;  %4003 = vmatprep.subr.bf16.mxu0 %v4235_v31 }
  0x36   : > { %v1956_v50 = vsel %vm6689_vm13, %v1953_v7, %v1955_v12  ;;  %vm4759_vm3 = vcmp.ne.s16.totalorder %v953_v15, 0  ;;  %v1718_v57 = vsel %vm6662_vm12, %v4538_v26, 0  ;;  %v3768_v11 = vcombine.low %v1715_v40, %v1716_v49  ;;  %v4236_v15 = vld [vmem:[%s6655_s1 + $0x38] sm:$0xff]  }
  0x37   : > { %1987 = vrot.lane.b32.xlu0 %v1956_v50, %s4395_s7  ;;  %v1717_v59 = vsel %vm4759_vm3, %v4535_v25, 0  ;;  %v4774_v16 = vsel %vm895_vm14, 65537, %v6668_v3  ;;  %v1732_v60 = vsel %vm6659_vm15, %v4516_v18, 0  ;;  %v197_v62 = vadd.s32 184, %v4475_v2  ;;  %4138 = vmatpush3.bf16.msra.mxu1 %v4235_v31 }
  0x38   : > { %v4783_v21 = vcombine.low %v1717_v59, %v1718_v57  ;;  %v1936_v29 = vrot.slane %v3768_v11, 1  ;;  %v6666_v20 = vrot.slane %v4774_v16, 7  ;;  %v1011_v30 = vrot.slane %v1009_v52, 4  ;;  %4004 = vmatpush3.bf16.msra.mxu0 %v4235_v31  ;;  %4133 = vmatprep.subr.bf16.mxu1 %v4236_v15 }
  0x39   : > { %v371_v36 = vand.u32 15, %v197_v62  ;;  %v179_v18 = vadd.s32 40, %v4475_v2  ;;  %v957_v13 = vrot.slane %v955_v19, 4  ;;  %v199_v40 = vadd.s32 200, %v4475_v2  ;;  %4005 = vmatprep.subr.bf16.mxu0 %v4236_v15 }
  0x3a   : > { %v1937_v32 = vrot.slane %v4783_v21, 1  ;;  %v993_v28 = vrot.slane %v6666_v20, 4  ;;  %v1013_v44 = vsel %vm4600_vm6, %v1011_v30, %v4480_v5  ;;  %v4801_v52 = vcombine.low %v4767_v58, %v4781_v4 }
  0x3b   : > { %vm645_vm8 = vcmp.lt.s32.totalorder %v371_v36, 15  ;;  %vm4803_vm11 = vcmp.ne.s16.totalorder %v1013_v44, 0  ;;  %v6774_v19 = vmov 0  ;;  %v245_v41 = vand.u32 15, %v179_v18  ;;  %4139 = vmatpush3.bf16.msra.mxu1 %v4236_v15 }
  0x3c   : > { %v6775_v19 = vsel %vm4803_vm11, 4294967295, %v6774_v19  ;;  %v959_v47 = vsel %vm4600_vm6, %v957_v13, %v4480_v5  ;;  %v1938_v49 = vsel %vm6689_vm13, %v1936_v29, %v1937_v32  ;;  %v995_v50 = vsel %vm4600_vm6, %v993_v28, %v4480_v5  ;;  %vm903_vm14 = vmpackc.low %vm645_vm8, %vm645_vm8  ;;  %4006 = vmatpush3.bf16.msra.mxu0 %v4236_v15 }
  0x3d   : > { %6776 = vst [vmem:[#allocation12_spill] sm:$0xff] %v6775_v19  ;;  %v1737_v57 = vsel %vm4803_vm11, %v4563_v43, 0  ;;  %vm4822_vm5 = vcmp.ne.s16.totalorder %v959_v47, 0  ;;  %1969 = vrot.lane.b32.xlu0 %v1938_v49, %s4395_s7  ;;  %vm4827_vm0 = vcmp.ne.s16.totalorder %v995_v50, 0  ;;  %v935_v62 = vsel %vm903_vm14, 65537, %v6668_v3 }
  0x3e   : > { %vm627_vm15 = vcmp.lt.s32.totalorder %v245_v41, 15  ;;  %v1719_v29 = vsel %vm4822_vm5, %v4551_v33, 0  ;;  %v1731_v43 = vsel %vm4827_vm0, %v4513_v17, 0  ;;  %v1015_v30 = vrot.slane %v935_v62, 7  ;;  %v4238_v17 = vld [vmem:[%s6655_s1 + $0x30] sm:$0xff]  }
  0x3f   : > { %vm885_vm8 = vmpackc.low %vm627_vm15, %vm627_vm15  ;;  %v385_v31 = vand.u32 15, %v199_v40  ;;  %v1308_v36 = vshrl.u32 %v4616_v6, 16  ;;  %v4839_v18 = vcombine.low %v1731_v43, %v1732_v60  ;;  %v1312_v28 = vshll.u32 %v4801_v52, 16  ;;  %4134 = vmatprep.subr.bf16.mxu1 %v4238_v17  ;;  %4007 = vmatprep.subr.bf16.mxu0 %v4238_v17 }
  0x40   : > { %v917_v13 = vsel %vm885_vm8, 65537, %v6668_v3  ;;  %v181_v44 = vadd.s32 56, %v4475_v2  ;;  %v4850_v33 = vsel %vm4600_vm6, %v4495_v10, %v1015_v30  ;;  %v1017_v60 = vrot.slane %v1015_v30, 4  ;;  %v4879_v30 = vld [vmem:[%s4506_s27 + $0x70] sm:$0xf]  ;;  %4140 = vmatpush3.bf16.msra.mxu1 %v4238_v17  ;;  %4008 = vmatpush3.bf16.msra.mxu0 %v4238_v17 }
  0x41   : > { %6781 = vst [vmem:[#allocation13_spill] sm:$0xff] %v4850_v33  ;;  %v961_v6 = vrot.slane %v917_v13, 7  ;;  %vm647_vm15 = vcmp.lt.s32.totalorder %v385_v31, 15  ;;  %v6665_v40 = vrot.slane %v4839_v18, 1  ;;  %vm6660_vm14 = vcmp.ne.s16.totalorder %v4850_v33, 0 }
  0x42   : > { %vm905_vm8 = vmpackc.low %vm647_vm15, %vm647_vm15  ;;  %v1310_v41 = vor.u32 %v1308_v36, %v4642_v55  ;;  %v4855_v47 = vrot.slane %v1312_v28, 1  ;;  %v1738_v15 = vsel %vm6660_vm14, %v4568_v48, 0  ;;  %v1019_v55 = vsel %vm4600_vm6, %v1017_v60, %v4480_v5  ;;  %v4882_v31 = vld [vmem:[%s4506_s27 + $0x74] sm:$0xf] }
  0x43   : > { %v4863_v49 = vsel %vm4600_vm6, %v4495_v10, %v961_v6  ;;  %v4866_v50 = vsel %vm905_vm8, 65537, %v6668_v3  ;;  %v1954_v62 = vsel %vm6689_vm13, %v6665_v40, %v1953_v7  ;;  %v3779_v43 = vcombine.low %v1737_v57, %v1738_v15  ;;  %v4966_v40 = vld [vmem:[%s4506_s27 + $0x30] sm:$0xf] }
  0x44   : > { %vm6661_vm15 = vcmp.ne.s16.totalorder %v4863_v49, 0  ;;  %v1021_v48 = vrot.slane %v4866_v50, 7  ;;  %1985 = vrot.lane.b32.xlu1 %v1954_v62, %s4395_s7  ;;  %vm4888_vm8 = vcmp.ne.s16.totalorder %v1019_v55, 0  ;;  %v6782_v36 = vmov 0  ;;  %v4918_v62 = vld [vmem:[%s4506_s27 + $0x78] sm:$0xf] }
  0x45   : > { %v1720_v35 = vsel %vm6661_vm15, %v4556_v38, 0  ;;  %v6783_v36 = vsel %vm4888_vm8, 4294967295, %v6782_v36  ;;  %v1315_v7 = vsel %vm6695_vm2, %v1310_v41, %v4855_v47  ;;  %v259_v57 = vand.u32 15, %v181_v44 }
  0x46   : > { %6784 = vst [vmem:[#allocation14_spill] sm:$0xff] %v6783_v36  ;;  %v1957_v13 = vrot.slane %v3779_v43, 1  ;;  %v4894_v28 = vcombine.low %v1719_v29, %v1720_v35  ;;  %v4901_v17 = vsel %vm4600_vm6, %v4495_v10, %v1021_v48  ;;  %v1739_v60 = vsel %vm4888_vm8, %v4574_v53, 0  ;;  %v4921_v43 = vld [vmem:[%s4506_s27 + $0x7c] sm:$0xf] }
  0x47   : > { %6785 = vst [vmem:[#allocation15_spill] sm:$0xff] %v4901_v17  ;;  %vm6663_vm14 = vcmp.ne.s16.totalorder %v4901_v17, 0  ;;  %vm629_vm15 = vcmp.lt.s32.totalorder %v259_v57, 15  ;;  %v963_v41 = vrot.slane %v961_v6, 4  ;;  %v183_v44 = vadd.s32 72, %v4475_v2 }
  0x48   : > { %v1958_v29 = vsel %vm6689_vm13, %v1955_v12, %v1957_v13  ;;  %v1939_v15 = vrot.slane %v4894_v28, 1  ;;  %v1740_v55 = vsel %vm6663_vm14, %v4577_v54, 0  ;;  %vm887_vm12 = vmpackc.low %vm629_vm15, %vm629_vm15  ;;  %v3730_v53 = vcombine.low %v4879_v30, %v4882_v31  ;;  %v5002_v36 = vld [vmem:[%s4506_s27 + $0x3c] sm:$0xf] }
  0x49   : > { %1989 = vrot.lane.b32.xlu0 %v1958_v29, %s4395_s7  ;;  %v4924_v6 = vcombine.low %v1739_v60, %v1740_v55  ;;  %v919_v37 = vsel %vm887_vm12, 65537, %v6668_v3  ;;  %v965_v12 = vsel %vm4600_vm6, %v963_v41, %v4480_v5  ;;  %v273_v35 = vand.u32 15, %v183_v44 }
  0x4a   : > { %v1940_v54 = vsel %vm6689_vm13, %v1937_v32, %v1939_v15  ;;  %v967_v57 = vrot.slane %v919_v37, 7  ;;  %vm4933_vm15 = vcmp.ne.s16.totalorder %v965_v12, 0  ;;  %v1380_v29 = vshrl.u32 %v4592_v27, 16 }
  0x4b   : > { %1971 = vrot.lane.b32.xlu1 %v1940_v54, %s4395_s7  ;;  %v6667_v60 = vrot.slane %v4924_v6, 1  ;;  %v1721_v41 = vsel %vm4933_vm15, %v4582_v63, 0  ;;  %vm631_vm12 = vcmp.lt.s32.totalorder %v273_v35, 15  ;;  %v1384_v21 = vshll.u32 %v3730_v53, 16 }
  0x4c   : > { %v4946_v32 = vsel %vm4600_vm6, %v4495_v10, %v967_v57  ;;  %vm889_vm14 = vmpackc.low %vm631_vm12, %vm631_vm12  ;;  %v969_v44 = vrot.slane %v967_v57, 4  ;;  %v1382_v27 = vor.u32 %v1380_v29, %v4623_v8  ;;  %v4951_v55 = vcombine.low %v4918_v62, %v4921_v43 }
  0x4d   : > { %v1960_v37 = vsel %vm6689_vm13, %v1957_v13, %v6667_v60  ;;  %vm6677_vm10 = vcmp.ne.s16.totalorder %v4946_v32, 0  ;;  %v921_v12 = vsel %vm889_vm14, 65537, %v6668_v3  ;;  %v1386_v35 = vrot.slane %v1384_v21, 1  ;;  %v4976_v60 = vld [vmem:[%s4506_s27 + $0x34] sm:$0xf] }
  0x4e   : > { %1991 = vrot.lane.b32.xlu0 %v1960_v37, %s4395_s7  ;;  %v1722_v8 = vsel %vm6677_vm10, %v4585_v0, 0  ;;  %v971_v54 = vsel %vm4600_vm6, %v969_v44, %v4480_v5  ;;  %v973_v57 = vrot.slane %v921_v12, 7  ;;  %v1388_v29 = vshrl.u32 %v3730_v53, 16  ;;  %v4988_v12 = vld [vmem:[%s4506_s27 + $0x38] sm:$0xf] }
  0x4f   : > { %1412 = vrot.lane.b32.xlu1 %v1315_v7, %s4394_s28  ;;  %v3771_v13 = vcombine.low %v1721_v41, %v1722_v8  ;;  %vm4969_vm14 = vcmp.ne.s16.totalorder %v971_v54, 0  ;;  %v1387_v37 = vsel %vm6695_vm2, %v1382_v27, %v1386_v35  ;;  %v1392_v20 = vshll.u32 %v4951_v55, 16 }
  0x50   : > { %v4981_v53 = vsel %vm4600_vm6, %v4495_v10, %v973_v57  ;;  %v1723_v7 = vsel %vm4969_vm14, %v4767_v58, 0  ;;  %v1390_v41 = vor.u32 %v1388_v29, %v1386_v35  ;;  %v201_v44 = vadd.s32 216, %v4475_v2 }
  0x51   : > { %v1941_v27 = vrot.slane %v3771_v13, 1  ;;  %vm6676_vm12 = vcmp.ne.s16.totalorder %v4981_v53, 0  ;;  %v4991_v8 = vrot.slane %v1392_v20, 1  ;;  %v1023_v54 = vrot.slane %v1021_v48, 4 }
  0x52   : > { %v1724_v3 = vsel %vm6676_vm12, %v4781_v4, 0  ;;  %v399_v17 = vand.u32 15, %v201_v44  ;;  %v3722_v35 = vcombine.low %v4966_v40, %v4976_v60  ;;  %v1316_v29 = vshrl.u32 %v4801_v52, 16 }
  0x53   : > { %v1942_v13 = vsel %vm6689_vm13, %v1939_v15, %v1941_v27  ;;  %v5005_v33 = vcombine.low %v1723_v7, %v1724_v3  ;;  %v1395_v20 = vsel %vm6695_vm2, %v1390_v41, %v4991_v8  ;;  %v1025_v50 = vsel %vm4600_vm6, %v1023_v54, %v4480_v5 }
  0x54   : > { %1973 = vrot.lane.b32.xlu0 %v1942_v13, %s4395_s7  ;;  %vm649_vm12 = vcmp.lt.s32.totalorder %v399_v17, 15  ;;  %vm5013_vm10 = vcmp.ne.s16.totalorder %v1025_v50, 0  ;;  %v6790_v48 = vmov 0  ;;  %v1318_v52 = vor.u32 %v1316_v29, %v4855_v47 }
  0x55   : > { %v6791_v48 = vsel %vm5013_vm10, 4294967295, %v6790_v48  ;;  %v1320_v44 = vshll.u32 %v3722_v35, 16  ;;  %v6698_v3 = vrot.slane %v5005_v33, 1  ;;  %vm907_vm7 = vmpackc.low %vm649_vm12, %vm649_vm12  ;;  %v1741_v15 = vsel %vm5013_vm10, %v4879_v30, 0 }
  0x56   : > { %6792 = vst [vmem:[#allocation16_spill] sm:$0xff] %v6791_v48  ;;  %v203_v7 = vadd.s32 232, %v4475_v2  ;;  %v5025_v41 = vcombine.low %v4988_v12, %v5002_v36  ;;  %v6793_v17 = vmov 0   ;;  %v1324_v50 = vshrl.u32 %v3722_v35, 16 }
  0x57   : > { %v939_v54 = vsel %vm907_vm7, 65537, %v6793_v17  ;;  %v1322_v13 = vrot.slane %v1320_v44, 1  ;;  %v185_v47 = vadd.s32 88, %v4475_v2  ;;  %v1944_v29 = vsel %vm6689_vm13, %v1941_v27, %v6698_v3 }
  0x58   : > { %v1027_v19 = vrot.slane %v939_v54, 7  ;;  %v413_v9 = vand.u32 15, %v203_v7  ;;  %v1328_v30 = vshll.u32 %v5025_v41, 16  ;;  %1975 = vrot.lane.b32.xlu1 %v1944_v29, %s4395_s7  ;;  %1430 = vrot.lane.b32.xlu0 %v1387_v37, %s4394_s28  ;;  %v975_v44 = vrot.slane %v973_v57, 4 }
  0x59   : > { %v1323_v48 = vsel %vm6695_vm2, %v1318_v52, %v1322_v13  ;;  %v1326_v24 = vor.u32 %v1324_v50, %v1322_v13  ;;  %v287_v1 = vand.u32 15, %v185_v47  ;;  %v187_v57 = vadd.s32 104, %v4475_v2 }
  0x5a   : > { %v5039_v35 = vsel %vm4600_vm6, %v4495_v10, %v1027_v19  ;;  %vm651_vm7 = vcmp.lt.s32.totalorder %v413_v9, 15  ;;  %v1029_v27 = vrot.slane %v1027_v19, 4  ;;  %v5041_v54 = vrot.slane %v1328_v30, 1 }
  0x5b   : > { %6794 = vst [vmem:[#allocation17_spill] sm:$0xff] %v5039_v35  ;;  %vm6694_vm12 = vcmp.ne.s16.totalorder %v5039_v35, 0  ;;  %vm909_vm13 = vmpackc.low %vm651_vm7, %vm651_vm7  ;;  %vm633_vm10 = vcmp.lt.s32.totalorder %v287_v1, 15  ;;  %v977_v37 = vsel %vm4600_vm6, %v975_v44, %v4480_v5  ;;  %v6795_v50 = vmov 0  ;;  %v5071_v44 = vld [vmem:[%s4506_s27 + $0x80] sm:$0xf] }
  0x5c   : > { %v1742_v52 = vsel %vm6694_vm12, %v4882_v31, 0  ;;  %v941_v9 = vsel %vm909_vm13, 65537, %v6793_v17  ;;  %v1031_v19 = vsel %vm4600_vm6, %v1029_v27, %v4480_v5  ;;  %v1331_v1 = vsel %vm6695_vm2, %v1326_v24, %v5041_v54  ;;  %vm891_vm7 = vmpackc.low %vm633_vm10, %vm633_vm10  ;;  %1432 = vrot.lane.b32.xlu1 %v1395_v20, %s4394_s28  ;;  %v5074_v20 = vld [vmem:[%s4506_s27 + $0x84] sm:$0xf] }
  0x5d   : > { %v3781_v7 = vcombine.low %v1741_v15, %v1742_v52  ;;  %v1033_v13 = vrot.slane %v941_v9, 7  ;;  %vm5058_vm8 = vcmp.ne.s16.totalorder %v1031_v19, 0  ;;  %v923_v31 = vsel %vm891_vm7, 65537, %v6793_v17  ;;  %v5086_v52 = vld [vmem:[%s4506_s27 + $0x88] sm:$0x1] }
  0x5e   : > { %v6796_v50 = vsel %vm5058_vm8, 4294967295, %v6795_v50  ;;  %v1743_v47 = vsel %vm5058_vm8, %v4918_v62, 0  ;;  %v979_v29 = vrot.slane %v923_v31, 7  ;;  %vm5066_vm13 = vcmp.ne.s16.totalorder %v977_v37, 0 }
  0x5f   : > { %6797 = vst [vmem:[#allocation18_spill] sm:$0xff] %v6796_v50  ;;  %v301_v24 = vand.u32 15, %v187_v57  ;;  %v1961_v15 = vrot.slane %v3781_v7, 1  ;;  %v5079_v27 = vsel %vm4600_vm6, %v4495_v10, %v1033_v13  ;;  %v1725_v62 = vsel %vm5066_vm13, %v4966_v40, 0  ;;  %v5091_v57 = vld [vmem:[%s6655_s1 + $0x28] sm:$0xff]  }
  0x60   : > { %6800 = vst [vmem:[#allocation19_spill] sm:$0xff] %v5079_v27  ;;  %v1396_v37 = vshrl.u32 %v4951_v55, 16  ;;  %6801 = vst [vmem:[#allocation20_spill] sm:$0xff] %v5091_v57  ;;  %vm6708_vm10 = vcmp.ne.s16.totalorder %v5079_v27, 0  ;;  %v5097_v9 = vsel %vm4600_vm6, %v4495_v10, %v979_v29  ;;  %v981_v19 = vrot.slane %v979_v29, 4  ;;  %1414 = vrot.lane.b32.xlu1 %v1323_v48, %s4394_s28  ;;  %4041 = vmatprep.subr.bf16.mxu1 %v5091_v57 }
  0x61   : > { %vm635_vm7 = vcmp.lt.s32.totalorder %v301_v24, 15  ;;  %v6802_v7 = vrot.slane %v4924_v6, 1  ;;  %vm6803_vm12 = vcmask 1046528   ;;  %v1744_v31 = vsel %vm6708_vm10, %v4921_v43, 0  ;;  %v5144_v27 = vld [vmem:[%s4506_s27 + $0x44] sm:$0xf] }
  0x62   : > { %vm6714_vm2 = vcmp.ne.s16.totalorder %v5097_v9, 0  ;;  %vm893_vm8 = vmpackc.low %vm635_vm7, %vm635_vm7  ;;  %v5108_v3 = vor.u32 %v1396_v37, %v4991_v8  ;;  %v5112_v6 = vcombine.low %v1743_v47, %v1744_v31  ;;  %v983_v43 = vsel %vm4600_vm6, %v981_v19, %v4480_v5 }
  0x63   : > { %v1962_v55 = vsel %vm6803_vm12, %v6802_v7, %v1961_v15  ;;  %v1726_v48 = vsel %vm6714_vm2, %v4976_v60, 0  ;;  %v925_v29 = vsel %vm893_vm8, 65537, %v6793_v17  ;;  %vm5121_vm12 = vcmp.ne.s16.totalorder %v983_v43, 0 }
  0x64   : > { %6804 = vst [vmem:[#allocation21_spill] sm:$0xff] %v5108_v3  ;;  %1993 = vrot.lane.b32.xlu0 %v1962_v55, %s4395_s7  ;;  %v3773_v24 = vcombine.low %v1725_v62, %v1726_v48  ;;  %v985_v8 = vrot.slane %v925_v29, 7  ;;  %v3766_v47 = vcombine.low %v5071_v44, %v5074_v20  ;;  %v1727_v55 = vsel %vm5121_vm12, %v4988_v12, 0  ;;  %v5135_v62 = vld [vmem:[%s4506_s27 + $0x40] sm:$0xf]  ;;  %1416 = vrot.lane.b32.xlu1 %v1331_v1, %s4394_s28 }
  0x65   : > { %v3767_v31 = vcombine.low %v5086_v52, %v5086_v52  ;;  %v205_v19 = vadd.s32 248, %v4475_v2  ;;  %v6807_v50 = vrot.slane %v5112_v6, 1  ;;  %vm6808_vm8 = vcmask 1046528  }
  0x66   : > { %v1945_v48 = vrot.slane %v3773_v24, 1  ;;  %v5141_v29 = vsel %vm4600_vm6, %v4495_v10, %v985_v8  ;;  %v1837_v43 = vshll.u32 %v3766_v47, 16  ;;  %v1841_v7 = vshrl.u32 %v3766_v47, 16  ;;  %vm6810_vm10 = vmmov %vm6808_vm8 }
  0x67   : > { %v1964_v57 = vsel %vm6808_vm8, %v1961_v15, %v6807_v50  ;;  %vm6713_vm7 = vcmp.ne.s16.totalorder %v5141_v29, 0  ;;  %v1845_v35 = vshll.u32 %v3767_v31, 16  ;;  %v427_v2 = vand.u32 15, %v205_v19  ;;  %v5160_v50 = vld [vmem:[%s6655_s1 + $0x88] sm:$0xff]  }
  0x68   : > { %1995 = vrot.lane.b32.xlu0 %v1964_v57, %s4395_s7  ;;  %v6809_v1 = vrot.slane %v5005_v33, 1  ;;  %v1728_v47 = vsel %vm6713_vm7, %v5002_v36, 0  ;;  %v1839_v56 = vrot.slane %v1837_v43, 1  ;;  %v1035_v61 = vrot.slane %v1033_v13, 4  ;;  %6811 = vst [vmem:[#allocation22_spill] sm:$0xff] %v5160_v50  ;;  %4085 = vmatprep.subr.bf16.mxu0 %v5160_v50 }
  0x69   : > { %v5162_v15 = vcombine.low %v1727_v55, %v1728_v47  ;;  %v1847_v31 = vrot.slane %v1845_v35, 1  ;;  %vm653_vm8 = vcmp.lt.s32.totalorder %v427_v2, 15  ;;  %v3724_v33 = vcombine.low %v5135_v62, %v5144_v27  ;;  %v687_v47 = vld [vmem:[%s4506_s27] sm:$0xe] }
  0x6a   : > { %v1946_v24 = vsel %vm6810_vm10, %v6809_v1, %v1945_v48  ;;  %v1843_v57 = vor.u32 %v1841_v7, %v1839_v56  ;;  %vm911_vm10 = vmpackc.low %vm653_vm8, %vm653_vm8  ;;  %v1037_v19 = vsel %vm4600_vm6, %v1035_v61, %v4480_v5  ;;  %v1332_v13 = vshrl.u32 %v5025_v41, 16 }
  0x6b   : > { %v6721_v43 = vrot.slane %v5162_v15, 1  ;;  %v943_v55 = vsel %vm911_vm10, 65537, %v6793_v17  ;;  %vm5173_vm7 = vcmp.ne.s16.totalorder %v1037_v19, 0  ;;  %v6812_v2 = vmov 0 }
  0x6c   : > { %v6813_v2 = vsel %vm5173_vm7, 4294967295, %v6812_v2  ;;  %v1336_v35 = vshll.u32 %v3724_v33, 16  ;;  %1977 = vrot.lane.b32.xlu0 %v1946_v24, %s4395_s7  ;;  %vm6814_vm8 = vsmask.f32 7424  ;;  %v1039_v41 = vrot.slane %v943_v55, 7 }
  0x6d   : > { %v1840_v7 = vsel %vm6814_vm8, %v5108_v3, %v1839_v56  ;;  %vm6815_vm2 = vmmov %vm6814_vm8  ;;  %v1334_v1 = vor.u32 %v1332_v13, %v5041_v54  ;;  %vm6816_vm10 = vcmask 1046528   ;;  %v1340_v50 = vshrl.u32 %v3724_v33, 16 }
  0x6e   : > { %v1848_v61 = vsel %vm6815_vm2, %v1843_v57, %v1847_v31  ;;  %v1948_v17 = vsel %vm6816_vm10, %v1945_v48, %v6721_v43  ;;  %v1338_v19 = vrot.slane %v1336_v35, 1  ;;  %v987_v42 = vrot.slane %v985_v8, 4 }
  0x6f   : > { %1979 = vrot.lane.b32.xlu1 %v1948_v17, %s4395_s7  ;;  %v5190_v56 = vsel %vm4600_vm6, %v4495_v10, %v1039_v41  ;;  %v1745_v54 = vsel %vm5173_vm7, %v5071_v44, 0  ;;  %v5195_v24 = vrot.slane %v1039_v41, 4  ;;  %v6819_v31 = vrot.slane %v4774_v16, 7  ;;  %v655_v44 = vld [vmem:[%s4506_s27 + $0x4] sm:$0xf] }
  0x70   : > { %6817 = vst [vmem:[#allocation23_spill] sm:$0xff] %v5190_v56  ;;  %vm6727_vm2 = vcmp.ne.s16.totalorder %v5190_v56, 0  ;;  %v1339_v48 = vsel %vm6814_vm8, %v1334_v1, %v1338_v19  ;;  %v989_v33 = vsel %vm4600_vm6, %v987_v42, %v4480_v5  ;;  %vm6820_vm10 = vcmp.ne.s16.totalorder %v4480_v5, 0  ;;  %v654_v16 = vld [vmem:[%s4506_s27] sm:$0xf]  ;;  %1849 = vrot.lane.b32.xlu0 %v1840_v7, %s4394_s28 }
  0x71   : > { %6818 = vst [vmem:[#allocation24_spill] sm:$0xff] %v5195_v24  ;;  %v5202_v8 = vsel %vm4600_vm6, %v4495_v10, %v6819_v31  ;;  %v1075_v57 = vsel %vm6820_vm10, %v687_v47, 0  ;;  %v1746_v10 = vsel %vm6727_vm2, %v5074_v20, 0  ;;  %vm6720_vm7 = vcmp.ne.s16.totalorder %v5195_v24, 0  ;;  %v2540_v7 = vld [vmem:[%s4506_s27 + $0x14] sm:$0xf] }
  0x72   : > { %vm5218_vm8 = vcmp.ne.s16.totalorder %v989_v33, 0  ;;  %vm6728_vm6 = vcmp.ne.s16.totalorder %v5202_v8, 0  ;;  %v3783_v42 = vcombine.low %v1745_v54, %v1746_v10  ;;  %v1747_v55 = vsel %vm6720_vm7, %v5086_v52, 0  ;;  %v2541_v41 = vld [vmem:[%s4506_s27 + $0x18] sm:$0xf] }
  0x73   : > { %v1342_v35 = vor.u32 %v1340_v50, %v1338_v19  ;;  %v1729_v20 = vsel %vm5218_vm8, %v5135_v62, 0  ;;  %1851 = vrot.lane.b32.xlu1 %v1848_v61, %s4394_s28  ;;  %v3784_v1 = vcombine.low %v1747_v55, %v1747_v55  ;;  %v1730_v47 = vsel %vm6728_vm6, %v5144_v27, 0  ;;  %v2542_v50 = vld [vmem:[%s4506_s27 + $0x1c] sm:$0xf] }
  0x74   : > { %vm6823_vm10 = vcmp.ne.s16.totalorder %v4725_v14, 0  ;;  %v1077_v52 = vsel %vm4759_vm3, %v4527_v22, 0  ;;  %v1965_v19 = vrot.slane %v3783_v42, 1  ;;  %v3775_v54 = vcombine.low %v1729_v20, %v1730_v47 }
  0x75   : > { %v1076_v17 = vsel %vm6823_vm10, %v655_v44, 0  ;;  %vm6824_vm7 = vcmp.ne.s16.totalorder %v4736_v46, 0  ;;  %v1967_v33 = vrot.slane %v3784_v1, 1  ;;  %v3716_v55 = vcombine.low %v654_v16, %v655_v44  ;;  %v2572_v44 = vld [vmem:[%s4506_s27 + $0x10] sm:$0xe] }
  0x76   : > { %v1078_v61 = vsel %vm6824_vm7, %v4530_v23, 0  ;;  %v3733_v31 = vcombine.low %v1075_v57, %v1076_v17  ;;  %v3857_v43 = vcombine.low %v2539_v34, %v2540_v7  ;;  %v6825_v3 = vrot.slane %v5112_v6, 1 }
  0x77   : > { %v3734_v10 = vcombine.low %v1077_v52, %v1078_v61  ;;  %vm6826_vm10 = vcmask 1046528   ;;  %v3858_v22 = vcombine.low %v2541_v41, %v2542_v50  ;;  %1418 = vrot.lane.b32.xlu1 %v1339_v48, %s4394_s28  ;;  %vm6827_vm2 = vsmask.f32 7424  ;;  %v2544_v52 = vld [vmem:[%s4506_s27 + $0x24] sm:$0xf] }
  0x78   : > { %v1966_v24 = vsel %vm6826_vm10, %v6825_v3, %v1965_v19  ;;  %v1520_v56 = vrot.slane %v3733_v31, 1  ;;  %v1347_v23 = vsel %vm6827_vm2, %v1342_v35, %v4558_v39  ;;  %v1949_v57 = vrot.slane %v3775_v54, 1  ;;  %vm6828_vm7 = vmmov %vm6826_vm10  ;;  %v2543_v3 = vld [vmem:[%s4506_s27 + $0x20] sm:$0xf] }
  0x79   : > { %1997 = vrot.lane.b32.xlu0 %v1966_v24, %s4395_s7  ;;  %v1521_v42 = vrot.slane %v3734_v10, 1  ;;  %v1275_v20 = vshll.u32 %v3716_v55, 16  ;;  %v1968_v16 = vsel %vm6828_vm7, %v1965_v19, %v1967_v33  ;;  %v1273_v34 = vshrl.u32 %v3716_v55, 16  ;;  %vm6829_vm10 = vmmov %vm6828_vm7 }
  0x7a   : > { %v2802_v6 = vshrl.u32 %v3857_v43, 16  ;;  %v2804_v1 = vshll.u32 %v3857_v43, 16  ;;  %v2809_v24 = vshll.u32 %v3858_v22, 16  ;;  %v1079_v48 = vsel %vm4822_vm5, %v4535_v25, 0  ;;  %vm6835_vm11 = vmmov %vm6829_vm10 }
  0x7b   : > { %v1522_v47 = vsel %vm6829_vm10, %v1520_v56, %v1521_v42  ;;  %v1277_v17 = vrot.slane %v1275_v20, 1  ;;  %vm6830_vm2 = vcmp.ne.s16.totalorder %v4863_v49, 0  ;;  %vm6831_vm7 = vcmp.ne.s16.totalorder %v4480_v5, 0  ;;  %1420 = vrot.lane.b32.xlu1 %v1347_v23, %s4394_s28  ;;  %v2545_v20 = vld [vmem:[%s4506_s27 + $0x28] sm:$0xf] }
  0x7c   : > { %v2806_v39 = vrot.slane %v2804_v1, 1  ;;  %v1080_v35 = vsel %vm6830_vm2, %v4538_v26, 0  ;;  %v2605_v19 = vsel %vm6831_vm7, %v2572_v44, 0  ;;  %vm6832_vm6 = vcmp.ne.s16.totalorder %v4725_v14, 0  ;;  %vm6839_vm7 = vmmov %vm6829_vm10 }
  0x7d   : > { %v2606_v43 = vsel %vm6832_vm6, %v2540_v7, 0  ;;  %1999 = vrot.lane.b32.xlu0 %v1968_v16, %s4395_s7  ;;  %v6833_v56 = vrot.slane %v5162_v15, 1  ;;  %v6834_v54 = vrot.slane %v4839_v18, 1  ;;  %v5275_v26 = vcombine.low %v1079_v48, %v1080_v35  ;;  %v2546_v16 = vld [vmem:[%s4506_s27 + $0x2c] sm:$0xf] }
  0x7e   : > { %v2607_v5 = vsel %vm4759_vm3, %v2541_v41, 0  ;;  %v1278_v14 = vor.u32 %v1277_v17, %v1273_v34  ;;  %vm6836_vm6 = vcmp.ne.s16.totalorder %v4736_v46, 0  ;;  %v3874_v31 = vcombine.low %v2605_v19, %v2606_v43  ;;  %v5286_v41 = vld [vmem:[%s4506_s27 + $0x18] sm:$0xf]  ;;  %v2548_v48 = vld [vmem:[%s4506_s27 + $0x34] sm:$0xf] }
  0x7f   : > { %v1950_v25 = vsel %vm6829_vm10, %v6833_v56, %v1949_v57  ;;  %v1952_v61 = vsel %vm6835_vm11, %v1949_v57, %v6834_v54  ;;  %v2608_v7 = vsel %vm6836_vm6, %v2542_v50, 0  ;;  %v3859_v33 = vcombine.low %v2543_v3, %v2544_v52  ;;  %vm6841_vm6 = vmmov %vm6839_vm7  ;;  %v2549_v54 = vld [vmem:[%s4506_s27 + $0x38] sm:$0xf] }
  0x80   : > { %v2811_v15 = vrot.slane %v2809_v24, 1  ;;  %v3875_v10 = vcombine.low %v2607_v5, %v2608_v7  ;;  %v2807_v55 = vor.u32 %v2806_v39, %v2802_v6  ;;  %v1523_v18 = vrot.slane %v5275_v26, 1  ;;  %1983 = vrot.lane.b32.xlu1 %v1952_v61, %s4395_s7  ;;  %v2547_v24 = vld [vmem:[%s4506_s27 + $0x30] sm:$0xf] }
  0x81   : > { %v3048_v23 = vrot.slane %v3874_v31, 1  ;;  %v2813_v57 = vshrl.u32 %v3858_v22, 16  ;;  %1981 = vrot.lane.b32.xlu0 %v1950_v25, %s4395_s7  ;;  %v2817_v46 = vshll.u32 %v3859_v33, 16  ;;  %v1081_v50 = vsel %vm4933_vm15, %v5286_v41, 0 }
  0x82   : > { %v3049_v51 = vrot.slane %v3875_v10, 1  ;;  %vm6837_vm3 = vcmp.ne.s16.totalorder %v4946_v32, 0  ;;  %vm6838_vm11 = vsmask.f32 7424  ;;  %v2609_v34 = vsel %vm4822_vm5, %v2543_v3, 0 }
  0x83   : > { %v1082_v44 = vsel %vm6837_vm3, %v4556_v38, 0  ;;  %v1283_v22 = vsel %vm6838_vm11, %v1278_v14, %v4565_v45  ;;  %v2610_v6 = vsel %vm6830_vm2, %v2544_v52, 0  ;;  %vm6840_vm10 = vmmov %vm6838_vm11  ;;  %v1524_v38 = vsel %vm6841_vm6, %v1521_v42, %v1523_v18 }
  0x84   : > { %v3050_v1 = vsel %vm6839_vm7, %v3048_v23, %v3049_v51  ;;  %v3876_v17 = vcombine.low %v2609_v34, %v2610_v6  ;;  %v2812_v39 = vsel %vm6840_vm10, %v2807_v55, %v2811_v15  ;;  %v5306_v35 = vcombine.low %v1081_v50, %v1082_v44  ;;  %1553 = vrot.lane.b32.xlu1 %v1522_v47, %s4395_s7  ;;  %vm6843_vm11 = vmmov %vm6841_vm6 }
  0x85   : > { %v3860_v19 = vcombine.low %v2545_v20, %v2546_v16  ;;  %1404 = vrot.lane.b32.xlu0 %v1283_v22, %s4394_s28  ;;  %v2815_v45 = vor.u32 %v2813_v57, %v2811_v15  ;;  %v2819_v11 = vrot.slane %v2817_v46, 1  ;;  %v1083_v3 = vsel %vm4969_vm14, %v4582_v63, 0  ;;  %v2550_v63 = vld [vmem:[%s4506_s27 + $0x3c] sm:$0xf]  ;;  %vm6846_vm7 = vmmov %vm6841_vm6 }
  0x86   : > { %v3051_v49 = vrot.slane %v3876_v17, 1  ;;  %vm6842_vm5 = vcmp.ne.s16.totalorder %v4981_v53, 0  ;;  %v2611_v42 = vsel %vm4933_vm15, %v2545_v20, 0  ;;  %v2612_v47 = vsel %vm6837_vm3, %v2546_v16, 0  ;;  %vm6844_vm15 = vmmov %vm6840_vm10  ;;  %v2551_v20 = vld [vmem:[%s4506_s27 + $0x40] sm:$0xf] }
  0x87   : > { %v1084_v52 = vsel %vm6842_vm5, %v4585_v0, 0  ;;  %v3861_v43 = vcombine.low %v2547_v24, %v2548_v48  ;;  %v3877_v25 = vcombine.low %v2611_v42, %v2612_v47  ;;  %v1525_v61 = vrot.slane %v5306_v35, 1  ;;  %vm6845_vm2 = vmmov %vm6842_vm5 }
  0x88   : > { %v3052_v56 = vsel %vm6843_vm11, %v3049_v51, %v3051_v49  ;;  %v2821_v26 = vshrl.u32 %v3859_v33, 16  ;;  %v2825_v5 = vshll.u32 %v3860_v19, 16  ;;  %2933 = vrot.lane.b32.xlu1 %v2812_v39, %s4394_s28  ;;  %v2820_v0 = vsel %vm6844_vm15, %v2815_v45, %v2819_v11  ;;  %v2552_v51 = vld [vmem:[%s4506_s27 + $0x44] sm:$0xf]  ;;  %vm6850_vm3 = vmmov %vm6841_vm6 }
  0x89   : > { %1555 = vrot.lane.b32.xlu0 %v1524_v38, %s4395_s7  ;;  %v5327_v28 = vcombine.low %v1083_v3, %v1084_v52  ;;  %v3053_v32 = vrot.slane %v3877_v25, 1  ;;  %v2829_v14 = vshrl.u32 %v3860_v19, 16  ;;  %v2833_v7 = vshll.u32 %v3861_v43, 16  ;;  %vm6852_vm11 = vmmov %vm6844_vm15 }
  0x8a   : > { %v1085_v31 = vsel %vm5066_vm13, %v4767_v58, 0  ;;  %v2613_v33 = vsel %vm4969_vm14, %v2547_v24, 0  ;;  %v2614_v15 = vsel %vm6845_vm2, %v2548_v48, 0  ;;  %vm6847_vm10 = vcmp.ne.s16.totalorder %v5097_v9, 0  ;;  %v2553_v48 = vld [vmem:[%s4506_s27 + $0x48] sm:$0xf]  ;;  %vm6853_vm15 = vmmov %vm6850_vm3 }
  0x8b   : > { %v5337_v10 = vsel %vm6846_vm7, %v3051_v49, %v3053_v32  ;;  %v1086_v55 = vsel %vm6847_vm10, %v4781_v4, 0  ;;  %v5342_v23 = vcombine.low %v2613_v33, %v2614_v15  ;;  %v3862_v57 = vcombine.low %v2549_v54, %v2550_v63  ;;  %vm6849_vm5 = vmmov %vm6847_vm10  ;;  %v2554_v9 = vld [vmem:[%s4506_s27 + $0x4c] sm:$0xf] }
  0x8c   : > { %v1526_v58 = vsel %vm6841_vm6, %v1523_v18, %v1525_v61  ;;  %v2823_v46 = vor.u32 %v2821_v26, %v2819_v11  ;;  %v2827_v21 = vrot.slane %v2825_v5, 1  ;;  %3081 = vrot.lane.b32.xlu1 %v3050_v1, %s4395_s7  ;;  %v1527_v53 = vrot.slane %v5327_v28, 1  ;;  %vm6855_vm7 = vmmov %vm6852_vm11 }
  0x8d   : > { %2935 = vrot.lane.b32.xlu0 %v2820_v0, %s4394_s28  ;;  %v3055_v50 = vrot.slane %v5342_v23, 1  ;;  %v1087_v4 = vsel %vm5121_vm12, %v4966_v40, 0  ;;  %vm6848_vm14 = vcmp.ne.s16.totalorder %v5141_v29, 0  ;;  %v3738_v44 = vcombine.low %v1085_v31, %v1086_v55  ;;  %v2556_v0 = vld [vmem:[%s4506_s27 + $0x54] sm:$0xf]  ;;  %vm6859_vm6 = vmmov %vm6850_vm3 }
  0x8e   : > { %v1088_v18 = vsel %vm6848_vm14, %v4976_v60, 0  ;;  %v2615_v16 = vsel %vm5066_vm13, %v2549_v54, 0  ;;  %v2616_v22 = vsel %vm6849_vm5, %v2550_v63, 0  ;;  %v3863_v34 = vcombine.low %v2551_v20, %v2552_v51  ;;  %vm6854_vm2 = vmmov %vm6848_vm14  ;;  %v6856_v54 = vld [vmem:[#allocation11_spill] sm:$0xff] }
  0x8f   : > { %v2831_v6 = vor.u32 %v2829_v14, %v2827_v21  ;;  %v2835_v1 = vrot.slane %v2833_v7, 1  ;;  %v5362_v17 = vsel %vm6850_vm3, %v3053_v32, %v3055_v50  ;;  %v2841_v24 = vshll.u32 %v3862_v57, 16  ;;  %v2555_v63 = vld [vmem:[%s4506_s27 + $0x50] sm:$0xf]  ;;  %vm6860_vm14 = vmmov %vm6855_vm7 }
  0x90   : > { %v2837_v40 = vshrl.u32 %v3861_v43, 16  ;;  %v3739_v39 = vcombine.low %v1087_v4, %v1088_v18  ;;  %v1089_v60 = vsel %vm5218_vm8, %v4988_v12, 0  ;;  %vm6851_vm13 = vcmp.ne.s16.totalorder %v5202_v8, 0  ;;  %1557 = vrot.lane.b32.xlu1 %v1526_v58, %s4395_s7  ;;  %vm6862_vm5 = vmmov %vm6850_vm3  ;;  %v5416_v58 = vld [vmem:[%s4506_s27 + $0x48] sm:$0xf] }
  0x91   : > { %v1090_v30 = vsel %vm6851_vm13, %v5002_v36, 0  ;;  %3083 = vrot.lane.b32.xlu0 %v3052_v56, %s4395_s7  ;;  %v5374_v38 = vcombine.low %v2615_v16, %v2616_v22  ;;  %v2845_v35 = vshrl.u32 %v3862_v57, 16  ;;  %v2849_v19 = vshll.u32 %v3863_v34, 16  ;;  %v6868_v16 = vld [vmem:[#allocation6_spill] sm:$0xff] }
  0x92   : > { %v5376_v45 = vcombine.low %v1089_v60, %v1090_v30  ;;  %v2828_v11 = vsel %vm6852_vm11, %v2823_v46, %v2827_v21  ;;  %v1528_v49 = vsel %vm6853_vm15, %v1525_v61, %v1527_v53  ;;  %v2617_v12 = vsel %vm5121_vm12, %v2551_v20, 0  ;;  %vm6858_vm12 = vmmov %vm6851_vm13  ;;  %v5446_v30 = vld [vmem:[%s4506_s27 + $0x5c] sm:$0xf] }
  0x93   : > { %v2618_v36 = vsel %vm6854_vm2, %v2552_v51, 0  ;;  %v2836_v3 = vsel %vm6855_vm7, %v2831_v6, %v2835_v1  ;;  %v1529_v52 = vrot.slane %v3738_v44, 1  ;;  %v2843_v42 = vrot.slane %v2841_v24, 1  ;;  %vm6867_vm11 = vmmov %vm6862_vm5 }
  0x94   : > { %v3864_v47 = vcombine.low %v2553_v48, %v2554_v9  ;;  %v2839_v43 = vor.u32 %v2837_v40, %v2835_v1  ;;  %v1531_v56 = vrot.slane %v3739_v39, 1  ;;  %v1091_v25 = vsel %vm4827_vm0, %v5135_v62, 0  ;;  %2937 = vrot.lane.b32.xlu1 %v2828_v11, %s4394_s28 }
  0x95   : > { %vm6857_vm10 = vcmp.ne.s16.totalorder %v6856_v54, 0  ;;  %1559 = vrot.lane.b32.xlu0 %v1528_v49, %s4395_s7  ;;  %v3057_v29 = vrot.slane %v5374_v38, 1  ;;  %v2847_v61 = vor.u32 %v2845_v35, %v2843_v42  ;;  %v2851_v26 = vrot.slane %v2849_v19, 1 }
  0x96   : > { %v1092_v37 = vsel %vm6857_vm10, %v5144_v27, 0  ;;  %v3880_v5 = vcombine.low %v2617_v12, %v2618_v36  ;;  %v2853_v28 = vshrl.u32 %v3863_v34, 16  ;;  %v2857_v32 = vshll.u32 %v3864_v47, 16  ;;  %vm6869_vm15 = vmmov %vm6857_vm10 }
  0x97   : > { %v2619_v62 = vsel %vm5218_vm8, %v2553_v48, 0  ;;  %v2620_v27 = vsel %vm6858_vm12, %v2554_v9, 0  ;;  %v1533_v14 = vrot.slane %v5376_v45, 1  ;;  %v5401_v7 = vcombine.low %v1091_v25, %v1092_v37  ;;  %vm6861_vm8 = vmmov %vm6850_vm3  ;;  %v5436_v48 = vld [vmem:[%s4506_s27 + $0x58] sm:$0xf]  ;;  %v5452_v19 = vpop.permute.xlu0 %1422 }
  0x98   : > { %v5403_v31 = vcombine.low %v2619_v62, %v2620_v27  ;;  %v1530_v33 = vsel %vm6859_vm6, %v1527_v53, %v1529_v52  ;;  %v2844_v15 = vsel %vm6860_vm14, %v2839_v43, %v2843_v42  ;;  %v5407_v55 = vcombine.low %v2555_v63, %v2556_v0  ;;  %3085 = vrot.lane.b32.xlu1 %v5337_v10, %s4395_s7  ;;  %vm6863_vm3 = vmmov %vm6855_vm7  ;;  %v4259_v53 = vld [vmem:[%s4506_s27 + $0x4c] sm:$0xf]  ;;  %v6865_v10 = vld [vmem:[#allocation7_spill] sm:$0xff]  ;;  %v5504_v27 = vpop.permute.xlu1 %1406 }
  0x99   : > { %2939 = vrot.lane.b32.xlu0 %v2836_v3, %s4394_s28  ;;  %v1532_v8 = vsel %vm6861_vm8, %v1529_v52, %v1531_v56  ;;  %v3058_v13 = vsel %vm6862_vm5, %v3055_v50, %v3057_v29  ;;  %v2852_v23 = vsel %vm6863_vm3, %v2847_v61, %v2851_v26  ;;  %v3059_v57 = vrot.slane %v3880_v5, 1  ;;  %vm6871_vm2 = vmmov %vm6863_vm3 }
  0x9a   : > { %v2855_v20 = vor.u32 %v2853_v28, %v2851_v26  ;;  %v2859_v51 = vrot.slane %v2857_v32, 1  ;;  %v1093_v21 = vsel %vm4680_vm4, %v5416_v58, 0  ;;  %vm6866_vm13 = vcmp.ne.s16.totalorder %v6865_v10, 0 }
  0x9b   : > { %v1094_v4 = vsel %vm6866_vm13, %v4259_v53, 0  ;;  %v5425_v18 = vsel %vm6867_vm11, %v1531_v56, %v1533_v14  ;;  %v1535_v50 = vrot.slane %v5401_v7, 1  ;;  %v2861_v44 = vshrl.u32 %v3864_v47, 16  ;;  %v5499_v32 = vpop.permute.xlu0 %1424 }
  0x9c   : > { %v190_v22 = vadd.s32 128, %v6868_v16  ;;  %v2865_v34 = vshll.u32 %v5407_v55, 16  ;;  %v2621_v6 = vsel %vm4827_vm0, %v2555_v63, 0  ;;  %v2622_v1 = vsel %vm6869_vm15, %v2556_v0, 0  ;;  %1561 = vrot.lane.b32.xlu1 %v1530_v33, %s4395_s7  ;;  %vm6870_vm0 = vmmov %vm6862_vm5 }
  0x9d   : > { %v192_v24 = vadd.s32 144, %v6868_v16  ;;  %3087 = vrot.lane.b32.xlu0 %v5362_v17, %s4395_s7  ;;  %v3061_v40 = vrot.slane %v5403_v31, 1  ;;  %v5442_v39 = vcombine.low %v1093_v21, %v1094_v4  ;;  %v176_v59 = vadd.s32 16, %v6868_v16  ;;  %vm6875_vm6 = vmmov %vm6870_vm0  ;;  %v4263_v21 = vld [vmem:[%s4506_s27 + $0x54] sm:$0xf] }
  0x9e   : > { %v322_v60 = vand.u32 15, %v190_v22  ;;  %v3060_v9 = vsel %vm6870_vm0, %v3057_v29, %v3059_v57  ;;  %v5450_v38 = vsel %vm6871_vm2, %v2855_v20, %v2859_v51  ;;  %v210_v45 = vand.u32 15, %v6868_v16  ;;  %vm6876_vm14 = vmmov %vm6870_vm0  ;;  %v4260_v29 = vld [vmem:[%s4506_s27 + $0xc] sm:$0xf]  ;;  %v4262_v20 = vld [vmem:[%s4506_s27 + $0x50] sm:$0xf] }
  0x9f   : > { %v336_v35 = vand.u32 15, %v192_v24  ;;  %v2863_v17 = vor.u32 %v2861_v44, %v2859_v51  ;;  %v5455_v11 = vcombine.low %v2621_v6, %v2622_v1  ;;  %v224_v49 = vand.u32 15, %v176_v59  ;;  %vm6884_vm15 = vmmov %vm6871_vm2  ;;  %v5556_v59 = vld [vmem:[%s4506_s27 + $0x60] sm:$0xf] }
  0xa0   : > { %vm606_vm7 = vcmp.ge.s32.totalorder %v322_v60, 1  ;;  %v2867_v12 = vrot.slane %v2865_v34, 1  ;;  %v6872_v36 = vmov 0  ;;  %v803_v52 = vsel %vm4470_vm1, %v4259_v53, 0  ;;  %2941 = vrot.lane.b32.xlu1 %v2844_v15, %s4394_s28  ;;  %v6888_v53 = vld [vmem:[#allocation8_spill] sm:$0xff] }
  0xa1   : > { %vm608_vm10 = vcmp.ge.s32.totalorder %v336_v35, 1  ;;  %vm5457_vm12 = vmpackc.low %vm606_vm7, %vm606_vm7  ;;  %v5465_v42 = vcombine.low %v5436_v48, %v5446_v30  ;;  %1563 = vrot.lane.b32.xlu0 %v1532_v8, %s4395_s7  ;;  %v5470_v47 = vsel %vm6875_vm6, %v1533_v14, %v1535_v50  ;;  %v5473_v43 = vsel %vm6876_vm14, %v3059_v57, %v3061_v40  ;;  %v4261_v14 = vld [vmem:[%s4506_s27 + $0x8] sm:$0xf] }
  0xa2   : > { %v6873_v36 = vsel %vm5457_vm12, 4294967295, %v6872_v36  ;;  %v1537_v56 = vrot.slane %v5442_v39, 1  ;;  %vm5476_vm8 = vmpackc.low %vm608_vm10, %vm608_vm10  ;;  %v6877_v25 = vmov 0  ;;  %vm592_vm5 = vcmp.ge.s32.totalorder %v224_v49, 1 }
  0xa3   : > { %v6878_v25 = vsel %vm5476_vm8, 4294967295, %v6877_v25  ;;  %vm6733_vm3 = vcmask 261120   ;;  %v802_v54 = vsel %vm5476_vm8, %v5416_v58, 0  ;;  %vm5483_vm13 = vcmp.ge.s32.totalorder %v210_v45, 1  ;;  %vm5494_vm11 = vmpackc.low %vm592_vm5, %vm592_vm5 }
  0xa4   : > { %6879 = vst [vmem:[#allocation11_spill] sm:$0xff] %v6878_v25  ;;  %v787_v61 = vsel %vm4470_vm1, %v4260_v29, 0  ;;  %v3063_v26 = vrot.slane %v5455_v11, 1  ;;  %v1699_v5 = vsel %vm5457_vm12, %v5416_v58, 0  ;;  %v3709_v63 = vcombine.low %v802_v54, %v803_v52  ;;  %3089 = vrot.lane.b32.xlu1 %v3058_v13, %s4395_s7  ;;  %vm5525_vm2 = vmpackc.low %vm5483_vm13, %vm5483_vm13  ;;  %v4264_v54 = vld [vmem:[%s4506_s27 + $0x14] sm:$0xf]  ;;  %v1409_v29 = vpop.permute.xlu1 %1408 }
  0xa5   : > { %v194_v28 = vadd.s32 160, %v6868_v16  ;;  %v5502_v62 = vsel %vm6884_vm15, %v2863_v17, %v2867_v12  ;;  %v786_v7 = vsel %vm5494_vm11, %v4261_v14, 0  ;;  %v2869_v31 = vshrl.u32 %v5407_v55, 16  ;;  %2943 = vrot.lane.b32.xlu0 %v2852_v23, %s4394_s28  ;;  %vm6890_vm10 = vmmov %vm6870_vm0 }
  0xa6   : > { %v2873_v33 = vshll.u32 %v5465_v42, 16  ;;  %v5516_v15 = vsel %vm6870_vm0, %v1535_v50, %v1537_v56  ;;  %v5520_v8 = vsel %vm6733_vm3, %v3709_v63, %v5452_v19  ;;  %v3701_v57 = vcombine.low %v786_v7, %v787_v61 }
  0xa7   : > { %v350_v13 = vand.u32 15, %v194_v28  ;;  %v3758_v23 = vcombine.low %v1699_v5, %v803_v52  ;;  %v1095_v58 = vsel %vm4695_vm9, %v4262_v20, 0  ;;  %vm6889_vm7 = vcmp.ne.s16.totalorder %v6888_v53, 0  ;;  %v5572_v52 = vpop.permute.xlu0 %1426 }
  0xa8   : > { %v1096_v4 = vsel %vm6889_vm7, %v4263_v21, 0  ;;  %v178_v50 = vadd.s32 32, %v6868_v16  ;;  %v5539_v44 = vsel %vm6890_vm10, %v3061_v40, %v3063_v26  ;;  %v5543_v22 = vsel %vm6733_vm3, %v3701_v57, %v5504_v27  ;;  %1565 = vrot.lane.b32.xlu1 %v5425_v18, %s4395_s7 }
  0xa9   : > { %vm610_vm6 = vcmp.ge.s32.totalorder %v350_v13, 1  ;;  %v805_v34 = vsel %vm4470_vm1, %v4263_v21, 0  ;;  %v1683_v6 = vsel %vm5525_vm2, %v4261_v14, 0  ;;  %v2871_v1 = vor.u32 %v2869_v31, %v2867_v12  ;;  %3091 = vrot.lane.b32.xlu0 %v3060_v9, %s4395_s7  ;;  %v2560_v12 = vld [vmem:[%s4506_s27 + $0x64] sm:$0xf] }
  0xaa   : > { %v5549_v24 = vrot.slane %v2873_v33, 1  ;;  %vm5551_vm14 = vmpackc.low %vm610_vm6, %vm610_vm6  ;;  %v6891_v60 = vmov 0  ;;  %v238_v40 = vand.u32 15, %v178_v50  ;;  %v5561_v35 = vcombine.low %v1095_v58, %v1096_v4  ;;  %v6898_v4 = vld [vmem:[#allocation12_spill] sm:$0xff] }
  0xab   : > { %v6892_v60 = vsel %vm5551_vm14, 4294967295, %v6891_v60  ;;  %v804_v45 = vsel %vm5551_vm14, %v4262_v20, 0  ;;  %v2623_v17 = vsel %vm4680_vm4, %v5436_v48, 0  ;;  %vm6894_vm5 = vcmp.ne.s16.totalorder %v6865_v10, 0 }
  0xac   : > { %6893 = vst [vmem:[#allocation9_spill] sm:$0xff] %v6892_v60  ;;  %v2624_v49 = vsel %vm6894_vm5, %v5446_v30, 0  ;;  %v5576_v18 = vsel %vm6733_vm3, %v3758_v23, %v5452_v19  ;;  %v3710_v9 = vcombine.low %v804_v45, %v805_v34  ;;  %vm594_vm13 = vcmp.ge.s32.totalorder %v238_v40, 1  ;;  %v4265_v30 = vld [vmem:[%s4506_s27 + $0x10] sm:$0xf]  ;;  %2945 = vrot.lane.b32.xlu1 %v5450_v38, %s4394_s28 }
  0xad   : > { %v789_v37 = vsel %vm4470_vm1, %v4264_v54, 0  ;;  %v3750_v46 = vcombine.low %v1683_v6, %v787_v61  ;;  %v1701_v48 = vsel %vm5476_vm8, %v4262_v20, 0  ;;  %vm5583_vm4 = vmpackc.low %vm594_vm13, %vm594_vm13  ;;  %v1685_v19 = vsel %vm5494_vm11, %v4265_v30, 0  ;;  %1567 = vrot.lane.b32.xlu0 %v5470_v47, %s4395_s7  ;;  %v4266_v20 = vld [vmem:[%s4506_s27 + $0x5c] sm:$0xf]  ;;  %v6900_v6 = vld [vmem:[#allocation13_spill] sm:$0xff]  ;;  %v5632_v54 = vpop.permute.xlu1 %1428 }
  0xae   : > { %v196_v5 = vadd.s32 176, %v6868_v16  ;;  %v5593_v63 = vsel %vm6733_vm3, %v3710_v9, %v5499_v32  ;;  %v788_v61 = vsel %vm5583_vm4, %v4265_v30, 0  ;;  %v5597_v28 = vcombine.low %v2623_v17, %v2624_v49  ;;  %v4267_v47 = vld [vmem:[%s4506_s27 + $0x58] sm:$0xf]  ;;  %v2571_v60 = vld [vmem:[%s4506_s27 + $0x90] sm:$0x1] }
  0xaf   : > { %6897 = vst [vmem:[#allocation7_spill] sm:$0xff] %v5593_v63  ;;  %v5600_v14 = vcombine.low %v5556_v59, %v2560_v12  ;;  %v5608_v7 = vsel %vm6884_vm15, %v2871_v1, %v5549_v24  ;;  %v1539_v31 = vrot.slane %v5561_v35, 1  ;;  %v3702_v33 = vcombine.low %v788_v61, %v789_v37 }
  0xb0   : > { %v364_v57 = vand.u32 15, %v196_v5  ;;  %v3759_v13 = vcombine.low %v1701_v48, %v805_v34  ;;  %v3751_v23 = vcombine.low %v1685_v19, %v789_v37  ;;  %v807_v58 = vsel %vm4470_vm1, %v4266_v20, 0  ;;  %v5623_v34 = vpop.permute.xlu0 %1987  ;;  %3093 = vrot.lane.b32.xlu1 %v5473_v43, %s4395_s7  ;;  %v4268_v19 = vld [vmem:[%s4506_s27 + $0x64] sm:$0xf] }
  0xb1   : > { %v198_v21 = vadd.s32 192, %v6868_v16  ;;  %v5616_v38 = vsel %vm6733_vm3, %v3702_v33, %v1409_v29  ;;  %vm6899_vm7 = vnez %v6898_v4  ;;  %vm6901_vm10 = vcmp.ne.s16.totalorder %v6900_v6, 0  ;;  %2947 = vrot.lane.b32.xlu0 %v5502_v62, %s4394_s28  ;;  %v5668_v33 = vld [vmem:[%s4506_s27 + $0x68] sm:$0xf] }
  0xb2   : > { %vm612_vm0 = vcmp.ge.s32.totalorder %v364_v57, 1  ;;  %v1097_v50 = vsel %vm6899_vm7, %v4267_v47, 0  ;;  %v1098_v1 = vsel %vm6901_vm10, %v4266_v20, 0  ;;  %v3065_v40 = vrot.slane %v5597_v28, 1  ;;  %v5671_v57 = vld [vmem:[%s4506_s27 + $0x6c] sm:$0xf] }
  0xb3   : > { %v2877_v45 = vshrl.u32 %v5465_v42, 16  ;;  %v2881_v17 = vshll.u32 %v5600_v14, 16  ;;  %vm5628_vm6 = vmpackc.low %vm612_vm0, %vm612_vm0  ;;  %v378_v9 = vand.u32 15, %v198_v21  ;;  %v1703_v37 = vsel %vm5551_vm14, %v4267_v47, 0 }
  0xb4   : > { %v806_v42 = vsel %vm5628_vm6, %v4267_v47, 0  ;;  %v2625_v48 = vsel %vm4695_vm9, %v5556_v59, 0  ;;  %vm6904_vm5 = vcmp.ne.s16.totalorder %v6888_v53, 0  ;;  %v809_v62 = vsel %vm4470_vm1, %v4268_v19, 0  ;;  %1569 = vrot.lane.b32.xlu1 %v5516_v15, %s4395_s7  ;;  %v1970_v20 = vpop.permute.xlu0 %1969  ;;  %v5696_v47 = vpop.permute.xlu1 %1410 }
  0xb5   : > { %v2626_v30 = vsel %vm6904_vm5, %v2560_v12, 0  ;;  %v3711_v43 = vcombine.low %v806_v42, %v807_v58  ;;  %vm614_vm13 = vcmp.ge.s32.totalorder %v378_v9, 1  ;;  %v5650_v5 = vcombine.low %v1097_v50, %v1098_v1  ;;  %3095 = vrot.lane.b32.xlu0 %v5539_v44, %s4395_s7  ;;  %v6910_v50 = vld [vmem:[#allocation14_spill] sm:$0xff]  ;;  %v6913_v42 = vld [vmem:[#allocation15_spill] sm:$0xff] }
  0xb6   : > { %v2002_v61 = vsel %vm6733_vm3, %v3750_v46, %v5504_v27  ;;  %vm6905_vm9 = vcmask 1046528   ;;  %v2020_v53 = vsel %vm6733_vm3, %v3759_v13, %v5499_v32  ;;  %vm5661_vm15 = vmpackc.low %vm614_vm13, %vm614_vm13  ;;  %v5665_v12 = vcombine.low %v2625_v48, %v2626_v30  ;;  %v4269_v32 = vld [vmem:[%s4506_s27 + $0x60] sm:$0xf]  ;;  %v5719_v30 = vld [vmem:[%s4506_s27 + $0x74] sm:$0xf] }
  0xb7   : > { %v1540_v51 = vsel %vm6905_vm9, %v1537_v56, %v1539_v31  ;;  %v5674_v27 = vsel %vm6733_vm3, %v3751_v23, %v1409_v29  ;;  %v2879_v39 = vor.u32 %v2877_v45, %v5549_v24  ;;  %v5679_v56 = vsel %vm6733_vm3, %v3711_v43, %v5572_v52  ;;  %vm6909_vm0 = vmmov %vm6905_vm9  ;;  %v5711_v45 = vld [vmem:[%s4506_s27 + $0x70] sm:$0xf] }
  0xb8   : > { %6908 = vst [vmem:[#allocation6_spill] sm:$0xff] %v5679_v56  ;;  %v808_v46 = vsel %vm5661_vm15, %v4269_v32, 0  ;;  %v3066_v24 = vsel %vm6909_vm0, %v3063_v26, %v3065_v40  ;;  %v2883_v29 = vrot.slane %v2881_v17, 1  ;;  %v3760_v13 = vcombine.low %v1703_v37, %v807_v58  ;;  %2949 = vrot.lane.b32.xlu1 %v5608_v7, %s4394_s28 }
  0xb9   : > { %v3712_v23 = vcombine.low %v808_v46, %v809_v62  ;;  %v1705_v21 = vsel %vm5628_vm6, %v4269_v32, 0  ;;  %v1541_v15 = vrot.slane %v5650_v5, 1  ;;  %v5700_v44 = vcombine.low %v5668_v33, %v5671_v57  ;;  %1571 = vrot.lane.b32.xlu0 %v1540_v51, %s4395_s7 }
  0xba   : > { %vm6911_vm10 = vnez %v6910_v50  ;;  %v3067_v58 = vrot.slane %v5665_v12, 1  ;;  %vm6734_vm5 = vcmask 523264   ;;  %v180_v1 = vadd.s32 48, %v6868_v16 }
  0xbb   : > { %v1099_v11 = vsel %vm6911_vm10, %v4269_v32, 0  ;;  %v5706_v26 = vsel %vm6733_vm3, %v3712_v23, %v5632_v54  ;;  %v2885_v17 = vshrl.u32 %v5600_v14, 16  ;;  %v2889_v9 = vshll.u32 %v5700_v44, 16  ;;  %v1986_v23 = vpop.permute.xlu1 %1985 }
  0xbc   : > { %6912 = vst [vmem:[#allocation5_spill] sm:$0xff] %v5706_v26  ;;  %vm6914_vm13 = vcmp.ne.s16.totalorder %v6913_v42, 0  ;;  %v2036_v48 = vsel %vm6734_vm5, %v2002_v61, %v1970_v20  ;;  %vm6915_vm9 = vsmask.f32 7424  ;;  %v3761_v32 = vcombine.low %v1705_v21, %v809_v62  ;;  %v5761_v20 = vld [vmem:[%s4506_s27 + $0x78] sm:$0xf]  ;;  %3097 = vrot.lane.b32.xlu1 %v3066_v24, %s4395_s7 }
  0xbd   : > { %v1100_v37 = vsel %vm6914_vm13, %v4268_v19, 0  ;;  %v2884_v43 = vsel %vm6915_vm9, %v2879_v39, %v2883_v29  ;;  %vm6735_vm0 = vcmask 785408   ;;  %vm6916_vm13 = vcmask 1046528   ;;  %v4270_v19 = vld [vmem:[%s4506_s27 + $0x1c] sm:$0xf] }
  0xbe   : > { %v5725_v46 = vcombine.low %v1099_v11, %v1100_v37  ;;  %v1542_v14 = vsel %vm6916_vm13, %v1539_v31, %v1541_v15  ;;  %v5735_v61 = vsel %vm4470_vm1, %v4270_v19, 0  ;;  %4009 = vmatprep.mubr.msk.bf16.mxu0 %vm6735_vm0, %v2036_v48  ;;  %v2627_v7 = vsel %vm6899_vm7, %v5668_v33, 0  ;;  %vm6918_vm7 = vmmov %vm6916_vm13  ;;  %2951 = vrot.lane.b32.xlu0 %v2884_v43, %s4394_s28  ;;  %v5769_v11 = vld [vmem:[%s4506_s27 + $0x68] sm:$0xf]  ;;  %v5781_v24 = vld [vmem:[%s4506_s27 + $0x7c] sm:$0xf] }
  0xbf   : > { %vm6917_vm9 = vcmp.ne.s16.totalorder %v6900_v6, 0  ;;  %v2054_v35 = vsel %vm6734_vm5, %v2020_v53, %v5623_v34  ;;  %v252_v31 = vand.u32 15, %v180_v1  ;;  %v5750_v39 = vcombine.low %v5711_v45, %v5719_v30  ;;  %v6921_v1 = vld [vmem:[#allocation17_spill] sm:$0xff] }
  0xc0   : > { %v2628_v62 = vsel %vm6917_vm9, %v5671_v57, 0  ;;  %v3068_v4 = vsel %vm6918_vm7, %v3065_v40, %v3067_v58  ;;  %v1687_v6 = vsel %vm5583_vm4, %v5286_v41, 0  ;;  %v2887_v34 = vor.u32 %v2885_v17, %v2883_v29  ;;  %v6919_v40 = vld [vmem:[#allocation16_spill] sm:$0xff]  ;;  %v5775_v29 = vld [vmem:[%s4506_s27 + $0x6c] sm:$0xf]  ;;  %v4246_v43 = vld [vmem:[%s6655_s1 + $0x20] sm:$0xff]   ;;  %1573 = vrot.lane.b32.xlu1 %v1542_v14, %s4395_s7 }
  0xc1   : > { %v5746_v51 = vcombine.low %v2627_v7, %v2628_v62  ;;  %v2891_v53 = vrot.slane %v2889_v9, 1  ;;  %v6732_v21 = vrot.slane %v5725_v46, 1  ;;  %v2052_v28 = vsel %vm6734_vm5, %v5576_v18, %v1986_v23  ;;  %v1990_v23 = vpop.permute.xlu0 %1989  ;;  %v5864_v7 = vld [vmem:[%s4506_s27 + $0x20] sm:$0xf] }
  0xc2   : > { %vm6920_vm13 = vnez %v6919_v40  ;;  %vm6922_vm9 = vcmp.ne.s16.totalorder %v6921_v1, 0  ;;  %4025 = vmatprep.mubr.msk.bf16.mxu1 %vm6735_vm0, %v2052_v28  ;;  %v2893_v9 = vshrl.u32 %v5700_v44, 16  ;;  %v2897_v18 = vshll.u32 %v5750_v39, 16  ;;  %3099 = vrot.lane.b32.xlu0 %v3068_v4, %s4395_s7  ;;  %v4247_v4 = vld [vmem:[%s6655_s1 + $0x18] sm:$0xff]  }
  0xc3   : > { %v1101_v41 = vsel %vm6920_vm13, %v5769_v11, 0  ;;  %v1102_v17 = vsel %vm6922_vm9, %v5775_v29, 0  ;;  %v2629_v37 = vsel %vm6911_vm10, %v5711_v45, 0  ;;  %vm6923_vm7 = vcmp.ne.s16.totalorder %v6913_v42, 0  ;;  %4026 = vmatmul.mubr.msk.bf16.vlgmr.msra.gmra.mxu1 %vm6735_vm0, %v2054_v35 }
  0xc4   : > { %v2630_v48 = vsel %vm6923_vm7, %v5719_v30, 0  ;;  %v2022_v19 = vsel %vm6733_vm3, %v3760_v13, %v5572_v52  ;;  %v2024_v44 = vsel %vm6733_vm3, %v3761_v32, %v5632_v54  ;;  %vm5799_vm9 = vcmp.ge.s32.totalorder %v252_v31, 1  ;;  %v6927_v54 = vld [vmem:[#allocation20_spill] sm:$0xff]  ;;  %v5825_v31 = vld [vmem:[%s4506_s27 + $0x80] sm:$0xf] }
  0xc5   : > { %v6731_v50 = vrot.slane %v5746_v51, 1  ;;  %v3752_v42 = vcombine.low %v1687_v6, %v5735_v61  ;;  %vm6926_vm10 = vsmask.f32 7424  ;;  %v5807_v28 = vcombine.low %v1101_v41, %v1102_v17  ;;  %4042 = vmatpush3.bf16.msra.mxu1 %v6927_v54  ;;  %v1972_v41 = vpop.permute.xlu1 %1971 }
  0xc6   : > { %v2892_v62 = vsel %vm6926_vm10, %v2887_v34, %v2891_v53  ;;  %v5811_v52 = vcombine.low %v5761_v20, %v5781_v24  ;;  %vm6928_vm7 = vcmask 1046528   ;;  %v2056_v32 = vsel %vm6734_vm5, %v2022_v19, %v1990_v23  ;;  %4043 = vmatprep.subr.bf16.mxu1 %v4246_v43  ;;  %vm5839_vm10 = vmpackc.low %vm5799_vm9, %vm5799_vm9  ;;  %v6933_v23 = vld [vmem:[#allocation19_spill] sm:$0xff] }
  0xc7   : > { %v1544_v13 = vsel %vm6928_vm7, %v1541_v15, %v6732_v21  ;;  %v5822_v35 = vcombine.low %v2629_v37, %v2630_v48  ;;  %v2895_v6 = vor.u32 %v2893_v9, %v2891_v53  ;;  %v2899_v34 = vrot.slane %v2897_v18, 1  ;;  %4029 = vmatprep.mubr.msk.bf16.mxu1 %vm6735_vm0, %v2056_v32  ;;  %v5831_v15 = vld [vmem:[%s4506_s27 + $0x84] sm:$0xf]  ;;  %v5856_v37 = vld [vmem:[%s4506_s27 + $0x70] sm:$0xf]  ;;  %v6931_v48 = vld [vmem:[#allocation18_spill] sm:$0xff]  ;;  %2953 = vrot.lane.b32.xlu1 %v2892_v62, %s4394_s28 }
  0xc8   : > { %v2901_v14 = vshrl.u32 %v5750_v39, 16  ;;  %v2905_v5 = vshll.u32 %v5811_v52, 16  ;;  %v3070_v39 = vsel %vm6928_vm7, %v3067_v58, %v6731_v50  ;;  %v2038_v17 = vsel %vm6734_vm5, %v5674_v27, %v1972_v41  ;;  %v4273_v9 = vld [vmem:[%s4506_s27 + $0x24] sm:$0xf]  ;;  %v5870_v58 = vld [vmem:[%s4506_s27 + $0x74] sm:$0xf]  ;;  %1575 = vrot.lane.b32.xlu0 %v1544_v13, %s4395_s7 }
  0xc9   : > { %v5853_v18 = vsel %vm4470_vm1, %v4273_v9, 0  ;;  %vm6932_vm9 = vnez %v6931_v48  ;;  %4010 = vmatmul.mubr.msk.bf16.vlgmr.msra.gmra.mxu0 %vm6735_vm0, %v2038_v17  ;;  %v1545_v12 = vrot.slane %v5807_v28, 1  ;;  %v1689_v27 = vsel %vm5839_vm10, %v5864_v7, 0  ;;  %4044 = vmatpush3.bf16.msra.mxu1 %v4246_v43  ;;  %v4250_v28 = vld [vmem:[%s6655_s1 + $0x80] sm:$0xff]   ;;  %v1992_v17 = vpop.permute.xlu0 %1991 }
  0xca   : > { %v1103_v19 = vsel %vm6932_vm9, %v5856_v37, 0  ;;  %vm6934_vm7 = vcmp.ne.s16.totalorder %v6933_v23, 0  ;;  %v2631_v32 = vsel %vm6920_vm13, %v5761_v20, 0  ;;  %v5891_v43 = vcombine.low %v5825_v31, %v5831_v15  ;;  %4045 = vmatprep.subr.bf16.mxu1 %v4247_v4 }
  0xcb   : > { %v1104_v54 = vsel %vm6934_vm7, %v5870_v58, 0  ;;  %vm6935_vm7 = vcmp.ne.s16.totalorder %v6921_v1, 0  ;;  %vm6936_vm13 = vsmask.f32 7424  ;;  %v2058_v62 = vsel %vm6734_vm5, %v2024_v44, %v1992_v17  ;;  %3101 = vrot.lane.b32.xlu1 %v3070_v39, %s4395_s7  ;;  %v5920_v17 = vpop.permute.xlu1 %1412 }
  0xcc   : > { %v5884_v9 = vcombine.low %v1103_v19, %v1104_v54  ;;  %v2632_v40 = vsel %vm6935_vm7, %v5781_v24, 0  ;;  %v2900_v50 = vsel %vm6936_vm13, %v2895_v6, %v2899_v34  ;;  %v2903_v21 = vor.u32 %v2901_v14, %v2899_v34  ;;  %v4249_v19 = vld [vmem:[%s6655_s1 + $0x10] sm:$0xff]   ;;  %4030 = vmatmul.mubr.msk.bf16.gmra.mxu1 %vm6735_vm0, %v2058_v62  ;;  %v6937_v54 = vld [vmem:[#allocation22_spill] sm:$0xff]  ;;  %v5910_v14 = vld [vmem:[%s4506_s27 + $0x80] sm:$0x1] }
  0xcd   : > { %v2907_v13 = vrot.slane %v2905_v5, 1  ;;  %v5899_v1 = vcombine.low %v2631_v32, %v2632_v40  ;;  %4086 = vmatpush3.bf16.msra.mxu0 %v6937_v54  ;;  %v2006_v41 = vsel %vm6733_vm3, %v3752_v42, %v5696_v47  ;;  %v5905_v6 = vadd.s32 64, %v6868_v16  ;;  %4046 = vmatpush3.bf16.msra.mxu1 %v4247_v4  ;;  %v4252_v5 = vld [vmem:[%s6655_s1 + $0x78] sm:$0xff]  }
  0xce   : > { %v3753_v44 = vcombine.low %v1689_v27, %v5853_v18  ;;  %v200_v34 = vadd.s32 208, %v6868_v16  ;;  %4087 = vmatprep.subr.bf16.mxu0 %v4250_v28  ;;  %2955 = vrot.lane.b32.xlu0 %v2900_v50, %s4394_s28  ;;  %v6938_v42 = vrot.slane %v5725_v46, 1  ;;  %vm6939_vm7 = vcmask 1046528   ;;  %v1974_v27 = vpop.permute.xlu0 %1973 }
  0xcf   : > { %v2909_v40 = vshrl.u32 %v5811_v52, 16  ;;  %v2913_v4 = vshll.u32 %v5891_v43, 16  ;;  %v6940_v62 = vrot.slane %v5822_v35, 1  ;;  %v6941_v54 = vrot.slane %v5746_v51, 1  ;;  %vm6942_vm13 = vmmov %vm6939_vm7  ;;  %4047 = vmatprep.subr.bf16.mxu1 %v4249_v19 }
  0xd0   : > { %v1546_v32 = vsel %vm6939_vm7, %v6938_v42, %v1545_v12  ;;  %vm6943_vm3 = vsmask.f32 7424  ;;  %v392_v26 = vand.u32 15, %v200_v34  ;;  %v202_v46 = vadd.s32 224, %v6868_v16  ;;  %v4251_v42 = vld [vmem:[%s6655_s1 + $0x8] sm:$0xff]  }
  0xd1   : > { %v3072_v39 = vsel %vm6942_vm13, %v6941_v54, %v6940_v62  ;;  %v2908_v50 = vsel %vm6943_vm3, %v2903_v21, %v2907_v13  ;;  %v6738_v52 = vrot.slane %v5899_v1, 1  ;;  %v811_v56 = vsel %vm4470_vm1, %v5775_v29, 0  ;;  %4088 = vmatpush3.bf16.msra.mxu0 %v4250_v28  ;;  %4048 = vmatpush3.bf16.msra.mxu1 %v4249_v19  ;;  %v4254_v29 = vld [vmem:[%s6655_s1 + $0x70] sm:$0xff]  }
  0xd2   : > { %v3732_v51 = vcombine.low %v5910_v14, %v5910_v14  ;;  %v2633_v21 = vsel %vm6932_vm9, %v5825_v31, 0  ;;  %v2040_v34 = vsel %vm6734_vm5, %v2006_v41, %v1974_v27  ;;  %vm616_vm3 = vcmp.ge.s32.totalorder %v392_v26, 1  ;;  %4089 = vmatprep.subr.bf16.mxu0 %v4252_v5  ;;  %1577 = vrot.lane.b32.xlu1 %v1546_v32, %s4395_s7  ;;  %vm6946_vm9 = vmmov %vm6942_vm13 }
  0xd3   : > { %v406_v62 = vand.u32 15, %v202_v46  ;;  %vm6944_vm7 = vcmp.ne.s16.totalorder %v6933_v23, 0  ;;  %3103 = vrot.lane.b32.xlu0 %v3072_v39, %s4395_s7  ;;  %v6945_v48 = vrot.slane %v5884_v9, 1  ;;  %v2911_v26 = vor.u32 %v2909_v40, %v2907_v13  ;;  %vm5958_vm13 = vmpackc.low %vm616_vm3, %vm616_vm3  ;;  %4013 = vmatprep.mubr.msk.bf16.mxu0 %vm6735_vm0, %v2040_v34  ;;  %v4253_v13 = vld [vmem:[%s6655_s1] sm:$0xff]   ;;  %v1976_v39 = vpop.permute.xlu1 %1975 }
  0xd4   : > { %v2634_v54 = vsel %vm6944_vm7, %v5831_v15, 0  ;;  %v5956_v41 = vrot.slane %v2913_v4, 1  ;;  %v1400_v19 = vshll.u32 %v3732_v51, 16  ;;  %v810_v32 = vsel %vm5958_vm13, %v5769_v11, 0  ;;  %4049 = vmatprep.subr.bf16.mxu1 %v4251_v42  ;;  %v1431_v51 = vpop.permute.xlu0 %1430 }
  0xd5   : > { %v1548_v28 = vsel %vm6946_vm9, %v1545_v12, %v6945_v48  ;;  %vm618_vm7 = vcmp.ge.s32.totalorder %v406_v62, 1  ;;  %v813_v27 = vsel %vm4470_vm1, %v5870_v58, 0  ;;  %v5969_v12 = vcombine.low %v2633_v21, %v2634_v54  ;;  %4090 = vmatpush3.bf16.msra.mxu0 %v4252_v5  ;;  %4050 = vmatpush3.bf16.msra.mxu1 %v4251_v42  ;;  %v4255_v5 = vld [vmem:[%s6655_s1 + $0x68] sm:$0xff]   ;;  %v5998_v48 = vld [vmem:[%s4506_s27 + $0x78] sm:$0xf] }
  0xd6   : > { %v266_v40 = vand.u32 15, %v5905_v6  ;;  %vm6949_vm3 = vcmask 261120   ;;  %v3713_v46 = vcombine.low %v810_v32, %v811_v56  ;;  %vm5977_vm9 = vmpackc.low %vm618_vm7, %vm618_vm7  ;;  %v1707_v21 = vsel %vm5661_vm15, %v5769_v11, 0  ;;  %4091 = vmatprep.subr.bf16.mxu0 %v4254_v29  ;;  %2957 = vrot.lane.b32.xlu1 %v2908_v50, %s4394_s28 }
  0xd7   : > { %v2008_v4 = vsel %vm6949_vm3, %v3753_v44, %v5920_v17  ;;  %v812_v6 = vsel %vm5977_vm9, %v5856_v37, 0  ;;  %v184_v44 = vadd.s32 80, %v6868_v16  ;;  %1579 = vrot.lane.b32.xlu0 %v1548_v28, %s4395_s7  ;;  %vm6952_vm7 = vmmov %vm6949_vm3  ;;  %v1402_v54 = vrot.slane %v1400_v19, 1  ;;  %4051 = vmatprep.subr.bf16.mxu1 %v4253_v13 }
  0xd8   : > { %v2042_v58 = vsel %vm6734_vm5, %v2008_v4, %v1976_v39  ;;  %v5995_v11 = vsel %vm6952_vm7, %v3713_v46, %v1431_v51  ;;  %v3714_v62 = vcombine.low %v812_v6, %v813_v27  ;;  %vm6954_vm3 = vnez %v6813_v2  ;;  %v6013_v4 = vld [vmem:[%s4506_s27 + $0x7c] sm:$0xf]  ;;  %v6959_v39 = vld [vmem:[#allocation23_spill] sm:$0xff]  ;;  %v6019_v6 = vld [vmem:[%s4506_s27 + $0x88] sm:$0xf] }
  0xd9   : > { %6953 = vst [vmem:[#allocation10_spill] sm:$0xff] %v5995_v11  ;;  %v1105_v42 = vsel %vm6954_vm3, %v5998_v48, 0  ;;  %v6955_v32 = vrot.slane %v5822_v35, 1  ;;  %vm6956_vm5 = vcmask 1046528   ;;  %vm6957_vm0 = vsmask.f32 7424  ;;  %4092 = vmatpush3.bf16.msra.mxu0 %v4254_v29  ;;  %4052 = vmatpush3.bf16.msra.mxu1 %v4253_v13 }
  0xda   : > { %v2916_v28 = vsel %vm6957_vm0, %v2911_v26, %v5956_v41  ;;  %vm6958_vm7 = vcmask 785408   ;;  %vm6960_vm14 = vcmp.ne.s16.totalorder %v6959_v39, 0  ;;  %vm6021_vm8 = vcmp.ge.s32.totalorder %v266_v40, 1  ;;  %v6963_v26 = vld [vmem:[#allocation24_spill] sm:$0xff]  ;;  %v6029_v11 = vld [vmem:[%s4506_s27 + $0x8c] sm:$0xf]  ;;  %4093 = vmatprep.subr.bf16.mxu0 %v4255_v5 }
  0xdb   : > { %v3074_v50 = vsel %vm6956_vm5, %v6955_v32, %v6738_v52  ;;  %4014 = vmatmul.mubr.msk.bf16.gmra.mxu0 %vm6958_vm7, %v2042_v58  ;;  %v1106_v46 = vsel %vm6960_vm14, %v6013_v4, 0  ;;  %v3762_v32 = vcombine.low %v1707_v21, %v811_v56  ;;  %v1433_v52 = vpop.permute.xlu1 %1432  ;;  %vm6964_vm5 = vcmp.ne.s16.totalorder %v6963_v26, 0  ;;  %2959 = vrot.lane.b32.xlu0 %v2916_v28, %s4394_s28  ;;  %v6967_v29 = vld [vmem:[#allocation21_spill] sm:$0xff]  ;;  %vm6048_vm7 = vmpackc.low %vm6021_vm8, %vm6021_vm8 }
  0xdc   : > { %v1107_v58 = vsel %vm6964_vm5, %v5910_v14, 0  ;;  %v3748_v19 = vcombine.low %v1105_v42, %v1106_v46  ;;  %v1709_v63 = vsel %vm5958_vm13, %v5856_v37, 0  ;;  %vm6965_vm14 = vcmask 261120   ;;  %v4256_v14 = vld [vmem:[%s6655_s1 + $0x60] sm:$0xff]   ;;  %3105 = vrot.lane.b32.xlu1 %v3074_v50, %s4395_s7 }
  0xdd   : > { %v6036_v40 = vsel %vm6965_vm14, %v3714_v62, %v1433_v52  ;;  %v280_v25 = vand.u32 15, %v184_v44  ;;  %v3749_v56 = vcombine.low %v1107_v58, %v1107_v58  ;;  %v1403_v37 = vsel %vm6957_vm0, %v6967_v29, %v1402_v54  ;;  %v6065_v58 = vld [vmem:[%s4506_s27 + $0x28] sm:$0xf]  ;;  %4094 = vmatpush3.bf16.msra.mxu0 %v4255_v5  ;;  %vm6973_vm8 = vmmov %vm6965_vm14 }
  0xde   : > { %6966 = vst [vmem:[#allocation8_spill] sm:$0xff] %v6036_v40  ;;  %v1549_v21 = vrot.slane %v3748_v19, 1  ;;  %v6968_v44 = vmov 0  ;;  %v6970_v13 = vrot.slane %v5969_v12, 1  ;;  %v6971_v62 = vrot.slane %v5899_v1, 1  ;;  %4095 = vmatprep.subr.bf16.mxu0 %v4256_v14 }
  0xdf   : > { %v6969_v44 = vsel %vm6048_vm7, 4294967295, %v6968_v44  ;;  %vm6972_vm5 = vcmask 1046528   ;;  %v1551_v50 = vrot.slane %v3749_v56, 1  ;;  %v3872_v28 = vcombine.low %v6019_v6, %v6029_v11  ;;  %v4279_v19 = vld [vmem:[%s4506_s27 + $0x2c] sm:$0xf]  ;;  %v6070_v1 = vpop.permute.xlu1 %1414 }
  0xe0   : > { %v3076_v42 = vsel %vm6972_vm5, %v6971_v62, %v6970_v13  ;;  %v3873_v46 = vcombine.low %v2571_v60, %v2571_v60  ;;  %v3763_v54 = vcombine.low %v1709_v63, %v813_v27  ;;  %v6062_v35 = vsel %vm4470_vm1, %v4279_v19, 0  ;;  %v1994_v62 = vpop.permute.xlu0 %1993  ;;  %1434 = vrot.lane.b32.xlu1 %v1403_v37, %s4394_s28  ;;  %vm6977_vm12 = vmmov %vm6972_vm5 }
  0xe1   : > { %v1691_v29 = vsel %vm6048_vm7, %v6065_v58, 0  ;;  %v2917_v56 = vshrl.u32 %v5891_v43, 16  ;;  %v2026_v13 = vsel %vm6973_vm8, %v3762_v32, %v1431_v51  ;;  %vm600_vm14 = vcmp.ge.s32.totalorder %v280_v25, 1  ;;  %3107 = vrot.lane.b32.xlu0 %v3076_v42, %s4395_s7  ;;  %4096 = vmatpush3.bf16.msra.mxu0 %v4256_v14 }
  0xe2   : > { %v2921_v63 = vshll.u32 %v3872_v28, 16  ;;  %v2635_v27 = vsel %vm6954_vm3, %v6019_v6, 0  ;;  %vm6974_vm0 = vcmask 523264   ;;  %v6975_v43 = vrot.slane %v5884_v9, 1  ;;  %vm6089_vm7 = vmpackc.low %vm600_vm14, %vm600_vm14 }
  0xe3   : > { %v2060_v19 = vsel %vm6974_vm0, %v2026_v13, %v1994_v62  ;;  %v2925_v51 = vshrl.u32 %v3872_v28, 16  ;;  %v2929_v25 = vshll.u32 %v3873_v46, 16  ;;  %vm6976_vm8 = vcmask 785408   ;;  %v6111_v14 = vpop.permute.xlu1 %1416 }
  0xe4   : > { %v1550_v5 = vsel %vm6972_vm5, %v6975_v43, %v1549_v21  ;;  %4033 = vmatprep.mubr.msk.bf16.mxu1 %vm6976_vm8, %v2060_v19  ;;  %v1552_v2 = vsel %vm6977_vm12, %v1549_v21, %v1551_v50  ;;  %v2923_v32 = vrot.slane %v2921_v63, 1  ;;  %v2919_v40 = vor.u32 %v2917_v56, %v5956_v41  ;;  %v4281_v21 = vld [vmem:[%s4506_s27 + $0x34] sm:$0xf]  ;;  %v6102_v50 = vld [vmem:[%s4506_s27 + $0x30] sm:$0xf] }
  0xe5   : > { %vm6978_vm3 = vcmp.ne.s16.totalorder %v6959_v39, 0  ;;  %v6979_v42 = vmov 0  ;;  %v2931_v9 = vrot.slane %v2929_v25, 1  ;;  %vm6981_vm0 = vcmp.ne.s16.totalorder %v6963_v26, 0  ;;  %1583 = vrot.lane.b32.xlu1 %v1552_v2, %s4395_s7  ;;  %1581 = vrot.lane.b32.xlu0 %v1550_v5, %s4395_s7 }
  0xe6   : > { %v2636_v37 = vsel %vm6978_vm3, %v6029_v11, 0  ;;  %v6980_v42 = vsel %vm6089_vm7, 4294967295, %v6979_v42  ;;  %v2637_v28 = vsel %vm6981_vm0, %v2571_v60, 0  ;;  %v3754_v13 = vcombine.low %v1691_v29, %v6062_v35  ;;  %v1996_v60 = vpop.permute.xlu0 %1995 }
  0xe7   : > { %v3889_v46 = vcombine.low %v2635_v27, %v2636_v37  ;;  %v6099_v41 = vsel %vm4470_vm1, %v4281_v21, 0  ;;  %v1693_v39 = vsel %vm6089_vm7, %v6102_v50, 0  ;;  %v2927_v56 = vor.u32 %v2925_v51, %v2923_v32 }
  0xe8   : > { %vm6982_vm12 = vcmask 261120   ;;  %v186_v26 = vadd.s32 96, %v6868_v16  ;;  %v3890_v29 = vcombine.low %v2637_v28, %v2637_v28  ;;  %v204_v63 = vadd.s32 240, %v6868_v16 }
  0xe9   : > { %v2028_v62 = vsel %vm6982_vm12, %v3763_v54, %v1433_v52  ;;  %vm6983_vm14 = vcmask 523264   ;;  %vm6984_vm5 = vsmask.f32 7424  ;;  %v3077_v51 = vrot.slane %v3889_v46, 1  ;;  %vm6987_vm0 = vmmov %vm6982_vm12 }
  0xea   : > { %v2062_v27 = vsel %vm6983_vm14, %v2028_v62, %v1996_v60  ;;  %v2932_v19 = vsel %vm6984_vm5, %v2927_v56, %v2931_v9  ;;  %vm6985_vm8 = vmmov %vm6984_vm5  ;;  %v3755_v52 = vcombine.low %v1693_v39, %v6099_v41  ;;  %vm6986_vm3 = vcmask 785408   ;;  %v1978_v9 = vpop.permute.xlu0 %1977 }
  0xeb   : > { %v2924_v43 = vsel %vm6985_vm8, %v2919_v40, %v2923_v32  ;;  %4034 = vmatmul.mubr.msk.bf16.gmra.mxu1 %vm6986_vm3, %v2062_v27  ;;  %v3079_v54 = vrot.slane %v3890_v29, 1  ;;  %v420_v5 = vand.u32 15, %v204_v63  ;;  %v188_v25 = vadd.s32 112, %v6868_v16  ;;  %2963 = vrot.lane.b32.xlu1 %v2932_v19, %s4394_s28  ;;  %vm6988_vm12 = vmmov %vm6983_vm14  ;;  %v4283_v29 = vld [vmem:[%s4506_s27 + $0x80] sm:$0xf] }
  0xec   : > { %v2010_v2 = vsel %vm6987_vm0, %v3754_v13, %v6070_v1  ;;  %v294_v37 = vand.u32 15, %v186_v26  ;;  %2961 = vrot.lane.b32.xlu0 %v2924_v43, %s4394_s28  ;;  %vm6989_vm14 = vcmask 1046528   ;;  %v6990_v28 = vrot.slane %v5969_v12, 1  ;;  %vm6992_vm3 = vmmov %vm6987_vm0  ;;  %v1980_v13 = vpop.permute.xlu1 %1979  ;;  %v4284_v27 = vld [vmem:[%s4506_s27 + $0x84] sm:$0xf] }
  0xed   : > { %v2044_v40 = vsel %vm6988_vm12, %v2010_v2, %v1978_v9  ;;  %v3080_v32 = vsel %vm6989_vm14, %v3077_v51, %v3079_v54  ;;  %vm6991_vm5 = vmmov %vm6989_vm14  ;;  %vm620_vm8 = vcmp.ge.s32.totalorder %v420_v5, 1  ;;  %v2012_v16 = vsel %vm6992_vm3, %v3755_v52, %v6111_v14  ;;  %v4285_v52 = vld [vmem:[%s4506_s27 + $0x3c] sm:$0xf]  ;;  %v6166_v5 = vld [vmem:[%s4506_s27 + $0x38] sm:$0xf] }
  0xee   : > { %v3078_v46 = vsel %vm6991_vm5, %v6990_v28, %v3077_v51  ;;  %vm6993_vm0 = vcmask 785408   ;;  %v308_v21 = vand.u32 15, %v188_v25  ;;  %vm6994_vm7 = vmmov %vm6988_vm12  ;;  %v815_v56 = vsel %vm4470_vm1, %v6013_v4, 0  ;;  %v1850_v62 = vpop.permute.xlu0 %1849 }
  0xef   : > { %4017 = vmatprep.mubr.msk.bf16.mxu0 %vm6993_vm0, %v2044_v40  ;;  %v2046_v39 = vsel %vm6994_vm7, %v2012_v16, %v1980_v13  ;;  %v1711_v12 = vsel %vm5977_vm9, %v5998_v48, 0  ;;  %3111 = vrot.lane.b32.xlu1 %v3080_v32, %s4395_s7  ;;  %vm6141_vm12 = vmpackc.low %vm620_vm8, %vm620_vm8  ;;  %vm602_vm7 = vcmp.ge.s32.totalorder %v294_v37, 1  ;;  %v1714_v19 = vsel %vm4470_vm1, %v4284_v27, 0  ;;  %v4287_v32 = vld [vmem:[%s4506_s27 + $0x44] sm:$0xf] }
  0xf0   : > { %3109 = vrot.lane.b32.xlu0 %v3078_v46, %s4395_s7  ;;  %vm6997_vm14 = vmmov %vm6993_vm0  ;;  %v3764_v26 = vcombine.low %v1711_v12, %v815_v56  ;;  %v1852_v4 = vpop.permute.xlu1 %1851  ;;  %vm604_vm5 = vcmp.ge.s32.totalorder %v308_v21, 1  ;;  %v1713_v63 = vsel %vm6141_vm12, %v4283_v29, 0  ;;  %v6163_v54 = vsel %vm4470_vm1, %v4285_v52, 0  ;;  %v6180_v46 = vld [vmem:[%s4506_s27 + $0x40] sm:$0xf] }
  0xf1   : > { %4018 = vmatmul.mubr.msk.bf16.gmra.mxu0 %vm6997_vm14, %v2046_v39  ;;  %vm6152_vm8 = vmpackc.low %vm602_vm7, %vm602_vm7  ;;  %vm7002_vm0 = vcmask 261120   ;;  %v3765_v37 = vcombine.low %v1713_v63, %v1714_v19  ;;  %v6177_v28 = vsel %vm4470_vm1, %v4287_v32, 0  ;;  %vm7003_vm7 = vcmask 523264   ;;  %v4289_v52 = vld [vmem:[%s4506_s27 + $0x4] sm:$0xf] }
  0xf2   : > { %vm6156_vm3 = vmpackc.low %vm604_vm5, %vm604_vm5  ;;  %v1695_v25 = vsel %vm6152_vm8, %v6166_v5, 0  ;;  %v2031_v2 = vsel %vm7002_vm0, %v3764_v26, %v1850_v62  ;;  %v1998_v9 = vpop.permute.xlu0 %1997  ;;  %v2595_v12 = vsel %vm5628_vm6, %v5668_v33, 0  ;;  %v2596_v62 = vsel %vm4470_vm1, %v5671_v57, 0 }
  0xf3   : > { %v1697_v16 = vsel %vm6156_vm3, %v6180_v46, 0  ;;  %v2064_v13 = vsel %vm7003_vm7, %v2031_v2, %v1998_v9  ;;  %v3756_v21 = vcombine.low %v1695_v25, %v6163_v54  ;;  %vm7004_vm5 = vmmov %vm7002_vm0  ;;  %v6198_v27 = vcombine.low %v2595_v12, %v2596_v62  ;;  %v4291_v62 = vld [vmem:[%s4506_s27 + $0x10] sm:$0xf] }
  0xf4   : > { %v6172_v40 = vpop.permute.xlu1 %1418  ;;  %4037 = vmatprep.mubr.msk.bf16.mxu1 %vm6997_vm14, %v2064_v13  ;;  %v3757_v39 = vcombine.low %v1697_v16, %v6177_v28  ;;  %v2034_v26 = vsel %vm7004_vm5, %v3765_v37, %v1852_v4  ;;  %v2597_v19 = vsel %vm5661_vm15, %v5711_v45, 0  ;;  %v2598_v49 = vsel %vm4470_vm1, %v5719_v30, 0  ;;  %vm7005_vm6 = vmmov %vm7003_vm7  ;;  %v4290_v4 = vld [vmem:[%s4506_s27] sm:$0xf] }
  0xf5   : > { %v785_v57 = vsel %vm4470_vm1, %v4289_v52, 0  ;;  %v784_v25 = vsel %vm5525_vm2, %v4290_v4, 0  ;;  %v6213_v2 = vcombine.low %v2597_v19, %v2598_v49  ;;  %vm7006_vm0 = vmmov %vm6997_vm14  ;;  %v2599_v59 = vsel %vm5958_vm13, %v5761_v20, 0  ;;  %v4293_v4 = vld [vmem:[%s4506_s27 + $0x18] sm:$0xf] }
  0xf6   : > { %v2000_v29 = vpop.permute.xlu0 %1999  ;;  %v2600_v45 = vsel %vm4470_vm1, %v5781_v24, 0  ;;  %v814_v30 = vsel %vm6141_vm12, %v5998_v48, 0  ;;  %v2603_v37 = vsel %vm6141_vm12, %v6019_v6, 0  ;;  %v2604_v20 = vsel %vm4470_vm1, %v6029_v11, 0  ;;  %vm7007_vm15 = vmmov %vm7004_vm5 }
  0xf7   : > { %v2066_v33 = vsel %vm7005_vm6, %v2034_v26, %v2000_v29  ;;  %v6228_v9 = vcombine.low %v2599_v59, %v2600_v45  ;;  %v6230_v32 = vcombine.low %v814_v30, %v815_v56  ;;  %v2601_v24 = vsel %vm5977_vm9, %v5825_v31, 0  ;;  %vm7008_vm13 = vmmov %vm7004_vm5  ;;  %v4292_v26 = vld [vmem:[%s4506_s27 + $0x14] sm:$0xf] }
  0xf8   : > { %v6196_v63 = vpop.permute.xlu1 %1420  ;;  %4038 = vmatmul.mubr.msk.bf16.gmra.mxu1 %vm7006_vm0, %v2066_v33  ;;  %v2014_v23 = vsel %vm7007_vm15, %v3756_v21, %v6172_v40  ;;  %v6242_v56 = vcombine.low %v2603_v37, %v2604_v20  ;;  %v2602_v11 = vsel %vm4470_vm1, %v5831_v15, 0  ;;  %vm7009_vm12 = vmmov %vm7005_vm6  ;;  %v3700_v34 = vcombine.low %v784_v25, %v785_v57  ;;  %v4294_v25 = vld [vmem:[%s4506_s27 + $0x1c] sm:$0xf] }
  0xf9   : > { %v2016_v48 = vsel %vm7008_vm13, %v3757_v39, %v6196_v63  ;;  %vm7010_vm7 = vmmov %vm7005_vm6  ;;  %v6249_v13 = vcombine.low %v2601_v24, %v2602_v11  ;;  %v2573_v15 = vsel %vm5525_vm2, %v4291_v62, 0  ;;  %v2574_v29 = vsel %vm4470_vm1, %v4292_v26, 0  ;;  %v4295_v24 = vld [vmem:[%s4506_s27 + $0x18] sm:$0xf]  ;;  %v4298_v26 = vld [vmem:[%s4506_s27 + $0x28] sm:$0xf] }
  0xfa   : > { %v1982_v6 = vpop.permute.xlu0 %1981  ;;  %vm7011_vm9 = vmmov %vm7006_vm0  ;;  %v3841_v49 = vcombine.low %v2573_v15, %v2574_v29  ;;  %v2575_v55 = vsel %vm5494_vm11, %v4293_v4, 0  ;;  %v2576_v59 = vsel %vm4470_vm1, %v4294_v25, 0  ;;  %v2579_v29 = vsel %vm5839_vm10, %v4298_v26, 0 }
  0xfb   : > { %v2048_v16 = vsel %vm7009_vm12, %v2014_v23, %v1982_v6  ;;  %vm7012_vm14 = vmmov %vm7006_vm0  ;;  %v3842_v37 = vcombine.low %v2575_v55, %v2576_v59 }
  0xfc   : > { %v1984_v60 = vpop.permute.xlu1 %1983  ;;  %4021 = vmatprep.mubr.msk.bf16.mxu0 %vm7011_vm9, %v2048_v16  ;;  %vm7013_vm15 = vmmov %vm7005_vm6 }
  0xfd   : > { %v2050_v31 = vsel %vm7010_vm7, %v2016_v48, %v1984_v60  ;;  %vm7014_vm2 = vmmov %vm7006_vm0 }
  0xfe   : > { %4022 = vmatmul.mubr.msk.bf16.gmra.mxu0 %vm7012_vm14, %v2050_v31  ;;  %v1405_v39 = vpop.permute.xlu0 %1404  ;;  %vm7015_vm13 = vmmov %vm7004_vm5  ;;  %v4296_v31 = vld [vmem:[%s4506_s27 + $0x20] sm:$0xf] }
  0xff   : > { %v1588_v12 = vsel %vm7004_vm5, %v3700_v34, %v1405_v39  ;;  %vm7016_vm12 = vmmov %vm7005_vm6  ;;  %v2577_v34 = vsel %vm5583_vm4, %v4296_v31, 0 }
 0x100   : > { %v1554_v21 = vpop.permute.xlu1 %1553  ;;  %vm7017_vm11 = vmmov %vm7006_vm0 }
 0x101   : > { %v1636_v19 = vsel %vm7005_vm6, %v1588_v12, %v1554_v21  ;;  %vm7018_vm7 = vmmov %vm7004_vm5  ;;  %v4297_v21 = vld [vmem:[%s4506_s27 + $0x24] sm:$0xf] }
 0x102   : > { %4053 = vmatprep.mubr.msk.bf16.mxu1 %vm7006_vm0, %v1636_v19  ;;  %v1556_v52 = vpop.permute.xlu0 %1555  ;;  %vm7019_vm9 = vmmov %vm7005_vm6  ;;  %v2578_v39 = vsel %vm4470_vm1, %v4297_v21, 0  ;;  %v4299_v19 = vld [vmem:[%s4506_s27 + $0x2c] sm:$0xf] }
 0x103   : > { %v1638_v57 = vsel %vm7013_vm15, %v5543_v22, %v1556_v52  ;;  %v790_v22 = vsel %vm5839_vm10, %v4295_v24, 0  ;;  %vm7020_vm14 = vmmov %vm7005_vm6  ;;  %v3843_v12 = vcombine.low %v2577_v34, %v2578_v39  ;;  %vm7024_vm15 = vnez %v6969_v44  ;;  %v4301_v24 = vld [vmem:[%s4506_s27 + $0x34] sm:$0xf] }
 0x104   : > { %v2934_v33 = vpop.permute.xlu1 %2933  ;;  %4054 = vmatmul.mubr.msk.bf16.vlgmr.msra.gmra.mxu1 %vm7014_vm2, %v1638_v57  ;;  %v3703_v23 = vcombine.low %v790_v22, %v5735_v61  ;;  %vm7021_vm5 = vmmov %vm7006_vm0  ;;  %v792_v15 = vsel %vm7024_vm15, %v5864_v7, 0 }
 0x105   : > { %v3115_v45 = vsel %vm7015_vm13, %v3841_v49, %v2934_v33  ;;  %vm7022_vm6 = vmmov %vm7006_vm0  ;;  %v2580_v49 = vsel %vm4470_vm1, %v4299_v19, 0 }
 0x106   : > { %v2936_v20 = vpop.permute.xlu0 %2935  ;;  %vm7023_vm0 = vmmov %vm7018_vm7  ;;  %v3844_v7 = vcombine.low %v2579_v29, %v2580_v49  ;;  %v4305_v29 = vld [vmem:[%s4506_s27 + $0x44] sm:$0xf] }
 0x107   : > { %v3118_v48 = vsel %vm7018_vm7, %v3842_v37, %v2936_v20  ;;  %v1597_v61 = vsel %vm7023_vm0, %v3703_v23, %v5696_v47  ;;  %vm7025_vm2 = vmmov %vm7019_vm9  ;;  %v3704_v47 = vcombine.low %v792_v15, %v5853_v18 }
 0x108   : > { %v3082_v30 = vpop.permute.xlu1 %3081  ;;  %vm7026_vm4 = vmmov %vm7021_vm5 }
 0x109   : > { %v3162_v0 = vsel %vm7016_vm12, %v3115_v45, %v3082_v30  ;;  %vm7027_vm13 = vmmov %vm7023_vm0  ;;  %vm7028_vm12 = vnez %v6980_v42  ;;  %v798_v42 = vsel %vm6156_vm3, %v6166_v5, 0  ;;  %v4304_v5 = vld [vmem:[%s4506_s27 + $0x40] sm:$0xf] }
 0x10a   : > { %4097 = vmatprep.mubr.msk.bf16.mxu0 %vm7017_vm11, %v3162_v0  ;;  %v3084_v60 = vpop.permute.xlu0 %3083  ;;  %v794_v53 = vsel %vm7028_vm12, %v6065_v58, 0  ;;  %vm7029_vm10 = vmmov %vm7025_vm2  ;;  %v4300_v58 = vld [vmem:[%s4506_s27 + $0x30] sm:$0xf]  ;;  %v2585_v26 = vsel %vm6152_vm8, %v4304_v5, 0 }
 0x10b   : > { %v3164_v16 = vsel %vm7020_vm14, %v3118_v48, %v3084_v60  ;;  %vm7030_vm11 = vmmov %vm7026_vm4  ;;  %v3705_v25 = vcombine.low %v794_v53, %v6062_v35  ;;  %v2581_v20 = vsel %vm7024_vm15, %v4300_v58, 0  ;;  %v796_v48 = vsel %vm6152_vm8, %v6102_v50, 0  ;;  %v4308_v58 = vld [vmem:[%s4506_s27 + $0x50] sm:$0xf] }
 0x10c   : > { %v1558_v6 = vpop.permute.xlu1 %1557  ;;  %4098 = vmatmul.mubr.msk.bf16.vlgmr.msra.gmra.mxu0 %vm7022_vm6, %v3164_v16  ;;  %vm7031_vm7 = vmmov %vm7023_vm0 }
 0x10d   : > { %v1640_v11 = vsel %vm7019_vm9, %v5616_v38, %v1558_v6  ;;  %v1600_v55 = vsel %vm7031_vm7, %v3704_v47, %v5920_v17  ;;  %vm7032_vm9 = vmmov %vm7023_vm0  ;;  %v2582_v17 = vsel %vm4470_vm1, %v4301_v24, 0  ;;  %v4302_v6 = vld [vmem:[%s4506_s27 + $0x38] sm:$0xf]  ;;  %v4309_v24 = vld [vmem:[%s4506_s27 + $0x54] sm:$0xf] }
 0x10e   : > { %4057 = vmatprep.mubr.msk.bf16.mxu1 %vm7021_vm5, %v1640_v11  ;;  %v1560_v62 = vpop.permute.xlu0 %1559  ;;  %vm7033_vm14 = vmmov %vm7025_vm2  ;;  %v3845_v22 = vcombine.low %v2581_v20, %v2582_v17  ;;  %v2583_v60 = vsel %vm7028_vm12, %v4302_v6, 0  ;;  %v4303_v11 = vld [vmem:[%s4506_s27 + $0x3c] sm:$0xf]  ;;  %v2590_v17 = vsel %vm4470_vm1, %v4309_v24, 0 }
 0x10f   : > { %v1642_v10 = vsel %vm7025_vm2, %v1597_v61, %v1560_v62  ;;  %vm7034_vm5 = vmmov %vm7025_vm2  ;;  %v2584_v16 = vsel %vm4470_vm1, %v4303_v11, 0 }
 0x110   : > { %v2938_v38 = vpop.permute.xlu1 %2937  ;;  %4058 = vmatmul.mubr.msk.bf16.gmra.mxu1 %vm7026_vm4, %v1642_v10  ;;  %vm7035_vm6 = vmmov %vm7026_vm4  ;;  %v3846_v50 = vcombine.low %v2583_v60, %v2584_v16 }
 0x111   : > { %v3121_v33 = vsel %vm7027_vm13, %v3843_v12, %v2938_v38  ;;  %vm7036_vm0 = vmmov %vm7026_vm4  ;;  %v3707_v12 = vcombine.low %v798_v42, %v6163_v54 }
 0x112   : > { %v2940_v57 = vpop.permute.xlu0 %2939  ;;  %vm7037_vm2 = vmmov %vm7031_vm7 }
 0x113   : > { %v3124_v18 = vsel %vm7032_vm9, %v3844_v7, %v2940_v57  ;;  %v1603_v35 = vsel %vm7037_vm2, %v3705_v25, %v6070_v1  ;;  %vm7038_vm4 = vmmov %vm7034_vm5  ;;  %v3706_v1 = vcombine.low %v796_v48, %v6099_v41  ;;  %v4307_v57 = vld [vmem:[%s4506_s27 + $0x4c] sm:$0xf]  ;;  %v7062_v48 = vld [vmem:[#allocation11_spill] sm:$0xff] }
 0x114   : > { %v3086_v52 = vpop.permute.xlu1 %3085  ;;  %vm7039_vm15 = vmmov %vm7036_vm0  ;;  %v2588_v53 = vsel %vm4470_vm1, %v4307_v57, 0 }
 0x115   : > { %v3166_v4 = vsel %vm7029_vm10, %v3121_v33, %v3086_v52  ;;  %vm7040_vm13 = vmmov %vm7037_vm2  ;;  %v4306_v52 = vld [vmem:[%s4506_s27 + $0x48] sm:$0xf] }
 0x116   : > { %4101 = vmatprep.mubr.msk.bf16.mxu0 %vm7030_vm11, %v3166_v4  ;;  %v3088_v45 = vpop.permute.xlu0 %3087  ;;  %vm7041_vm12 = vmmov %vm7038_vm4  ;;  %v2587_v7 = vsel %vm6156_vm3, %v4306_v52, 0 }
 0x117   : > { %v3168_v37 = vsel %vm7034_vm5, %v3124_v18, %v3088_v45  ;;  %vm7042_vm10 = vmmov %vm7036_vm0 }
 0x118   : > { %v1562_v59 = vpop.permute.xlu1 %1561  ;;  %4102 = vmatmul.mubr.msk.bf16.gmra.mxu0 %vm7036_vm0, %v3168_v37  ;;  %vm7043_vm11 = vmmov %vm7037_vm2 }
 0x119   : > { %v1644_v30 = vsel %vm7033_vm14, %v1600_v55, %v1562_v59  ;;  %v1606_v61 = vsel %vm7043_vm11, %v3706_v1, %v6111_v14  ;;  %vm7044_vm7 = vmmov %vm7037_vm2  ;;  %v2586_v14 = vsel %vm4470_vm1, %v4305_v29, 0 }
 0x11a   : > { %4061 = vmatprep.mubr.msk.bf16.mxu1 %vm7035_vm6, %v1644_v30  ;;  %v1564_v23 = vpop.permute.xlu0 %1563  ;;  %vm7045_vm9 = vmmov %vm7038_vm4  ;;  %v3847_v19 = vcombine.low %v2585_v26, %v2586_v14  ;;  %v7075_v26 = vld [vmem:[#allocation6_spill] sm:$0xff] }
 0x11b   : > { %v1646_v44 = vsel %vm7038_vm4, %v1603_v35, %v1564_v23  ;;  %vm7046_vm14 = vmmov %vm7038_vm4  ;;  %v4310_v23 = vld [vmem:[%s4506_s27 + $0x58] sm:$0xf] }
 0x11c   : > { %v2942_v0 = vpop.permute.xlu1 %2941  ;;  %4062 = vmatmul.mubr.msk.bf16.gmra.mxu1 %vm7039_vm15, %v1646_v44  ;;  %vm7047_vm5 = vmmov %vm7036_vm0  ;;  %v4311_v44 = vld [vmem:[%s4506_s27 + $0x5c] sm:$0xf] }
 0x11d   : > { %v3127_v31 = vsel %vm7040_vm13, %v3845_v22, %v2942_v0  ;;  %vm7048_vm6 = vmmov %vm7036_vm0  ;;  %v2592_v6 = vsel %vm4470_vm1, %v4311_v44, 0 }
 0x11e   : > { %v2944_v21 = vpop.permute.xlu0 %2943  ;;  %vm7049_vm0 = vmmov %vm7037_vm2  ;;  %vm7050_vm2 = vnez %v6873_v36 }
 0x11f   : > { %v3130_v41 = vsel %vm7044_vm7, %v3846_v50, %v2944_v21  ;;  %v1609_v54 = vsel %vm7049_vm0, %v3707_v12, %v6172_v40  ;;  %v800_v33 = vsel %vm7050_vm2, %v6180_v46, 0  ;;  %vm7051_vm8 = vmmov %vm7047_vm5  ;;  %v3848_v46 = vcombine.low %v2587_v7, %v2588_v53  ;;  %v7068_v21 = vld [vmem:[#allocation7_spill] sm:$0xff]  ;;  %v7071_v12 = vld [vmem:[#allocation9_spill] sm:$0xff] }
 0x120   : > { %v3090_v34 = vpop.permute.xlu1 %3089  ;;  %v3708_v40 = vcombine.low %v800_v33, %v6177_v28  ;;  %vm7052_vm15 = vmmov %vm7049_vm0  ;;  %v2589_v20 = vsel %vm7050_vm2, %v4308_v58, 0  ;;  %v7098_v58 = vld [vmem:[#allocation8_spill] sm:$0xff] }
 0x121   : > { %v3170_v39 = vsel %vm7041_vm12, %v3127_v31, %v3090_v34  ;;  %vm7053_vm13 = vmmov %vm7038_vm4 }
 0x122   : > { %4105 = vmatprep.mubr.msk.bf16.mxu0 %vm7042_vm10, %v3170_v39  ;;  %v3092_v62 = vpop.permute.xlu0 %3091  ;;  %vm7054_vm12 = vmmov %vm7047_vm5 }
 0x123   : > { %v3172_v10 = vsel %vm7046_vm14, %v3130_v41, %v3092_v62  ;;  %vm7055_vm3 = vmmov %vm7049_vm0 }
 0x124   : > { %v1566_v38 = vpop.permute.xlu1 %1565  ;;  %4106 = vmatmul.mubr.msk.bf16.gmra.mxu0 %vm7048_vm6, %v3172_v10  ;;  %v1612_v51 = vsel %vm7055_vm3, %v3708_v40, %v6196_v63  ;;  %vm7056_vm10 = vmmov %vm7049_vm0  ;;  %v3849_v63 = vcombine.low %v2589_v20, %v2590_v17  ;;  %vm7063_vm6 = vnez %v7062_v48  ;;  %v7087_v40 = vld [vmem:[#allocation10_spill] sm:$0xff] }
 0x125   : > { %v1648_v15 = vsel %vm7045_vm9, %v1606_v61, %v1566_v38  ;;  %vm7057_vm11 = vmmov %vm7038_vm4  ;;  %v2591_v36 = vsel %vm7063_vm6, %v4310_v23, 0  ;;  %v4312_v61 = vld [vmem:[%s4506_s27 + $0x60] sm:$0xf]  ;;  %v4313_v38 = vld [vmem:[%s4506_s27 + $0x64] sm:$0xf]  ;;  %s158_s27 = sand.u32 1, %s4374_s10  }
 0x126   : > { %4065 = vmatprep.mubr.msk.bf16.mxu1 %vm7047_vm5, %v1648_v15  ;;  %v1568_v47 = vpop.permute.xlu0 %1567  ;;  %vm7058_vm7 = vmmov %vm7038_vm4  ;;  %v3850_v16 = vcombine.low %v2591_v36, %v2592_v6  ;;  %v2594_v62 = vsel %vm4470_vm1, %v4313_v38, 0  ;;  %s3698_s28 = sshll.u32 %s158_s27, 8  ;;  %s6609_s12 = scalar_lea.sflag [#allocation3], %s158_s27 }
 0x127   : > { %v1650_v43 = vsel %vm7038_vm4, %v1609_v54, %v1568_v47  ;;  %vm7059_vm9 = vmmov %vm7047_vm5  ;;  %s6506_s7 = scalar_lea.vmem [#allocation2], %s3698_s28 }
 0x128   : > { %v2946_v49 = vpop.permute.xlu1 %2945  ;;  %4066 = vmatmul.mubr.msk.bf16.gmra.mxu1 %vm7051_vm8, %v1650_v43  ;;  %vm7060_vm14 = vmmov %vm7047_vm5  ;;  %v7082_v43 = vld [vmem:[#allocation5_spill] sm:$0xff]  ;;  %s3611_s15 = sshll.u32 %s6506_s7, 4  ;;  %s6601_s15 = int_to_ptr.vmem [resolvable:$true] %s3611_s15 }
 0x129   : > { %v3133_v4 = vsel %vm7052_vm15, %v3847_v19, %v2946_v49  ;;  %vm7061_vm5 = vmmov %vm7038_vm4  ;;  %s4314_s23 = scalar_lea.vmem %s6601_s15, 4096  ;;  %p4321_p1 = scmp.lt.s32.totalorder %s6601_s15, %s4319_s25 }
 0x12a   : > { %v2948_v25 = vpop.permute.xlu0 %2947  ;;  %vm7064_vm0 = vmmov %vm7051_vm8  ;;  %p4315_p12 = scmp.ne.s32.totalorder %s6601_s15, %s4314_s23  ;;  %p4322_p2 = scmp.lt.s32.totalorder %s4320_s26, %s4314_s23 }
 0x12b   : > { %v3136_v59 = vsel %vm7056_vm10, %v3848_v46, %v2948_v25  ;;  %vm7065_vm2 = vmmov %vm7055_vm3  ;;  %vm7072_vm3 = vnez %v7071_v12 }
 0x12c   : > { %v3094_v55 = vpop.permute.xlu1 %3093  ;;  %vm7066_vm8 = vmmov %vm7064_vm0  ;;  %v2593_v41 = vsel %vm7072_vm3, %v4312_v61, 0  ;;  %p4316_p13 = pnand %p4315_p12, %p4454_p4  ;;  %p4323_p3 = por %p4322_p2, %p4321_p1 }
 0x12d   : > { %v3174_v18 = vsel %vm7053_vm13, %v3133_v4, %v3094_v55  ;;  %vm7067_vm15 = vmmov %vm7065_vm2  ;;  %v3851_v15 = vcombine.low %v2593_v41, %v2594_v62 }
 0x12e   : > { %4109 = vmatprep.mubr.msk.bf16.mxu0 %vm7054_vm12, %v3174_v18  ;;  %v3096_v30 = vpop.permute.xlu0 %3095  ;;  %vm7069_vm13 = vmmov %vm7038_vm4  ;;  %p4317_p0 = pneg %p4316_p13 }
 0x12f   : > { %v3176_v37 = vsel %vm7058_vm7, %v3136_v59, %v3096_v30  ;;  %vm7070_vm12 = vmmov %vm7038_vm4 }
 0x130   : > { %v1570_v45 = vpop.permute.xlu1 %1569  ;;  %4110 = vmatmul.mubr.msk.bf16.gmra.mxu0 %vm7060_vm14, %v3176_v37  ;;  %vm7073_vm10 = vmmov %vm7064_vm0  ;;  %p4324_p5 = pnand %p4323_p3, %p4317_p0 }
 0x131   : > { %v1652_v28 = vsel %vm7057_vm11, %v1612_v51, %v1570_v45  ;;  %vm7074_vm11 = vmmov %vm7064_vm0 }
 0x132   : > { %4069 = vmatprep.mubr.msk.bf16.mxu1 %vm7059_vm9, %v1652_v28  ;;  %v1572_v22 = vpop.permute.xlu0 %1571  ;;  %vm7076_vm7 = vmmov %vm7038_vm4 }
 0x133   : > { %v1654_v0 = vsel %vm7061_vm5, %v5520_v8, %v1572_v22  ;;  %vm7077_vm9 = vmmov %vm7064_vm0 }
 0x134   : > { %v2950_v35 = vpop.permute.xlu1 %2949  ;;  %4070 = vmatmul.mubr.msk.bf16.gmra.mxu1 %vm7064_vm0, %v1654_v0  ;;  %vm7078_vm14 = vmmov %vm7065_vm2 }
 0x135   : > { %v3139_v60 = vsel %vm7065_vm2, %v3849_v63, %v2950_v35  ;;  %vm7079_vm5 = vmmov %vm7038_vm4 }
 0x136   : > { %v2952_v1 = vpop.permute.xlu0 %2951  ;;  %vm7080_vm6 = vmmov %vm7064_vm0 }
 0x137   : > { %v3142_v8 = vsel %vm7067_vm15, %v3850_v16, %v2952_v1  ;;  %vm7081_vm1 = vmmov %vm7065_vm2 }
 0x138   : > { %v3098_v11 = vpop.permute.xlu1 %3097  ;;  %vm7083_vm0 = vmmov %vm7038_vm4 }
 0x139   : > { %v3178_v31 = vsel %vm7038_vm4, %v3139_v60, %v3098_v11  ;;  %vm7084_vm2 = vmmov %vm7083_vm0 }
 0x13a   : > { %4113 = vmatprep.mubr.msk.bf16.mxu0 %vm7066_vm8, %v3178_v31  ;;  %v3100_v50 = vpop.permute.xlu0 %3099  ;;  %vm7085_vm4 = vmmov %vm7080_vm6 }
 0x13b   : > { %v3180_v39 = vsel %vm7070_vm12, %v3142_v8, %v3100_v50  ;;  %vm7086_vm8 = vmmov %vm7085_vm4 }
 0x13c   : > { %v1574_v34 = vpop.permute.xlu1 %1573  ;;  %4114 = vmatmul.mubr.msk.bf16.gmra.mxu0 %vm7074_vm11, %v3180_v39  ;;  %vm7088_vm15 = vmmov %vm7083_vm0 }
 0x13d   : > { %v1656_v42 = vsel %vm7069_vm13, %v7068_v21, %v1574_v34  ;;  %vm7089_vm13 = vmmov %vm7085_vm4 }
 0x13e   : > { %4073 = vmatprep.mubr.msk.bf16.mxu1 %vm7073_vm10, %v1656_v42  ;;  %v1576_v5 = vpop.permute.xlu0 %1575  ;;  %vm7090_vm12 = vmmov %vm7081_vm1 }
 0x13f   : > { %v1658_v29 = vsel %vm7076_vm7, %v7075_v26, %v1576_v5  ;;  %vm7091_vm3 = vmmov %vm7083_vm0 }
 0x140   : > { %v2954_v10 = vpop.permute.xlu1 %2953  ;;  %4074 = vmatmul.mubr.msk.bf16.gmra.mxu1 %vm7077_vm9, %v1658_v29  ;;  %vm7092_vm10 = vmmov %vm7085_vm4 }
 0x141   : > { %v3145_v14 = vsel %vm7078_vm14, %v3851_v15, %v2954_v10  ;;  %vm7093_vm11 = vmmov %vm7081_vm1 }
 0x142   : > { %v2956_v19 = vpop.permute.xlu0 %2955  ;;  %vm7094_vm7 = vmmov %vm7083_vm0 }
 0x143   : > { %v3148_v3 = vsel %vm7081_vm1, %v6198_v27, %v2956_v19  ;;  %vm7095_vm9 = vmmov %vm7085_vm4 }
 0x144   : > { %v3102_v54 = vpop.permute.xlu1 %3101  ;;  %vm7096_vm14 = vmmov %vm7081_vm1 }
 0x145   : > { %v3182_v49 = vsel %vm7079_vm5, %v3145_v14, %v3102_v54  ;;  %vm7097_vm5 = vmmov %vm7083_vm0 }
 0x146   : > { %4117 = vmatprep.mubr.msk.bf16.mxu0 %vm7080_vm6, %v3182_v49  ;;  %v3104_v33 = vpop.permute.xlu0 %3103  ;;  %vm7099_vm6 = vmmov %vm7083_vm0 }
 0x147   : > { %v3184_v7 = vsel %vm7084_vm2, %v3148_v3, %v3104_v33  ;;  %vm7100_vm1 = vmmov %vm7085_vm4 }
 0x148   : > { %v1578_v47 = vpop.permute.xlu1 %1577  ;;  %4118 = vmatmul.mubr.msk.bf16.gmra.mxu0 %vm7086_vm8, %v3184_v7  ;;  %vm7102_vm2 = vmmov %vm7093_vm11 }
 0x149   : > { %v1660_v52 = vsel %vm7083_vm0, %v7082_v43, %v1578_v47  ;;  %vm7101_vm0 = vmmov %vm7100_vm1 }
 0x14a   : > { %4077 = vmatprep.mubr.msk.bf16.mxu1 %vm7085_vm4, %v1660_v52  ;;  %v1580_v53 = vpop.permute.xlu0 %1579  ;;  %vm7103_vm4 = vmmov %vm7102_vm2 }
 0x14b   : > { %v1662_v4 = vsel %vm7088_vm15, %v7087_v40, %v1580_v53  ;;  %vm7104_vm8 = vmmov %vm7091_vm3 }
 0x14c   : > { %v2958_v57 = vpop.permute.xlu1 %2957  ;;  %4078 = vmatmul.mubr.msk.bf16.gmra.mxu1 %vm7089_vm13, %v1662_v4  ;;  %vm7105_vm15 = vmmov %vm7091_vm3 }
 0x14d   : > { %v3151_v27 = vsel %vm7090_vm12, %v6213_v2, %v2958_v57  ;;  %vm7106_vm13 = vmmov %vm7101_vm0 }
 0x14e   : > { %v2960_v46 = vpop.permute.xlu0 %2959  ;;  %vm7107_vm12 = vmmov %vm7101_vm0 }
 0x14f   : > { %v3154_v18 = vsel %vm7093_vm11, %v6228_v9, %v2960_v46  ;;  %vm7108_vm11 = vmmov %vm7102_vm2 }
 0x150   : > { %v3106_v55 = vpop.permute.xlu1 %3105 }
 0x151   : > { %v3186_v25 = vsel %vm7091_vm3, %v3151_v27, %v3106_v55 }
 0x152   : > { %4121 = vmatprep.mubr.msk.bf16.mxu0 %vm7092_vm10, %v3186_v25 }
 0x153   : > { %v3108_v59 = vpop.permute.xlu0 %3107 }
 0x154   : > { %v1435_v51 = vpop.permute.xlu1 %1434  ;;  %v3188_v45 = vsel %vm7094_vm7, %v3154_v18, %v3108_v59  ;;  %vm7109_vm7 = vmmov %vm7102_vm2 }
 0x155   : > { %4122 = vmatmul.mubr.msk.bf16.gmra.mxu0 %vm7095_vm9, %v3188_v45  ;;  %v1633_v30 = vsel %vm7096_vm14, %v6230_v32, %v1435_v51 }
 0x157   : > { %v1582_v2 = vpop.permute.xlu0 %1581 }
 0x158   : > { %v1584_v28 = vpop.permute.xlu1 %1583  ;;  %v1664_v20 = vsel %vm7099_vm6, %v7098_v58, %v1582_v2  ;;  %vm7111_vm6 = vmmov %vm7102_vm2 }
 0x159   : > { %v1666_v37 = vsel %vm7097_vm5, %v1633_v30, %v1584_v28  ;;  %4081 = vmatprep.mubr.msk.bf16.mxu1 %vm7100_vm1, %v1664_v20  ;;  %vm7110_vm5 = vmmov %vm7102_vm2 }
 0x15a   : > { %4082 = vmatmul.mubr.msk.bf16.gmra.mxu1 %vm7101_vm0, %v1666_v37 }
 0x15d   : > { %v2964_v9 = vpop.permute.xlu1 %2963 }
 0x15e   : > { %v2962_v24 = vpop.permute.xlu0 %2961  ;;  %v3160_v17 = vsel %vm7102_vm2, %v6242_v56, %v2964_v9 }
 0x15f   : > { %v3157_v63 = vsel %vm7103_vm4, %v6249_v13, %v2962_v24  ;;  %vm7112_vm4 = vmmov %vm7102_vm2 }
 0x161   : > { %v3112_v32 = vpop.permute.xlu1 %3111 }
 0x162   : > { %v3110_v35 = vpop.permute.xlu0 %3109  ;;  %v3192_v22 = vsel %vm7104_vm8, %v3160_v17, %v3112_v32 }
 0x163   : > { %v3190_v0 = vsel %vm7105_vm15, %v3157_v63, %v3110_v35 }
 0x164   : > { %4125 = vmatprep.mubr.msk.bf16.mxu0 %vm7106_vm13, %v3190_v0  ;;  %vm7113_vm13 = vmmov %vm7102_vm2 }
 0x165   : > { %4126 = vmatmul.mubr.msk.bf16.gmra.mxu0 %vm7107_vm12, %v3192_v22  ;;  %vm7114_vm12 = vmmov %vm7102_vm2 }
 0x183   : > { %v6451_v23 = vpop.f32.mrf.mxu1 }
 0x185   : > { %v6453_v48 = vpop.f32.mrf.mxu1 }
 0x187   : > { %v6455_v44 = vpop.f32.mrf.mxu1 }
 0x189   : > { %v4011_v36 = vpop.f32.mrf.mxu0  ;;  %v6457_v6 = vpop.f32.mrf.mxu1 }
 0x18b   : > { %v2183_v56 = vpop.f32.mrf.mxu0 }
 0x18c   : > { %v6459_v60 = vpop.f32.mrf.mxu1 }
 0x18d   : > { %v4012_v13 = vpop.f32.mrf.mxu0 }
 0x18e   : > { %v6461_v16 = vpop.f32.mrf.mxu1 }
 0x18f   : > { %v2186_v11 = vpop.f32.mrf.mxu0 }
 0x190   : > { %v6463_v31 = vpop.f32.mrf.mxu1 }
 0x192   : > { %v6465_v34 = vpop.f32.mrf.mxu1 }
 0x19b   : > { %v4015_v1 = vpop.f32.mrf.mxu0 }
 0x19d   : > { %v2199_v8 = vpop.f32.mrf.mxu0 }
 0x19f   : > { %v6467_v50 = vpop.f32.mrf.mxu0 }
 0x1a1   : > { %v6471_v42 = vpop.f32.mrf.mxu0 }
 0x1ab   : > { %v6469_v21 = vpop.f32.mrf.mxu1 }
 0x1ad   : > { %v6473_v39 = vpop.f32.mrf.mxu1 }
 0x1af   : > { %v6477_v12 = vpop.f32.mrf.mxu1 }
 0x1b1   : > { %v6475_v61 = vpop.f32.mrf.mxu0  ;;  %v6481_v38 = vpop.f32.mrf.mxu1 }
 0x1b3   : > { %v6479_v41 = vpop.f32.mrf.mxu0 }
 0x1b5   : > { %v6483_v62 = vpop.f32.mrf.mxu0 }
 0x1b7   : > { %v6489_v5 = vpop.f32.mrf.mxu0 }
 0x1b8   : > { %v6485_v15 = vpop.f32.mrf.mxu1 }
 0x1ba   : > { %v6487_v10 = vpop.f32.mrf.mxu1 }
 0x1bc   : > { %v6491_v26 = vpop.f32.mrf.mxu1 }
 0x1be   : > { %v6493_v29 = vpop.f32.mrf.mxu0  ;;  %v6495_v14 = vpop.f32.mrf.mxu1 }
 0x1c0   : > { %v6497_v54 = vpop.f32.mrf.mxu0 }
 0x1c2   : > { %v6499_v49 = vpop.f32.mrf.mxu0 }
 0x1c4   : > { %v4055_v19 = vpop.f32.mrf.mxu1  ;;  %v6502_v47 = vpop.f32.mrf.mxu0 }
 0x1c5   : > { %v2421_v43 = vadd.f32 %v4055_v19, %v4011_v36 }
 0x1c6   : > { %v2412_v3 = vpop.f32.mrf.mxu1 }
 0x1c7   : > { %v2413_v7 = vadd.f32 %v2412_v3, %v2183_v56 }
 0x1c8   : > { %v4056_v33 = vpop.f32.mrf.mxu1 }
 0x1c9   : > { %v2424_v55 = vadd.f32 %v4056_v33, %v4012_v13 }
 0x1ca   : > { %v2415_v53 = vpop.f32.mrf.mxu1 }
 0x1cb   : > { %v2416_v18 = vadd.f32 %v2415_v53, %v2186_v11 }
 0x1cc   : > { %v4099_v52 = vpop.f32.mrf.mxu0 }
 0x1cd   : > { %v3437_v57 = vadd.f32 %v4099_v52, %v2421_v43 }
 0x1ce   : > { %v3308_v40 = vpop.f32.mrf.mxu0 }
 0x1cf   : > { %vm3469_vm3 = vcmp.ge.f32.partialorder %v3437_v57, 0.0  ;;  %v3501_v4 = vmul.f32 0.01, %v3437_v57  ;;  %v3435_v27 = vadd.f32 %v3308_v40, %v2413_v7 }
 0x1d0   : > { %v4059_v46 = vpop.f32.mrf.mxu1  ;;  %v4100_v25 = vpop.f32.mrf.mxu0 }
 0x1d1   : > { %v3533_v51 = vsel %vm3469_vm3, %v3437_v57, %v3501_v4  ;;  %vm3467_vm10 = vcmp.ge.f32.partialorder %v3435_v27, 0.0  ;;  %v3499_v59 = vmul.f32 0.01, %v3435_v27  ;;  %v3438_v45 = vadd.f32 %v4100_v25, %v2424_v55 }
 0x1d2   : > { %3565 = vst.msk [vmem:[%s6506_s7 + $0x10] sm:$0xff] %vm7108_vm11, %v3533_v51  ;;  %v2428_v30 = vpop.f32.mrf.mxu1  ;;  %v3311_v28 = vpop.f32.mrf.mxu0  ;;  %v2437_v17 = vadd.f32 %v4059_v46, %v4015_v1  ;;  %vm7115_vm11 = vmmov %vm7102_vm2 }
 0x1d3   : > { %v3531_v2 = vsel %vm3467_vm10, %v3435_v27, %v3499_v59  ;;  %v3436_v37 = vadd.f32 %v3311_v28, %v2416_v18  ;;  %vm3470_vm9 = vcmp.ge.f32.partialorder %v3438_v45, 0.0  ;;  %v3502_v58 = vmul.f32 0.01, %v3438_v45 }
 0x1d4   : > { %3563 = vst.msk [vmem:[%s6506_s7] sm:$0xff] %vm7109_vm7, %v3531_v2  ;;  %v4060_v24 = vpop.f32.mrf.mxu1  ;;  %v2429_v35 = vadd.f32 %v2428_v30, %v2199_v8  ;;  %vm7116_vm7 = vmmov %vm7102_vm2 }
 0x1d5   : > { %vm3468_vm14 = vcmp.ge.f32.partialorder %v3436_v37, 0.0  ;;  %v3500_v20 = vmul.f32 0.01, %v3436_v37  ;;  %v3534_v9 = vsel %vm3470_vm9, %v3438_v45, %v3502_v58  ;;  %v2440_v11 = vadd.f32 %v4060_v24, %v6467_v50 }
 0x1d6   : > { %3566 = vst.msk [vmem:[%s6506_s7 + $0x18] sm:$0xff] %vm7110_vm5, %v3534_v9  ;;  %v2431_v0 = vpop.f32.mrf.mxu1  ;;  %vm7117_vm5 = vmmov %vm7102_vm2 }
 0x1d7   : > { %v3532_v63 = vsel %vm3468_vm14, %v3436_v37, %v3500_v20  ;;  %v2432_v1 = vadd.f32 %v2431_v0, %v6471_v42 }
 0x1d8   : > { %3564 = vst.msk [vmem:[%s6506_s7 + $0x8] sm:$0xff] %vm7111_vm6, %v3532_v63  ;;  %v4103_v32 = vpop.f32.mrf.mxu0  ;;  %vm7118_vm6 = vmmov %vm7102_vm2 }
 0x1d9   : > { %v3441_v22 = vadd.f32 %v4103_v32, %v2437_v17 }
 0x1da   : > { %v3324_v36 = vpop.f32.mrf.mxu0 }
 0x1db   : > { %vm3473_vm1 = vcmp.ge.f32.partialorder %v3441_v22, 0.0  ;;  %v3505_v56 = vmul.f32 0.01, %v3441_v22  ;;  %v3439_v13 = vadd.f32 %v3324_v36, %v2429_v35 }
 0x1dc   : > { %v4063_v19 = vpop.f32.mrf.mxu1  ;;  %v4104_v3 = vpop.f32.mrf.mxu0 }
 0x1dd   : > { %v3537_v33 = vsel %vm3473_vm1, %v3441_v22, %v3505_v56  ;;  %vm3471_vm0 = vcmp.ge.f32.partialorder %v3439_v13, 0.0  ;;  %v3503_v43 = vmul.f32 0.01, %v3439_v13  ;;  %v3442_v8 = vadd.f32 %v4104_v3, %v2440_v11 }
 0x1de   : > { %3569 = vst.msk [vmem:[%s6506_s7 + $0x30] sm:$0xff] %vm7102_vm2, %v3537_v33  ;;  %v2444_v52 = vpop.f32.mrf.mxu1  ;;  %v3327_v7 = vpop.f32.mrf.mxu0  ;;  %v2453_v27 = vadd.f32 %v4063_v19, %v6475_v61 }
 0x1df   : > { %v3535_v57 = vsel %vm3471_vm0, %v3439_v13, %v3503_v43  ;;  %v3440_v53 = vadd.f32 %v3327_v7, %v2432_v1  ;;  %vm3474_vm8 = vcmp.ge.f32.partialorder %v3442_v8, 0.0  ;;  %v3506_v50 = vmul.f32 0.01, %v3442_v8 }
 0x1e0   : > { %3567 = vst.msk [vmem:[%s6506_s7 + $0x20] sm:$0xff] %vm7112_vm4, %v3535_v57  ;;  %v4064_v42 = vpop.f32.mrf.mxu1  ;;  %v2445_v25 = vadd.f32 %v2444_v52, %v6479_v41  ;;  %vm7119_vm4 = vmmov %vm7102_vm2 }
 0x1e1   : > { %vm3472_vm15 = vcmp.ge.f32.partialorder %v3440_v53, 0.0  ;;  %v3504_v40 = vmul.f32 0.01, %v3440_v53  ;;  %v3538_v4 = vsel %vm3474_vm8, %v3442_v8, %v3506_v50  ;;  %v2456_v28 = vadd.f32 %v4064_v42, %v6483_v62 }
 0x1e2   : > { %3570 = vst.msk [vmem:[%s6506_s7 + $0x38] sm:$0xff] %vm7113_vm13, %v3538_v4  ;;  %v2447_v51 = vpop.f32.mrf.mxu1  ;;  %vm7120_vm13 = vmmov %vm7102_vm2 }
 0x1e3   : > { %v3536_v55 = vsel %vm3472_vm15, %v3440_v53, %v3504_v40  ;;  %v2448_v37 = vadd.f32 %v2447_v51, %v6489_v5 }
 0x1e4   : > { %3568 = vst.msk [vmem:[%s6506_s7 + $0x28] sm:$0xff] %vm7114_vm12, %v3536_v55  ;;  %v4107_v46 = vpop.f32.mrf.mxu0  ;;  %vm7121_vm12 = vmmov %vm7102_vm2 }
 0x1e5   : > { %v3445_v18 = vadd.f32 %v4107_v46, %v2453_v27 }
 0x1e6   : > { %v3340_v59 = vpop.f32.mrf.mxu0 }
 0x1e7   : > { %vm3477_vm3 = vcmp.ge.f32.partialorder %v3445_v18, 0.0  ;;  %v3509_v45 = vmul.f32 0.01, %v3445_v18  ;;  %v3443_v30 = vadd.f32 %v3340_v59, %v2445_v25 }
 0x1e8   : > { %v4067_v2 = vpop.f32.mrf.mxu1  ;;  %v4108_v61 = vpop.f32.mrf.mxu0 }
 0x1e9   : > { %v3541_v58 = vsel %vm3477_vm3, %v3445_v18, %v3509_v45  ;;  %vm3475_vm10 = vcmp.ge.f32.partialorder %v3443_v30, 0.0  ;;  %v3507_v20 = vmul.f32 0.01, %v3443_v30  ;;  %v3446_v41 = vadd.f32 %v4108_v61, %v2456_v28 }
 0x1ea   : > { %3573 = vst.msk [vmem:[%s6506_s7 + $0x50] sm:$0xff] %vm7115_vm11, %v3541_v58  ;;  %v2460_v9 = vpop.f32.mrf.mxu1  ;;  %v3343_v24 = vpop.f32.mrf.mxu0  ;;  %v2469_v22 = vadd.f32 %v4067_v2, %v6493_v29  ;;  %vm7122_vm11 = vmmov %vm7102_vm2 }
 0x1eb   : > { %v3539_v17 = vsel %vm3475_vm10, %v3443_v30, %v3507_v20  ;;  %v3444_v63 = vadd.f32 %v3343_v24, %v2448_v37  ;;  %vm3478_vm9 = vcmp.ge.f32.partialorder %v3446_v41, 0.0  ;;  %v3510_v62 = vmul.f32 0.01, %v3446_v41 }
 0x1ec   : > { %3571 = vst.msk [vmem:[%s6506_s7 + $0x40] sm:$0xff] %vm7116_vm7, %v3539_v17  ;;  %v4068_v5 = vpop.f32.mrf.mxu1  ;;  %v2461_v56 = vadd.f32 %v2460_v9, %v6497_v54  ;;  %vm7123_vm7 = vmmov %vm7102_vm2 }
 0x1ed   : > { %vm3476_vm14 = vcmp.ge.f32.partialorder %v3444_v63, 0.0  ;;  %v3508_v32 = vmul.f32 0.01, %v3444_v63  ;;  %v3542_v35 = vsel %vm3478_vm9, %v3446_v41, %v3510_v62  ;;  %v2472_v33 = vadd.f32 %v4068_v5, %v6499_v49 }
 0x1ee   : > { %3574 = vst.msk [vmem:[%s6506_s7 + $0x58] sm:$0xff] %vm7117_vm5, %v3542_v35  ;;  %v2463_v11 = vpop.f32.mrf.mxu1  ;;  %vm7124_vm5 = vmmov %vm7102_vm2 }
 0x1ef   : > { %v3540_v0 = vsel %vm3476_vm14, %v3444_v63, %v3508_v32  ;;  %v2464_v8 = vadd.f32 %v2463_v11, %v6502_v47 }
 0x1f0   : > { %3572 = vst.msk [vmem:[%s6506_s7 + $0x48] sm:$0xff] %vm7118_vm6, %v3540_v0  ;;  %v4111_v36 = vpop.f32.mrf.mxu0  ;;  %vm7125_vm6 = vmmov %vm7102_vm2 }
 0x1f1   : > { %v3449_v13 = vadd.f32 %v4111_v36, %v2469_v22 }
 0x1f2   : > { %v3356_v19 = vpop.f32.mrf.mxu0 }
 0x1f3   : > { %vm3481_vm1 = vcmp.ge.f32.partialorder %v3449_v13, 0.0  ;;  %v3513_v3 = vmul.f32 0.01, %v3449_v13  ;;  %v3447_v1 = vadd.f32 %v3356_v19, %v2461_v56 }
 0x1f4   : > { %v4071_v43 = vpop.f32.mrf.mxu1  ;;  %v4112_v29 = vpop.f32.mrf.mxu0 }
 0x1f5   : > { %v3545_v52 = vsel %vm3481_vm1, %v3449_v13, %v3513_v3  ;;  %vm3479_vm0 = vcmp.ge.f32.partialorder %v3447_v1, 0.0  ;;  %v3511_v7 = vmul.f32 0.01, %v3447_v1  ;;  %v3450_v54 = vadd.f32 %v4112_v29, %v2472_v33 }
 0x1f6   : > { %3577 = vst.msk [vmem:[%s6506_s7 + $0x70] sm:$0xff] %vm7102_vm2, %v3545_v52  ;;  %v2476_v57 = vpop.f32.mrf.mxu1  ;;  %v3359_v53 = vpop.f32.mrf.mxu0  ;;  %v2485_v27 = vadd.f32 %v4071_v43, %v6451_v23 }
 0x1f7   : > { %v3543_v50 = vsel %vm3479_vm0, %v3447_v1, %v3511_v7  ;;  %v3448_v40 = vadd.f32 %v3359_v53, %v2464_v8  ;;  %vm3482_vm8 = vcmp.ge.f32.partialorder %v3450_v54, 0.0  ;;  %v3514_v49 = vmul.f32 0.01, %v3450_v54 }
 0x1f8   : > { %3575 = vst.msk [vmem:[%s6506_s7 + $0x60] sm:$0xff] %vm7119_vm4, %v3543_v50  ;;  %v4072_v47 = vpop.f32.mrf.mxu1  ;;  %v2477_v25 = vadd.f32 %v2476_v57, %v6453_v48  ;;  %vm7126_vm4 = vmmov %vm7102_vm2 }
 0x1f9   : > { %vm3480_vm15 = vcmp.ge.f32.partialorder %v3448_v40, 0.0  ;;  %v3512_v4 = vmul.f32 0.01, %v3448_v40  ;;  %v3546_v42 = vsel %vm3482_vm8, %v3450_v54, %v3514_v49  ;;  %v2488_v28 = vadd.f32 %v4072_v47, %v6455_v44 }
 0x1fa   : > { %3578 = vst.msk [vmem:[%s6506_s7 + $0x78] sm:$0xff] %vm7120_vm13, %v3546_v42  ;;  %v2479_v51 = vpop.f32.mrf.mxu1  ;;  %vm7127_vm13 = vmmov %vm7102_vm2 }
 0x1fb   : > { %v3544_v55 = vsel %vm3480_vm15, %v3448_v40, %v3512_v4  ;;  %v2480_v61 = vadd.f32 %v2479_v51, %v6457_v6 }
 0x1fc   : > { %3576 = vst.msk [vmem:[%s6506_s7 + $0x68] sm:$0xff] %vm7121_vm12, %v3544_v55  ;;  %v4115_v46 = vpop.f32.mrf.mxu0  ;;  %vm7128_vm12 = vmmov %vm7102_vm2 }
 0x1fd   : > { %v3453_v18 = vadd.f32 %v4115_v46, %v2485_v27 }
 0x1fe   : > { %v3372_v59 = vpop.f32.mrf.mxu0 }
 0x1ff   : > { %vm3485_vm3 = vcmp.ge.f32.partialorder %v3453_v18, 0.0  ;;  %v3517_v45 = vmul.f32 0.01, %v3453_v18  ;;  %v3451_v30 = vadd.f32 %v3372_v59, %v2477_v25 }
 0x200   : > { %v4075_v2 = vpop.f32.mrf.mxu1  ;;  %v4116_v23 = vpop.f32.mrf.mxu0 }
 0x201   : > { %v3549_v37 = vsel %vm3485_vm3, %v3453_v18, %v3517_v45  ;;  %vm3483_vm10 = vcmp.ge.f32.partialorder %v3451_v30, 0.0  ;;  %v3515_v58 = vmul.f32 0.01, %v3451_v30  ;;  %v3454_v48 = vadd.f32 %v4116_v23, %v2488_v28 }
 0x202   : > { %3581 = vst.msk [vmem:[%s6506_s7 + $0x90] sm:$0xff] %vm7122_vm11, %v3549_v37  ;;  %v2492_v20 = vpop.f32.mrf.mxu1  ;;  %v3375_v41 = vpop.f32.mrf.mxu0  ;;  %v2501_v62 = vadd.f32 %v4075_v2, %v6459_v60  ;;  %vm7129_vm11 = vmmov %vm7102_vm2 }
 0x203   : > { %v3547_v9 = vsel %vm3483_vm10, %v3451_v30, %v3515_v58  ;;  %v3452_v24 = vadd.f32 %v3375_v41, %v2480_v61  ;;  %vm3486_vm9 = vcmp.ge.f32.partialorder %v3454_v48, 0.0  ;;  %v3518_v44 = vmul.f32 0.01, %v3454_v48 }
 0x204   : > { %3579 = vst.msk [vmem:[%s6506_s7 + $0x80] sm:$0xff] %vm7123_vm7, %v3547_v9  ;;  %v4076_v6 = vpop.f32.mrf.mxu1  ;;  %v2493_v5 = vadd.f32 %v2492_v20, %v6461_v16 }
 0x205   : > { %vm3484_vm14 = vcmp.ge.f32.partialorder %v3452_v24, 0.0  ;;  %v3516_v17 = vmul.f32 0.01, %v3452_v24  ;;  %v3550_v63 = vsel %vm3486_vm9, %v3454_v48, %v3518_v44  ;;  %v2504_v11 = vadd.f32 %v4076_v6, %v6463_v31  ;;  %vm7130_vm9 = vmmov %vm7102_vm2 }
 0x206   : > { %3582 = vst.msk [vmem:[%s6506_s7 + $0x98] sm:$0xff] %vm7124_vm5, %v3550_v63  ;;  %v2495_v0 = vpop.f32.mrf.mxu1  ;;  %vm7131_vm5 = vmmov %vm7102_vm2 }
 0x207   : > { %v3548_v32 = vsel %vm3484_vm14, %v3452_v24, %v3516_v17  ;;  %v2496_v3 = vadd.f32 %v2495_v0, %v6465_v34 }
 0x208   : > { %3580 = vst.msk [vmem:[%s6506_s7 + $0x88] sm:$0xff] %vm7125_vm6, %v3548_v32  ;;  %v4119_v35 = vpop.f32.mrf.mxu0  ;;  %vm7132_vm6 = vmmov %vm7102_vm2 }
 0x209   : > { %v3457_v22 = vadd.f32 %v4119_v35, %v2501_v62 }
 0x20a   : > { %v3388_v36 = vpop.f32.mrf.mxu0 }
 0x20b   : > { %vm3489_vm1 = vcmp.ge.f32.partialorder %v3457_v22, 0.0  ;;  %v3521_v56 = vmul.f32 0.01, %v3457_v22  ;;  %v3455_v13 = vadd.f32 %v3388_v36, %v2493_v5 }
 0x20c   : > { %v4079_v19 = vpop.f32.mrf.mxu1  ;;  %v4120_v60 = vpop.f32.mrf.mxu0 }
 0x20d   : > { %v3553_v1 = vsel %vm3489_vm1, %v3457_v22, %v3521_v56  ;;  %vm3487_vm0 = vcmp.ge.f32.partialorder %v3455_v13, 0.0  ;;  %v3519_v33 = vmul.f32 0.01, %v3455_v13  ;;  %v3458_v16 = vadd.f32 %v4120_v60, %v2504_v11 }
 0x20e   : > { %3585 = vst.msk [vmem:[%s6506_s7 + $0xb0] sm:$0xff] %vm7102_vm2, %v3553_v1  ;;  %v2508_v43 = vpop.f32.mrf.mxu1  ;;  %v3391_v29 = vpop.f32.mrf.mxu0  ;;  %v2517_v57 = vadd.f32 %v4079_v19, %v6469_v21 }
 0x20f   : > { %v3551_v8 = vsel %vm3487_vm0, %v3455_v13, %v3519_v33  ;;  %v3456_v52 = vadd.f32 %v3391_v29, %v2496_v3  ;;  %vm3490_vm8 = vcmp.ge.f32.partialorder %v3458_v16, 0.0  ;;  %v3522_v31 = vmul.f32 0.01, %v3458_v16 }
 0x210   : > { %3583 = vst.msk [vmem:[%s6506_s7 + $0xa0] sm:$0xff] %vm7126_vm4, %v3551_v8  ;;  %v4080_v54 = vpop.f32.mrf.mxu1  ;;  %v2509_v40 = vadd.f32 %v2508_v43, %v6473_v39 }
 0x211   : > { %vm3488_vm15 = vcmp.ge.f32.partialorder %v3456_v52, 0.0  ;;  %v3520_v7 = vmul.f32 0.01, %v3456_v52  ;;  %v3554_v34 = vsel %vm3490_vm8, %v3458_v16, %v3522_v31  ;;  %v2520_v47 = vadd.f32 %v4080_v54, %v6477_v12  ;;  %vm7133_vm8 = vmmov %vm7102_vm2 }
 0x212   : > { %3586 = vst.msk [vmem:[%s6506_s7 + $0xb8] sm:$0xff] %vm7127_vm13, %v3554_v34  ;;  %v2511_v49 = vpop.f32.mrf.mxu1  ;;  %vm7134_vm13 = vmmov %vm7102_vm2 }
 0x213   : > { %v3552_v53 = vsel %vm3488_vm15, %v3456_v52, %v3520_v7  ;;  %v2512_v21 = vadd.f32 %v2511_v49, %v6481_v38 }
 0x214   : > { %3584 = vst.msk [vmem:[%s6506_s7 + $0xa8] sm:$0xff] %vm7128_vm12, %v3552_v53  ;;  %vm7135_vm12 = vmmov %vm7102_vm2 }
 0x215   : > { %v4123_v50 = vpop.f32.mrf.mxu0 }
 0x216   : > { %v3461_v4 = vadd.f32 %v4123_v50, %v2517_v57 }
 0x217   : > { %v3404_v42 = vpop.f32.mrf.mxu0 }
 0x218   : > { %vm3493_vm3 = vcmp.ge.f32.partialorder %v3461_v4, 0.0  ;;  %v3525_v27 = vmul.f32 0.01, %v3461_v4  ;;  %v3459_v55 = vadd.f32 %v3404_v42, %v2509_v40 }
 0x219   : > { %v4124_v46 = vpop.f32.mrf.mxu0 }
 0x21a   : > { %v3557_v25 = vsel %vm3493_vm3, %v3461_v4, %v3525_v27  ;;  %vm3491_vm10 = vcmp.ge.f32.partialorder %v3459_v55, 0.0  ;;  %v3523_v18 = vmul.f32 0.01, %v3459_v55  ;;  %v3462_v51 = vadd.f32 %v4124_v46, %v2520_v47  ;;  %v4083_v59 = vpop.f32.mrf.mxu1 }
 0x21b   : > { %3589 = vst.msk [vmem:[%s6506_s7 + $0xd0] sm:$0xff] %vm7129_vm11, %v3557_v25  ;;  %v3407_v39 = vpop.f32.mrf.mxu0  ;;  %v2533_v37 = vadd.f32 %v4083_v59, %v6485_v15 }
 0x21c   : > { %v3555_v45 = vsel %vm3491_vm10, %v3459_v55, %v3523_v18  ;;  %vm3494_vm7 = vcmp.ge.f32.partialorder %v3462_v51, 0.0  ;;  %v3526_v12 = vmul.f32 0.01, %v3462_v51  ;;  %v3460_v30 = vadd.f32 %v3407_v39, %v2512_v21  ;;  %v2524_v28 = vpop.f32.mrf.mxu1 }
 0x21d   : > { %3587 = vst.msk [vmem:[%s6506_s7 + $0xc0] sm:$0xff] %vm7130_vm9, %v3555_v45  ;;  %v2525_v48 = vadd.f32 %v2524_v28, %v6487_v10 }
 0x21e   : > { %v3558_v2 = vsel %vm3494_vm7, %v3462_v51, %v3526_v12  ;;  %vm3492_vm14 = vcmp.ge.f32.partialorder %v3460_v30, 0.0  ;;  %v3524_v38 = vmul.f32 0.01, %v3460_v30  ;;  %v4084_v23 = vpop.f32.mrf.mxu1 }
 0x21f   : > { %3590 = vst.msk [vmem:[%s6506_s7 + $0xd8] sm:$0xff] %vm7131_vm5, %v3558_v2  ;;  %v2536_v24 = vadd.f32 %v4084_v23, %v6491_v26 }
 0x220   : > { %v3556_v61 = vsel %vm3492_vm14, %v3460_v30, %v3524_v38  ;;  %v2527_v20 = vpop.f32.mrf.mxu1 }
 0x221   : > { %3588 = vst.msk [vmem:[%s6506_s7 + $0xc8] sm:$0xff] %vm7132_vm6, %v3556_v61  ;;  %v2528_v63 = vadd.f32 %v2527_v20, %v6495_v14 }
 0x225   : > { %v4127_v58 = vpop.f32.mrf.mxu0 }
 0x226   : > { %v3465_v41 = vadd.f32 %v4127_v58, %v2533_v37 }
 0x227   : > { %v3420_v9 = vpop.f32.mrf.mxu0 }
 0x228   : > { %vm3497_vm1 = vcmp.ge.f32.partialorder %v3465_v41, 0.0  ;;  %v3529_v44 = vmul.f32 0.01, %v3465_v41  ;;  %v3463_v17 = vadd.f32 %v3420_v9, %v2525_v48 }
 0x229   : > { %v4128_v15 = vpop.f32.mrf.mxu0 }
 0x22a   : > { %v3561_v6 = vsel %vm3497_vm1, %v3465_v41, %v3529_v44  ;;  %vm3495_vm0 = vcmp.ge.f32.partialorder %v3463_v17, 0.0  ;;  %v3527_v62 = vmul.f32 0.01, %v3463_v17  ;;  %v3466_v32 = vadd.f32 %v4128_v15, %v2536_v24 }
 0x22b   : > { %3593 = vst.msk [vmem:[%s6506_s7 + $0xf0] sm:$0xff] %vm7102_vm2, %v3561_v6  ;;  %v3423_v10 = vpop.f32.mrf.mxu0 }
 0x22c   : > { %v3559_v26 = vsel %vm3495_vm0, %v3463_v17, %v3527_v62  ;;  %vm3498_vm4 = vcmp.ge.f32.partialorder %v3466_v32, 0.0  ;;  %v3530_v35 = vmul.f32 0.01, %v3466_v32  ;;  %v3464_v5 = vadd.f32 %v3423_v10, %v2528_v63 }
 0x22d   : > { %3591 = vst.msk [vmem:[%s6506_s7 + $0xe0] sm:$0xff] %vm7133_vm8, %v3559_v26 }
 0x22e   : > { %v3562_v14 = vsel %vm3498_vm4, %v3466_v32, %v3530_v35  ;;  %vm3496_vm15 = vcmp.ge.f32.partialorder %v3464_v5, 0.0  ;;  %v3528_v22 = vmul.f32 0.01, %v3464_v5 }
 0x22f   : > { %3594 = vst.msk [vmem:[%s6506_s7 + $0xf8] sm:$0xff] %vm7134_vm13, %v3562_v14 }
 0x230   : > { %v3560_v0 = vsel %vm3496_vm15, %v3464_v5, %v3528_v22 }
 0x231   : > { %3592 = vst.msk [vmem:[%s6506_s7 + $0xe8] sm:$0xff] %vm7135_vm12, %v3560_v0 }
 0x232   : > { %4327 = shalt.err (!%p4324_p5)
}
 0x233   : > { %s4328_s29 = scalar_lea.hbm %s6599_s20, 4096  ;;  %s4332_s4 = scalar_lea.hbm %s6656_s2, 8192 }
 0x234   : > { %p4329_p6 = scmp.ne.s32.totalorder %s6599_s20, %s4328_s29  ;;  %p4333_p10 = scmp.lt.s32.totalorder %s6599_s20, %s6656_s2 }
 0x235   : > { %p4334_p11 = scmp.lt.s32.totalorder %s4332_s4, %s4328_s29 }
 0x236   : > { %p4330_p7 = pnand %p4329_p6, %p4454_p4 }
 0x237   : > { %p4335_p12 = por %p4334_p11, %p4333_p10 }
 0x238   : > { %p4331_p9 = pneg %p4330_p7 }
 0x23a   : > { %p4336_p13 = pnand %p4335_p12, %p4331_p9 }
 0x23c   : > { %4339 = shalt.err (!%p4336_p13)
}
 0x23d   : > { %s4397_s27 = smov 128   ;;  %s4398_s28 = smov 8  }
 0x23e   : > { %4142 = dma.vmem_to_hbm [thread:$0]  (%p4454_p4), %s6601_s15, 4096, %s6599_s20, %s6609_s12, %s4397_s27, %s4397_s27, %s4398_s28  }
 0x23f PF: > { %p4148_p0 = scmp.ge.s32.totalorder %s4390_s14, 2  ;;  %s3626_s7 = sand.u32 1, %s4370_s9  }
 0x240   : > { %s3627_s8 = scalar_lea.sflag [#allocation3], %s3626_s7 }
 0x241   : > { %p4145_p1 = pnand %p4148_p0, %p4461_p8 }
 0x243   : > { %p4146_p2 = pneg %p4145_p1 }
 0x245   : > { %4365 = dma.done.wait (%p4146_p2), %s3627_s8, 4096  }
 0x246   : > { %4367 = vsyncadd (%p4146_p2), %s3627_s8, 4294963200  ;;  %s15_s14 = sadd.s32 1, %s4390_s14   ;;  %s7136_s9 = smov %s4374_s10 }
 0x247   : > { %p12_p3 = scmp.ge.s32.totalorder %s15_s14, 4   ;;  %s7137_s10 = smov %s4378_s11 }
 0x248   : > { %s7138_s11 = smov %s4467_s22  ;;  %s7139_s12 = smov %s4386_s13 }
 0x249   : > { %s7140_s13 = smov %s7142_s17  ;;  %14 = sbr.rel (!%p12_p3) target bundleno = 4 (0x4), region = 65 }
 0x24e   :  { %3632 = vsyncpa [#allocation3], 1 }
 0x24f   :  { %3634 = vsyncpa [#allocation3 + $0x1], 1 }

</bundles_post_ra>
